<compile_context>
chip_gen: v7x
topology: tpu7x:2x2x1
jax: 0.10.0
libtpu: 0.0.40
codegen_flags: <defaults>
</compile_context>

<pallas_src>
import functools

import jax
import jax.numpy as jnp
from jax.experimental import pallas as pl
from jax.experimental.pallas import tpu as pltpu

VMEM = pltpu.MemorySpace.VMEM

# Fixed module geometry (from SN(b, 24, 8, 8, 64) / FC(24, 8, 8, 64)).
C_IN, H_IN, W_IN = 3, 32, 32
KH = KW = 4
OH = OW = 8
HW = OH * OW                 # 64 spatial positions
C_FEAT = 24                  # backbone output channels
PATCH = C_IN * KH * KW       # 48 = im2col patch size
HEAD_DIM = 64                # SN / FC head output width
OUT_DIM = 2                  # final logits
OUT_PAD = 128                # lane-dense padded output width


def _tree_sum(vals):
    """Balanced pairwise sum: log2(N) add depth, no serial accumulation chain."""
    while len(vals) > 1:
        nxt = [vals[i] + vals[i + 1] for i in range(0, len(vals) - 1, 2)]
        if len(vals) % 2:
            nxt.append(vals[-1])
        vals = nxt
    return vals[0]


# ---------------------------------------------------------------------------
# Fused Pallas kernel: entire forward, everything resident in VMEM.
# ---------------------------------------------------------------------------
def _fused_kernel(patches_ref,               # (B, 48, 64) f32  im2col'd image
                  conv_wT_ref, conv_b_ref,   # (24, 48) f32, (24, 1) f32
                  sn_w3_ref, sn_b_ref,       # (24, 24, 64) bf16 [/64 folded], (1, 64) f32
                  fc_w3_hbm_ref,             # (24, 64, 64) bf16 (memory_space=ANY)
                  fc_b_ref,                  # (1, 64) f32
                  f1_sn_ref, f1_fc_ref, f1_b_ref,  # (64, 64), (64, 64), (1, 64) f32
                  f2_w_ref, f2_b_ref,        # (64, 32), (1, 32) f32
                  f3_w_ref, f3_b_ref,        # (32, 128) zero-padded, (1, 128) f32
                  o_ref,                     # (B, 128) f32 lane-dense output
                  fc_w3_vmem,                # VMEM scratch (24, 64, 64) bf16
                  dma_sem,                   # DMA semaphore
                  *, batch, n_ch):
    # Review item 5: kick off the largest weight DMA immediately; it overlaps
    # with the conv / Gram / SN-head compute below and is waited on only when
    # the FC head actually needs it.
    fc_copy = pltpu.make_async_copy(fc_w3_hbm_ref, fc_w3_vmem, dma_sem)
    fc_copy.start()

    conv_wT = conv_wT_ref[...]                                   # (24, 48) f32
    conv_b = conv_b_ref[...]                                     # (24, 1)  f32

    fb16_list = []
    sn_rows = []
    for b in range(batch):                                       # B is tiny -> static unroll
        # --- backbone conv as matmul, channel-major output (24, 64) ----------
        fb = jnp.dot(conv_wT, patches_ref[b],
                     preferred_element_type=jnp.float32)         # (24, 64) f32
        fb = jnp.maximum(fb + conv_b, 0.0)

        # --- SN head: Gram (contraction on the lane dim, clean MXU lowering) -
        g = jax.lax.dot_general(fb, fb, (((1,), (1,)), ((), ())),
                                preferred_element_type=jnp.float32)  # (24, 24) un-normalized

        g16 = g.astype(jnp.bfloat16)                             # bf16 MXU operands
        fb16_list.append(fb.astype(jnp.bfloat16))

        # Review item 1: independent per-channel dots + tree reduction
        # (no serial MXU->VPU dependency chain; pushes pipeline back-to-back).
        parts = [jnp.dot(g16[c:c + 1, :], sn_w3_ref[c],
                         preferred_element_type=jnp.float32)     # (1, 64) f32
                 for c in range(n_ch)]
        sn_rows.append(_tree_sum(parts))                         # (1, 64) f32

    sn_all = jnp.concatenate(sn_rows, axis=0) + sn_b_ref[...]    # (B, 64) f32

    # --- FC head: wait for fc_w3 only now (DMA hidden behind the work above) -
    fc_copy.wait()
    fc_rows = []
    for b in range(batch):
        fb16 = fb16_list[b]                                      # (24, 64) bf16
        parts = [jnp.dot(fb16[c:c + 1, :], fc_w3_vmem[c],
                         preferred_element_type=jnp.float32)     # (1, 64) f32
                 for c in range(n_ch)]
        fc_rows.append(_tree_sum(parts))
    fc_all = jnp.concatenate(fc_rows, axis=0) + fc_b_ref[...]    # (B, 64) f32

    # --- final MLP on the whole (B, .) slab (review item 6);
    #     torch.cat([sn, fc]) folded into the split f1 weight ----------------
    h = (jnp.dot(sn_all, f1_sn_ref[...], preferred_element_type=jnp.float32)
         + jnp.dot(fc_all, f1_fc_ref[...], preferred_element_type=jnp.float32)
         + f1_b_ref[...])
    h = jnp.maximum(h, 0.0)
    h = jnp.maximum(jnp.dot(h, f2_w_ref[...],
                            preferred_element_type=jnp.float32) + f2_b_ref[...], 0.0)
    out = jnp.dot(h, f3_w_ref[...],
                  preferred_element_type=jnp.float32) + f3_b_ref[...]   # (B, 128)

    o_ref[...] = out.astype(o_ref.dtype)                         # single lane-dense store


# ---------------------------------------------------------------------------
# Parameter init (reference layout) + one-time layout/dtype plumbing.
# ---------------------------------------------------------------------------
def init_params(key):
    ks = jax.random.split(key, 12)

    def lin(kw, kb, fan_in, fan_out):
        s = 1.0 / jnp.sqrt(fan_in)
        w = jax.random.uniform(kw, (fan_in, fan_out), jnp.float32, -s, s)
        b = jax.random.uniform(kb, (1, fan_out), jnp.float32, -s, s)
        return w, b

    p = {}
    p["conv_w"], p["conv_b"] = lin(ks[0], ks[1], PATCH, C_FEAT)          # (48, 24)
    p["sn_w"], p["sn_b"] = lin(ks[2], ks[3], C_FEAT * C_FEAT, HEAD_DIM)  # (576, 64)
    p["fc_w"], p["fc_b"] = lin(ks[4], ks[5], C_FEAT * HW, HEAD_DIM)      # (1536, 64)
    p["f1_w"], p["f1_b"] = lin(ks[6], ks[7], 2 * HEAD_DIM, 64)           # (128, 64)
    p["f2_w"], p["f2_b"] = lin(ks[8], ks[9], 64, 32)
    p["f3_w"], p["f3_b"] = lin(ks[10], ks[11], 32, OUT_DIM)
    return p


def prepare_params(p):
    """One-time layout plumbing; big head weights stored as bf16 (review item 4)."""
    kp = {}
    kp["conv_wT"] = p["conv_w"].T                                  # (24, 48) f32
    kp["conv_b"] = p["conv_b"].T                                   # (24, 1)  f32
    # fold the Gram normalization 1/HW into the SN weight, then quantize
    kp["sn_w3"] = (p["sn_w"] / float(HW)).reshape(
        C_FEAT, C_FEAT, HEAD_DIM).astype(jnp.bfloat16)             # (24, 24, 64) bf16
    kp["sn_b"] = p["sn_b"]
    # fc_w rows are indexed c*HW + s (NCHW flatten) -> per-channel (64, 64) blocks
    kp["fc_w3"] = p["fc_w"].reshape(C_FEAT, HW, HEAD_DIM).astype(jnp.bfloat16)
    kp["fc_b"] = p["fc_b"]
    # split Linear(128, 64) into sn / fc halves (removes the concat)
    kp["f1_sn"] = p["f1_w"][:HEAD_DIM]
    kp["f1_fc"] = p["f1_w"][HEAD_DIM:]
    kp["f1_b"] = p["f1_b"]
    kp["f2_w"] = p["f2_w"]
    kp["f2_b"] = p["f2_b"]
    # zero-pad the last layer to a lane-dense 128-wide output
    kp["f3_w"] = jnp.zeros((32, OUT_PAD), jnp.float32).at[:, :OUT_DIM].set(p["f3_w"])
    kp["f3_b"] = jnp.zeros((1, OUT_PAD), jnp.float32).at[:, :OUT_DIM].set(p["f3_b"])
    return kp


def dequantized_params(p):
    """Reference params with sn_w / fc_w rounded through bf16 exactly as the kernel sees them."""
    q = dict(p)
    q["sn_w"] = ((p["sn_w"] / float(HW)).astype(jnp.bfloat16)
                 .astype(jnp.float32)) * float(HW)
    q["fc_w"] = p["fc_w"].astype(jnp.bfloat16).astype(jnp.float32)
    return q


# ---------------------------------------------------------------------------
# Wrapper: im2col (input plumbing, same jit region) + single pallas_call.
# ---------------------------------------------------------------------------
def im2col_cm(img):
    """img (B, 3, 32, 32) NCHW -> (B, 48, 64): patch-feature x spatial, per batch."""
    B, C, H, W = img.shape
    x = img.reshape(B, C, OH, KH, OW, KW)
    x = jnp.transpose(x, (0, 1, 3, 5, 2, 4))       # (B, C, KH, KW, OH, OW)
    return x.reshape(B, C * KH * KW, OH * OW)


def res_sn_fc_forward(kparams, img):
    B = img.shape[0]
    patches = im2col_cm(img)                       # (B, 48, 64)

    vmem_spec = pl.BlockSpec(memory_space=VMEM)
    in_specs = ([vmem_spec] * 5                    # patches, conv_wT, conv_b, sn_w3, sn_b
                + [pl.BlockSpec(memory_space=pl.ANY)]   # fc_w3 -> manual overlapped DMA
                + [vmem_spec] * 8)                 # fc_b, f1_sn, f1_fc, f1_b, f2_w, f2_b, f3_w, f3_b

    out_padded = pl.pallas_call(
        functools.partial(_fused_kernel, batch=B, n_ch=C_FEAT),
        out_shape=jax.ShapeDtypeStruct((B, OUT_PAD), jnp.float32),
        in_specs=in_specs,
        out_specs=pl.BlockSpec(memory_space=VMEM),
        scratch_shapes=[pltpu.VMEM((C_FEAT, HW, HEAD_DIM), jnp.bfloat16),
                        pltpu.SemaphoreType.DMA],
    )(patches,
      kparams["conv_wT"], kparams["conv_b"],
      kparams["sn_w3"], kparams["sn_b"],
      kparams["fc_w3"], kparams["fc_b"],
      kparams["f1_sn"], kparams["f1_fc"], kparams["f1_b"],
      kparams["f2_w"], kparams["f2_b"],
      kparams["f3_w"], kparams["f3_b"])

    return out_padded[:, :OUT_DIM]                 # (B, 2)


# ---------------------------------------------------------------------------
# Pure-JAX reference (original 5-stage formulation) for correctness checks.
# ---------------------------------------------------------------------------
def reference_forward(p, img):
    hp = jax.lax.Precision.HIGHEST
    B = img.shape[0]
    x = img.reshape(B, C_IN, OH, KH, OW, KW)
    x = jnp.transpose(x, (0, 2, 4, 1, 3, 5)).reshape(B * HW, PATCH)
    feat = jnp.maximum(jnp.dot(x, p["conv_w"], precision=hp) + p["conv_b"], 0.0)
    feat = feat.reshape(B, OH, OW, C_FEAT).transpose(0, 3, 1, 2)        # (B, 24, 8, 8)
    x_sn = feat.reshape(B, C_FEAT, HW)
    gram = jnp.einsum("bcd,bed->bce", x_sn, x_sn, precision=hp) / float(HW)
    sn_x = jnp.dot(gram.reshape(B, C_FEAT * C_FEAT), p["sn_w"], precision=hp) + p["sn_b"]
    fc_x = jnp.dot(feat.reshape(B, C_FEAT * HW), p["fc_w"], precision=hp) + p["fc_b"]
    z = jnp.concatenate([sn_x, fc_x], axis=1)
    h = jnp.maximum(jnp.dot(z, p["f1_w"], precision=hp) + p["f1_b"], 0.0)
    h = jnp.maximum(jnp.dot(h, p["f2_w"], precision=hp) + p["f2_b"], 0.0)
    return jnp.dot(h, p["f3_w"], precision=hp) + p["f3_b"]


# ---------------------------------------------------------------------------
if __name__ == "__main__":
    key = jax.random.PRNGKey(0)
    k_param, k_img = jax.random.split(key)

    params = init_params(k_param)
    kparams = prepare_params(params)
    img = jax.random.normal(k_img, (2, C_IN, H_IN, W_IN), jnp.float32)   # NCHW, batch=2

    fwd = jax.jit(res_sn_fc_forward)
    out = jax.block_until_ready(fwd(kparams, img))

    assert out.shape == (2, OUT_DIM), out.shape
    assert bool(jnp.all(jnp.isfinite(out)))

    # Tight functional check: reference evaluated with the SAME bf16-rounded
    # head weights the kernel consumes.  Remaining delta = default MXU
    # precision (vs. HIGHEST) + bf16 rounding of the head activations.
    ref_q = reference_forward(dequantized_params(params), img)
    assert jnp.allclose(out, ref_q, rtol=1e-2, atol=1e-2), (out, ref_q)

    # End-to-end check vs. the original f32 parameters; the looser tolerance
    # additionally covers the documented bf16 quantization of sn_w / fc_w.
    ref = reference_forward(params, img)
    assert jnp.allclose(out, ref, rtol=3e-2, atol=3e-2), (out, ref)

    print("KERNEL_OK")
</pallas_src>

<mosaic_0001>
module attributes {stable_mosaic.version = 11 : i64} {
  func.func @_fused_kernel(%arg0: memref<2x48x64xf32, #tpu.memory_space<vmem>>, %arg1: memref<24x48xf32, #tpu.memory_space<vmem>>, %arg2: memref<24x1xf32, #tpu.memory_space<vmem>>, %arg3: memref<24x24x64xbf16, #tpu.memory_space<vmem>>, %arg4: memref<1x64xf32, #tpu.memory_space<vmem>>, %arg5: memref<24x64x64xbf16, #tpu.memory_space<any>>, %arg6: memref<1x64xf32, #tpu.memory_space<vmem>>, %arg7: memref<64x64xf32, #tpu.memory_space<vmem>>, %arg8: memref<64x64xf32, #tpu.memory_space<vmem>>, %arg9: memref<1x64xf32, #tpu.memory_space<vmem>>, %arg10: memref<64x32xf32, #tpu.memory_space<vmem>>, %arg11: memref<1x32xf32, #tpu.memory_space<vmem>>, %arg12: memref<32x128xf32, #tpu.memory_space<vmem>>, %arg13: memref<1x128xf32, #tpu.memory_space<vmem>>, %arg14: memref<2x128xf32, #tpu.memory_space<vmem>>, %arg15: memref<24x64x64xbf16, #tpu.memory_space<vmem>>, %arg16: memref<!tpu.dma_semaphore, #tpu.memory_space<semaphore_mem>>) attributes {dimension_semantics = [], scalar_prefetch = 0 : i64, scratch_operands = 2 : i64, tpu.core_type = #tpu.core_type<tc>} {
    tpu.enqueue_dma source(%arg5 : memref<24x64x64xbf16, #tpu.memory_space<any>>) target(%arg15 : memref<24x64x64xbf16, #tpu.memory_space<vmem>>) target_semaphore(%arg16 : memref<!tpu.dma_semaphore, #tpu.memory_space<semaphore_mem>>)
    %c0 = arith.constant 0 : index
    %c0_0 = arith.constant 0 : index
    %0 = vector.load %arg1[%c0, %c0_0] : memref<24x48xf32, #tpu.memory_space<vmem>>, vector<24x48xf32>
    %c0_1 = arith.constant 0 : index
    %c0_2 = arith.constant 0 : index
    %1 = vector.load %arg2[%c0_1, %c0_2] : memref<24x1xf32, #tpu.memory_space<vmem>>, vector<24x1xf32>
    %c0_3 = arith.constant 0 : index
    %c0_4 = arith.constant 0 : index
    %c0_5 = arith.constant 0 : index
    %2 = vector.load %arg0[%c0_3, %c0_4, %c0_5] : memref<2x48x64xf32, #tpu.memory_space<vmem>>, vector<1x48x64xf32>
    %3 = vector.shape_cast %2 : vector<1x48x64xf32> to vector<48x64xf32>
    %cst = arith.constant dense<0.000000e+00> : vector<24x64xf32>
    %4 = tpu.matmul %0, %3, %cst {dimension_numbers = #tpu.dot_dimension_numbers<[1], [0], [0], [1], [0, 0, 1, 1], [], []>} : vector<24x48xf32>, vector<48x64xf32>, vector<24x64xf32> -> vector<24x64xf32>
    %5 = vector.broadcast %1 : vector<24x1xf32> to vector<24x64xf32>
    %6 = arith.addf %4, %5 : vector<24x64xf32>
    %cst_6 = arith.constant 0.000000e+00 : f32
    %7 = vector.broadcast %cst_6 : f32 to vector<24x64xf32>
    %8 = arith.maximumf %6, %7 : vector<24x64xf32>
    %cst_7 = arith.constant dense<0.000000e+00> : vector<24x24xf32>
    %9 = tpu.matmul %8, %8, %cst_7 {dimension_numbers = #tpu.dot_dimension_numbers<[1], [1], [0], [0], [0, 0, 1, 0], [], []>} : vector<24x64xf32>, vector<24x64xf32>, vector<24x24xf32> -> vector<24x24xf32>
    %10 = arith.truncf %9 : vector<24x24xf32> to vector<24x24xbf16>
    %11 = arith.truncf %8 : vector<24x64xf32> to vector<24x64xbf16>
    %12 = vector.extract_strided_slice %10 {offsets = [0, 0], sizes = [1, 24], strides = [1, 1]} : vector<24x24xbf16> to vector<1x24xbf16>
    %c0_8 = arith.constant 0 : index
    %c0_9 = arith.constant 0 : index
    %c0_10 = arith.constant 0 : index
    %13 = vector.load %arg3[%c0_8, %c0_9, %c0_10] : memref<24x24x64xbf16, #tpu.memory_space<vmem>>, vector<1x24x64xbf16>
    %14 = vector.shape_cast %13 : vector<1x24x64xbf16> to vector<24x64xbf16>
    %cst_11 = arith.constant dense<0.000000e+00> : vector<1x64xf32>
    %15 = tpu.matmul %12, %14, %cst_11 {dimension_numbers = #tpu.dot_dimension_numbers<[1], [0], [0], [1], [0, 0, 1, 1], [], []>} : vector<1x24xbf16>, vector<24x64xbf16>, vector<1x64xf32> -> vector<1x64xf32>
    %16 = vector.extract_strided_slice %10 {offsets = [1, 0], sizes = [1, 24], strides = [1, 1]} : vector<24x24xbf16> to vector<1x24xbf16>
    %c1 = arith.constant 1 : index
    %c0_12 = arith.constant 0 : index
    %c0_13 = arith.constant 0 : index
    %17 = vector.load %arg3[%c1, %c0_12, %c0_13] : memref<24x24x64xbf16, #tpu.memory_space<vmem>>, vector<1x24x64xbf16>
    %18 = vector.shape_cast %17 : vector<1x24x64xbf16> to vector<24x64xbf16>
    %cst_14 = arith.constant dense<0.000000e+00> : vector<1x64xf32>
    %19 = tpu.matmul %16, %18, %cst_14 {dimension_numbers = #tpu.dot_dimension_numbers<[1], [0], [0], [1], [0, 0, 1, 1], [], []>} : vector<1x24xbf16>, vector<24x64xbf16>, vector<1x64xf32> -> vector<1x64xf32>
    %20 = vector.extract_strided_slice %10 {offsets = [2, 0], sizes = [1, 24], strides = [1, 1]} : vector<24x24xbf16> to vector<1x24xbf16>
    %c2 = arith.constant 2 : index
    %c0_15 = arith.constant 0 : index
    %c0_16 = arith.constant 0 : index
    %21 = vector.load %arg3[%c2, %c0_15, %c0_16] : memref<24x24x64xbf16, #tpu.memory_space<vmem>>, vector<1x24x64xbf16>
    %22 = vector.shape_cast %21 : vector<1x24x64xbf16> to vector<24x64xbf16>
    %cst_17 = arith.constant dense<0.000000e+00> : vector<1x64xf32>
    %23 = tpu.matmul %20, %22, %cst_17 {dimension_numbers = #tpu.dot_dimension_numbers<[1], [0], [0], [1], [0, 0, 1, 1], [], []>} : vector<1x24xbf16>, vector<24x64xbf16>, vector<1x64xf32> -> vector<1x64xf32>
    %24 = vector.extract_strided_slice %10 {offsets = [3, 0], sizes = [1, 24], strides = [1, 1]} : vector<24x24xbf16> to vector<1x24xbf16>
    %c3 = arith.constant 3 : index
    %c0_18 = arith.constant 0 : index
    %c0_19 = arith.constant 0 : index
    %25 = vector.load %arg3[%c3, %c0_18, %c0_19] : memref<24x24x64xbf16, #tpu.memory_space<vmem>>, vector<1x24x64xbf16>
    %26 = vector.shape_cast %25 : vector<1x24x64xbf16> to vector<24x64xbf16>
    %cst_20 = arith.constant dense<0.000000e+00> : vector<1x64xf32>
    %27 = tpu.matmul %24, %26, %cst_20 {dimension_numbers = #tpu.dot_dimension_numbers<[1], [0], [0], [1], [0, 0, 1, 1], [], []>} : vector<1x24xbf16>, vector<24x64xbf16>, vector<1x64xf32> -> vector<1x64xf32>
    %28 = vector.extract_strided_slice %10 {offsets = [4, 0], sizes = [1, 24], strides = [1, 1]} : vector<24x24xbf16> to vector<1x24xbf16>
    %c4 = arith.constant 4 : index
    %c0_21 = arith.constant 0 : index
    %c0_22 = arith.constant 0 : index
    %29 = vector.load %arg3[%c4, %c0_21, %c0_22] : memref<24x24x64xbf16, #tpu.memory_space<vmem>>, vector<1x24x64xbf16>
    %30 = vector.shape_cast %29 : vector<1x24x64xbf16> to vector<24x64xbf16>
    %cst_23 = arith.constant dense<0.000000e+00> : vector<1x64xf32>
    %31 = tpu.matmul %28, %30, %cst_23 {dimension_numbers = #tpu.dot_dimension_numbers<[1], [0], [0], [1], [0, 0, 1, 1], [], []>} : vector<1x24xbf16>, vector<24x64xbf16>, vector<1x64xf32> -> vector<1x64xf32>
    %32 = vector.extract_strided_slice %10 {offsets = [5, 0], sizes = [1, 24], strides = [1, 1]} : vector<24x24xbf16> to vector<1x24xbf16>
    %c5 = arith.constant 5 : index
    %c0_24 = arith.constant 0 : index
    %c0_25 = arith.constant 0 : index
    %33 = vector.load %arg3[%c5, %c0_24, %c0_25] : memref<24x24x64xbf16, #tpu.memory_space<vmem>>, vector<1x24x64xbf16>
    %34 = vector.shape_cast %33 : vector<1x24x64xbf16> to vector<24x64xbf16>
    %cst_26 = arith.constant dense<0.000000e+00> : vector<1x64xf32>
    %35 = tpu.matmul %32, %34, %cst_26 {dimension_numbers = #tpu.dot_dimension_numbers<[1], [0], [0], [1], [0, 0, 1, 1], [], []>} : vector<1x24xbf16>, vector<24x64xbf16>, vector<1x64xf32> -> vector<1x64xf32>
    %36 = vector.extract_strided_slice %10 {offsets = [6, 0], sizes = [1, 24], strides = [1, 1]} : vector<24x24xbf16> to vector<1x24xbf16>
    %c6 = arith.constant 6 : index
    %c0_27 = arith.constant 0 : index
    %c0_28 = arith.constant 0 : index
    %37 = vector.load %arg3[%c6, %c0_27, %c0_28] : memref<24x24x64xbf16, #tpu.memory_space<vmem>>, vector<1x24x64xbf16>
    %38 = vector.shape_cast %37 : vector<1x24x64xbf16> to vector<24x64xbf16>
    %cst_29 = arith.constant dense<0.000000e+00> : vector<1x64xf32>
    %39 = tpu.matmul %36, %38, %cst_29 {dimension_numbers = #tpu.dot_dimension_numbers<[1], [0], [0], [1], [0, 0, 1, 1], [], []>} : vector<1x24xbf16>, vector<24x64xbf16>, vector<1x64xf32> -> vector<1x64xf32>
    %40 = vector.extract_strided_slice %10 {offsets = [7, 0], sizes = [1, 24], strides = [1, 1]} : vector<24x24xbf16> to vector<1x24xbf16>
    %c7 = arith.constant 7 : index
    %c0_30 = arith.constant 0 : index
    %c0_31 = arith.constant 0 : index
    %41 = vector.load %arg3[%c7, %c0_30, %c0_31] : memref<24x24x64xbf16, #tpu.memory_space<vmem>>, vector<1x24x64xbf16>
    %42 = vector.shape_cast %41 : vector<1x24x64xbf16> to vector<24x64xbf16>
    %cst_32 = arith.constant dense<0.000000e+00> : vector<1x64xf32>
    %43 = tpu.matmul %40, %42, %cst_32 {dimension_numbers = #tpu.dot_dimension_numbers<[1], [0], [0], [1], [0, 0, 1, 1], [], []>} : vector<1x24xbf16>, vector<24x64xbf16>, vector<1x64xf32> -> vector<1x64xf32>
    %44 = vector.extract_strided_slice %10 {offsets = [8, 0], sizes = [1, 24], strides = [1, 1]} : vector<24x24xbf16> to vector<1x24xbf16>
    %c8 = arith.constant 8 : index
    %c0_33 = arith.constant 0 : index
    %c0_34 = arith.constant 0 : index
    %45 = vector.load %arg3[%c8, %c0_33, %c0_34] : memref<24x24x64xbf16, #tpu.memory_space<vmem>>, vector<1x24x64xbf16>
    %46 = vector.shape_cast %45 : vector<1x24x64xbf16> to vector<24x64xbf16>
    %cst_35 = arith.constant dense<0.000000e+00> : vector<1x64xf32>
    %47 = tpu.matmul %44, %46, %cst_35 {dimension_numbers = #tpu.dot_dimension_numbers<[1], [0], [0], [1], [0, 0, 1, 1], [], []>} : vector<1x24xbf16>, vector<24x64xbf16>, vector<1x64xf32> -> vector<1x64xf32>
    %48 = vector.extract_strided_slice %10 {offsets = [9, 0], sizes = [1, 24], strides = [1, 1]} : vector<24x24xbf16> to vector<1x24xbf16>
    %c9 = arith.constant 9 : index
    %c0_36 = arith.constant 0 : index
    %c0_37 = arith.constant 0 : index
    %49 = vector.load %arg3[%c9, %c0_36, %c0_37] : memref<24x24x64xbf16, #tpu.memory_space<vmem>>, vector<1x24x64xbf16>
    %50 = vector.shape_cast %49 : vector<1x24x64xbf16> to vector<24x64xbf16>
    %cst_38 = arith.constant dense<0.000000e+00> : vector<1x64xf32>
    %51 = tpu.matmul %48, %50, %cst_38 {dimension_numbers = #tpu.dot_dimension_numbers<[1], [0], [0], [1], [0, 0, 1, 1], [], []>} : vector<1x24xbf16>, vector<24x64xbf16>, vector<1x64xf32> -> vector<1x64xf32>
    %52 = vector.extract_strided_slice %10 {offsets = [10, 0], sizes = [1, 24], strides = [1, 1]} : vector<24x24xbf16> to vector<1x24xbf16>
    %c10 = arith.constant 10 : index
    %c0_39 = arith.constant 0 : index
    %c0_40 = arith.constant 0 : index
    %53 = vector.load %arg3[%c10, %c0_39, %c0_40] : memref<24x24x64xbf16, #tpu.memory_space<vmem>>, vector<1x24x64xbf16>
    %54 = vector.shape_cast %53 : vector<1x24x64xbf16> to vector<24x64xbf16>
    %cst_41 = arith.constant dense<0.000000e+00> : vector<1x64xf32>
    %55 = tpu.matmul %52, %54, %cst_41 {dimension_numbers = #tpu.dot_dimension_numbers<[1], [0], [0], [1], [0, 0, 1, 1], [], []>} : vector<1x24xbf16>, vector<24x64xbf16>, vector<1x64xf32> -> vector<1x64xf32>
    %56 = vector.extract_strided_slice %10 {offsets = [11, 0], sizes = [1, 24], strides = [1, 1]} : vector<24x24xbf16> to vector<1x24xbf16>
    %c11 = arith.constant 11 : index
    %c0_42 = arith.constant 0 : index
    %c0_43 = arith.constant 0 : index
    %57 = vector.load %arg3[%c11, %c0_42, %c0_43] : memref<24x24x64xbf16, #tpu.memory_space<vmem>>, vector<1x24x64xbf16>
    %58 = vector.shape_cast %57 : vector<1x24x64xbf16> to vector<24x64xbf16>
    %cst_44 = arith.constant dense<0.000000e+00> : vector<1x64xf32>
    %59 = tpu.matmul %56, %58, %cst_44 {dimension_numbers = #tpu.dot_dimension_numbers<[1], [0], [0], [1], [0, 0, 1, 1], [], []>} : vector<1x24xbf16>, vector<24x64xbf16>, vector<1x64xf32> -> vector<1x64xf32>
    %60 = vector.extract_strided_slice %10 {offsets = [12, 0], sizes = [1, 24], strides = [1, 1]} : vector<24x24xbf16> to vector<1x24xbf16>
    %c12 = arith.constant 12 : index
    %c0_45 = arith.constant 0 : index
    %c0_46 = arith.constant 0 : index
    %61 = vector.load %arg3[%c12, %c0_45, %c0_46] : memref<24x24x64xbf16, #tpu.memory_space<vmem>>, vector<1x24x64xbf16>
    %62 = vector.shape_cast %61 : vector<1x24x64xbf16> to vector<24x64xbf16>
    %cst_47 = arith.constant dense<0.000000e+00> : vector<1x64xf32>
    %63 = tpu.matmul %60, %62, %cst_47 {dimension_numbers = #tpu.dot_dimension_numbers<[1], [0], [0], [1], [0, 0, 1, 1], [], []>} : vector<1x24xbf16>, vector<24x64xbf16>, vector<1x64xf32> -> vector<1x64xf32>
    %64 = vector.extract_strided_slice %10 {offsets = [13, 0], sizes = [1, 24], strides = [1, 1]} : vector<24x24xbf16> to vector<1x24xbf16>
    %c13 = arith.constant 13 : index
    %c0_48 = arith.constant 0 : index
    %c0_49 = arith.constant 0 : index
    %65 = vector.load %arg3[%c13, %c0_48, %c0_49] : memref<24x24x64xbf16, #tpu.memory_space<vmem>>, vector<1x24x64xbf16>
    %66 = vector.shape_cast %65 : vector<1x24x64xbf16> to vector<24x64xbf16>
    %cst_50 = arith.constant dense<0.000000e+00> : vector<1x64xf32>
    %67 = tpu.matmul %64, %66, %cst_50 {dimension_numbers = #tpu.dot_dimension_numbers<[1], [0], [0], [1], [0, 0, 1, 1], [], []>} : vector<1x24xbf16>, vector<24x64xbf16>, vector<1x64xf32> -> vector<1x64xf32>
    %68 = vector.extract_strided_slice %10 {offsets = [14, 0], sizes = [1, 24], strides = [1, 1]} : vector<24x24xbf16> to vector<1x24xbf16>
    %c14 = arith.constant 14 : index
    %c0_51 = arith.constant 0 : index
    %c0_52 = arith.constant 0 : index
    %69 = vector.load %arg3[%c14, %c0_51, %c0_52] : memref<24x24x64xbf16, #tpu.memory_space<vmem>>, vector<1x24x64xbf16>
    %70 = vector.shape_cast %69 : vector<1x24x64xbf16> to vector<24x64xbf16>
    %cst_53 = arith.constant dense<0.000000e+00> : vector<1x64xf32>
    %71 = tpu.matmul %68, %70, %cst_53 {dimension_numbers = #tpu.dot_dimension_numbers<[1], [0], [0], [1], [0, 0, 1, 1], [], []>} : vector<1x24xbf16>, vector<24x64xbf16>, vector<1x64xf32> -> vector<1x64xf32>
    %72 = vector.extract_strided_slice %10 {offsets = [15, 0], sizes = [1, 24], strides = [1, 1]} : vector<24x24xbf16> to vector<1x24xbf16>
    %c15 = arith.constant 15 : index
    %c0_54 = arith.constant 0 : index
    %c0_55 = arith.constant 0 : index
    %73 = vector.load %arg3[%c15, %c0_54, %c0_55] : memref<24x24x64xbf16, #tpu.memory_space<vmem>>, vector<1x24x64xbf16>
    %74 = vector.shape_cast %73 : vector<1x24x64xbf16> to vector<24x64xbf16>
    %cst_56 = arith.constant dense<0.000000e+00> : vector<1x64xf32>
    %75 = tpu.matmul %72, %74, %cst_56 {dimension_numbers = #tpu.dot_dimension_numbers<[1], [0], [0], [1], [0, 0, 1, 1], [], []>} : vector<1x24xbf16>, vector<24x64xbf16>, vector<1x64xf32> -> vector<1x64xf32>
    %76 = vector.extract_strided_slice %10 {offsets = [16, 0], sizes = [1, 24], strides = [1, 1]} : vector<24x24xbf16> to vector<1x24xbf16>
    %c16 = arith.constant 16 : index
    %c0_57 = arith.constant 0 : index
    %c0_58 = arith.constant 0 : index
    %77 = vector.load %arg3[%c16, %c0_57, %c0_58] : memref<24x24x64xbf16, #tpu.memory_space<vmem>>, vector<1x24x64xbf16>
    %78 = vector.shape_cast %77 : vector<1x24x64xbf16> to vector<24x64xbf16>
    %cst_59 = arith.constant dense<0.000000e+00> : vector<1x64xf32>
    %79 = tpu.matmul %76, %78, %cst_59 {dimension_numbers = #tpu.dot_dimension_numbers<[1], [0], [0], [1], [0, 0, 1, 1], [], []>} : vector<1x24xbf16>, vector<24x64xbf16>, vector<1x64xf32> -> vector<1x64xf32>
    %80 = vector.extract_strided_slice %10 {offsets = [17, 0], sizes = [1, 24], strides = [1, 1]} : vector<24x24xbf16> to vector<1x24xbf16>
    %c17 = arith.constant 17 : index
    %c0_60 = arith.constant 0 : index
    %c0_61 = arith.constant 0 : index
    %81 = vector.load %arg3[%c17, %c0_60, %c0_61] : memref<24x24x64xbf16, #tpu.memory_space<vmem>>, vector<1x24x64xbf16>
    %82 = vector.shape_cast %81 : vector<1x24x64xbf16> to vector<24x64xbf16>
    %cst_62 = arith.constant dense<0.000000e+00> : vector<1x64xf32>
    %83 = tpu.matmul %80, %82, %cst_62 {dimension_numbers = #tpu.dot_dimension_numbers<[1], [0], [0], [1], [0, 0, 1, 1], [], []>} : vector<1x24xbf16>, vector<24x64xbf16>, vector<1x64xf32> -> vector<1x64xf32>
    %84 = vector.extract_strided_slice %10 {offsets = [18, 0], sizes = [1, 24], strides = [1, 1]} : vector<24x24xbf16> to vector<1x24xbf16>
    %c18 = arith.constant 18 : index
    %c0_63 = arith.constant 0 : index
    %c0_64 = arith.constant 0 : index
    %85 = vector.load %arg3[%c18, %c0_63, %c0_64] : memref<24x24x64xbf16, #tpu.memory_space<vmem>>, vector<1x24x64xbf16>
    %86 = vector.shape_cast %85 : vector<1x24x64xbf16> to vector<24x64xbf16>
    %cst_65 = arith.constant dense<0.000000e+00> : vector<1x64xf32>
    %87 = tpu.matmul %84, %86, %cst_65 {dimension_numbers = #tpu.dot_dimension_numbers<[1], [0], [0], [1], [0, 0, 1, 1], [], []>} : vector<1x24xbf16>, vector<24x64xbf16>, vector<1x64xf32> -> vector<1x64xf32>
    %88 = vector.extract_strided_slice %10 {offsets = [19, 0], sizes = [1, 24], strides = [1, 1]} : vector<24x24xbf16> to vector<1x24xbf16>
    %c19 = arith.constant 19 : index
    %c0_66 = arith.constant 0 : index
    %c0_67 = arith.constant 0 : index
    %89 = vector.load %arg3[%c19, %c0_66, %c0_67] : memref<24x24x64xbf16, #tpu.memory_space<vmem>>, vector<1x24x64xbf16>
    %90 = vector.shape_cast %89 : vector<1x24x64xbf16> to vector<24x64xbf16>
    %cst_68 = arith.constant dense<0.000000e+00> : vector<1x64xf32>
    %91 = tpu.matmul %88, %90, %cst_68 {dimension_numbers = #tpu.dot_dimension_numbers<[1], [0], [0], [1], [0, 0, 1, 1], [], []>} : vector<1x24xbf16>, vector<24x64xbf16>, vector<1x64xf32> -> vector<1x64xf32>
    %92 = vector.extract_strided_slice %10 {offsets = [20, 0], sizes = [1, 24], strides = [1, 1]} : vector<24x24xbf16> to vector<1x24xbf16>
    %c20 = arith.constant 20 : index
    %c0_69 = arith.constant 0 : index
    %c0_70 = arith.constant 0 : index
    %93 = vector.load %arg3[%c20, %c0_69, %c0_70] : memref<24x24x64xbf16, #tpu.memory_space<vmem>>, vector<1x24x64xbf16>
    %94 = vector.shape_cast %93 : vector<1x24x64xbf16> to vector<24x64xbf16>
    %cst_71 = arith.constant dense<0.000000e+00> : vector<1x64xf32>
    %95 = tpu.matmul %92, %94, %cst_71 {dimension_numbers = #tpu.dot_dimension_numbers<[1], [0], [0], [1], [0, 0, 1, 1], [], []>} : vector<1x24xbf16>, vector<24x64xbf16>, vector<1x64xf32> -> vector<1x64xf32>
    %96 = vector.extract_strided_slice %10 {offsets = [21, 0], sizes = [1, 24], strides = [1, 1]} : vector<24x24xbf16> to vector<1x24xbf16>
    %c21 = arith.constant 21 : index
    %c0_72 = arith.constant 0 : index
    %c0_73 = arith.constant 0 : index
    %97 = vector.load %arg3[%c21, %c0_72, %c0_73] : memref<24x24x64xbf16, #tpu.memory_space<vmem>>, vector<1x24x64xbf16>
    %98 = vector.shape_cast %97 : vector<1x24x64xbf16> to vector<24x64xbf16>
    %cst_74 = arith.constant dense<0.000000e+00> : vector<1x64xf32>
    %99 = tpu.matmul %96, %98, %cst_74 {dimension_numbers = #tpu.dot_dimension_numbers<[1], [0], [0], [1], [0, 0, 1, 1], [], []>} : vector<1x24xbf16>, vector<24x64xbf16>, vector<1x64xf32> -> vector<1x64xf32>
    %100 = vector.extract_strided_slice %10 {offsets = [22, 0], sizes = [1, 24], strides = [1, 1]} : vector<24x24xbf16> to vector<1x24xbf16>
    %c22 = arith.constant 22 : index
    %c0_75 = arith.constant 0 : index
    %c0_76 = arith.constant 0 : index
    %101 = vector.load %arg3[%c22, %c0_75, %c0_76] : memref<24x24x64xbf16, #tpu.memory_space<vmem>>, vector<1x24x64xbf16>
    %102 = vector.shape_cast %101 : vector<1x24x64xbf16> to vector<24x64xbf16>
    %cst_77 = arith.constant dense<0.000000e+00> : vector<1x64xf32>
    %103 = tpu.matmul %100, %102, %cst_77 {dimension_numbers = #tpu.dot_dimension_numbers<[1], [0], [0], [1], [0, 0, 1, 1], [], []>} : vector<1x24xbf16>, vector<24x64xbf16>, vector<1x64xf32> -> vector<1x64xf32>
    %104 = vector.extract_strided_slice %10 {offsets = [23, 0], sizes = [1, 24], strides = [1, 1]} : vector<24x24xbf16> to vector<1x24xbf16>
    %c23 = arith.constant 23 : index
    %c0_78 = arith.constant 0 : index
    %c0_79 = arith.constant 0 : index
    %105 = vector.load %arg3[%c23, %c0_78, %c0_79] : memref<24x24x64xbf16, #tpu.memory_space<vmem>>, vector<1x24x64xbf16>
    %106 = vector.shape_cast %105 : vector<1x24x64xbf16> to vector<24x64xbf16>
    %cst_80 = arith.constant dense<0.000000e+00> : vector<1x64xf32>
    %107 = tpu.matmul %104, %106, %cst_80 {dimension_numbers = #tpu.dot_dimension_numbers<[1], [0], [0], [1], [0, 0, 1, 1], [], []>} : vector<1x24xbf16>, vector<24x64xbf16>, vector<1x64xf32> -> vector<1x64xf32>
    %108 = arith.addf %15, %19 : vector<1x64xf32>
    %109 = arith.addf %23, %27 : vector<1x64xf32>
    %110 = arith.addf %31, %35 : vector<1x64xf32>
    %111 = arith.addf %39, %43 : vector<1x64xf32>
    %112 = arith.addf %47, %51 : vector<1x64xf32>
    %113 = arith.addf %55, %59 : vector<1x64xf32>
    %114 = arith.addf %63, %67 : vector<1x64xf32>
    %115 = arith.addf %71, %75 : vector<1x64xf32>
    %116 = arith.addf %79, %83 : vector<1x64xf32>
    %117 = arith.addf %87, %91 : vector<1x64xf32>
    %118 = arith.addf %95, %99 : vector<1x64xf32>
    %119 = arith.addf %103, %107 : vector<1x64xf32>
    %120 = arith.addf %108, %109 : vector<1x64xf32>
    %121 = arith.addf %110, %111 : vector<1x64xf32>
    %122 = arith.addf %112, %113 : vector<1x64xf32>
    %123 = arith.addf %114, %115 : vector<1x64xf32>
    %124 = arith.addf %116, %117 : vector<1x64xf32>
    %125 = arith.addf %118, %119 : vector<1x64xf32>
    %126 = arith.addf %120, %121 : vector<1x64xf32>
    %127 = arith.addf %122, %123 : vector<1x64xf32>
    %128 = arith.addf %124, %125 : vector<1x64xf32>
    %129 = arith.addf %126, %127 : vector<1x64xf32>
    %130 = arith.addf %129, %128 : vector<1x64xf32>
    %c1_81 = arith.constant 1 : index
    %c0_82 = arith.constant 0 : index
    %c0_83 = arith.constant 0 : index
    %131 = vector.load %arg0[%c1_81, %c0_82, %c0_83] : memref<2x48x64xf32, #tpu.memory_space<vmem>>, vector<1x48x64xf32>
    %132 = vector.shape_cast %131 : vector<1x48x64xf32> to vector<48x64xf32>
    %cst_84 = arith.constant dense<0.000000e+00> : vector<24x64xf32>
    %133 = tpu.matmul %0, %132, %cst_84 {dimension_numbers = #tpu.dot_dimension_numbers<[1], [0], [0], [1], [0, 0, 1, 1], [], []>} : vector<24x48xf32>, vector<48x64xf32>, vector<24x64xf32> -> vector<24x64xf32>
    %134 = vector.broadcast %1 : vector<24x1xf32> to vector<24x64xf32>
    %135 = arith.addf %133, %134 : vector<24x64xf32>
    %cst_85 = arith.constant 0.000000e+00 : f32
    %136 = vector.broadcast %cst_85 : f32 to vector<24x64xf32>
    %137 = arith.maximumf %135, %136 : vector<24x64xf32>
    %cst_86 = arith.constant dense<0.000000e+00> : vector<24x24xf32>
    %138 = tpu.matmul %137, %137, %cst_86 {dimension_numbers = #tpu.dot_dimension_numbers<[1], [1], [0], [0], [0, 0, 1, 0], [], []>} : vector<24x64xf32>, vector<24x64xf32>, vector<24x24xf32> -> vector<24x24xf32>
    %139 = arith.truncf %138 : vector<24x24xf32> to vector<24x24xbf16>
    %140 = arith.truncf %137 : vector<24x64xf32> to vector<24x64xbf16>
    %141 = vector.extract_strided_slice %139 {offsets = [0, 0], sizes = [1, 24], strides = [1, 1]} : vector<24x24xbf16> to vector<1x24xbf16>
    %c0_87 = arith.constant 0 : index
    %c0_88 = arith.constant 0 : index
    %c0_89 = arith.constant 0 : index
    %142 = vector.load %arg3[%c0_87, %c0_88, %c0_89] : memref<24x24x64xbf16, #tpu.memory_space<vmem>>, vector<1x24x64xbf16>
    %143 = vector.shape_cast %142 : vector<1x24x64xbf16> to vector<24x64xbf16>
    %cst_90 = arith.constant dense<0.000000e+00> : vector<1x64xf32>
    %144 = tpu.matmul %141, %143, %cst_90 {dimension_numbers = #tpu.dot_dimension_numbers<[1], [0], [0], [1], [0, 0, 1, 1], [], []>} : vector<1x24xbf16>, vector<24x64xbf16>, vector<1x64xf32> -> vector<1x64xf32>
    %145 = vector.extract_strided_slice %139 {offsets = [1, 0], sizes = [1, 24], strides = [1, 1]} : vector<24x24xbf16> to vector<1x24xbf16>
    %c1_91 = arith.constant 1 : index
    %c0_92 = arith.constant 0 : index
    %c0_93 = arith.constant 0 : index
    %146 = vector.load %arg3[%c1_91, %c0_92, %c0_93] : memref<24x24x64xbf16, #tpu.memory_space<vmem>>, vector<1x24x64xbf16>
    %147 = vector.shape_cast %146 : vector<1x24x64xbf16> to vector<24x64xbf16>
    %cst_94 = arith.constant dense<0.000000e+00> : vector<1x64xf32>
    %148 = tpu.matmul %145, %147, %cst_94 {dimension_numbers = #tpu.dot_dimension_numbers<[1], [0], [0], [1], [0, 0, 1, 1], [], []>} : vector<1x24xbf16>, vector<24x64xbf16>, vector<1x64xf32> -> vector<1x64xf32>
    %149 = vector.extract_strided_slice %139 {offsets = [2, 0], sizes = [1, 24], strides = [1, 1]} : vector<24x24xbf16> to vector<1x24xbf16>
    %c2_95 = arith.constant 2 : index
    %c0_96 = arith.constant 0 : index
    %c0_97 = arith.constant 0 : index
    %150 = vector.load %arg3[%c2_95, %c0_96, %c0_97] : memref<24x24x64xbf16, #tpu.memory_space<vmem>>, vector<1x24x64xbf16>
    %151 = vector.shape_cast %150 : vector<1x24x64xbf16> to vector<24x64xbf16>
    %cst_98 = arith.constant dense<0.000000e+00> : vector<1x64xf32>
    %152 = tpu.matmul %149, %151, %cst_98 {dimension_numbers = #tpu.dot_dimension_numbers<[1], [0], [0], [1], [0, 0, 1, 1], [], []>} : vector<1x24xbf16>, vector<24x64xbf16>, vector<1x64xf32> -> vector<1x64xf32>
    %153 = vector.extract_strided_slice %139 {offsets = [3, 0], sizes = [1, 24], strides = [1, 1]} : vector<24x24xbf16> to vector<1x24xbf16>
    %c3_99 = arith.constant 3 : index
    %c0_100 = arith.constant 0 : index
    %c0_101 = arith.constant 0 : index
    %154 = vector.load %arg3[%c3_99, %c0_100, %c0_101] : memref<24x24x64xbf16, #tpu.memory_space<vmem>>, vector<1x24x64xbf16>
    %155 = vector.shape_cast %154 : vector<1x24x64xbf16> to vector<24x64xbf16>
    %cst_102 = arith.constant dense<0.000000e+00> : vector<1x64xf32>
    %156 = tpu.matmul %153, %155, %cst_102 {dimension_numbers = #tpu.dot_dimension_numbers<[1], [0], [0], [1], [0, 0, 1, 1], [], []>} : vector<1x24xbf16>, vector<24x64xbf16>, vector<1x64xf32> -> vector<1x64xf32>
    %157 = vector.extract_strided_slice %139 {offsets = [4, 0], sizes = [1, 24], strides = [1, 1]} : vector<24x24xbf16> to vector<1x24xbf16>
    %c4_103 = arith.constant 4 : index
    %c0_104 = arith.constant 0 : index
    %c0_105 = arith.constant 0 : index
    %158 = vector.load %arg3[%c4_103, %c0_104, %c0_105] : memref<24x24x64xbf16, #tpu.memory_space<vmem>>, vector<1x24x64xbf16>
    %159 = vector.shape_cast %158 : vector<1x24x64xbf16> to vector<24x64xbf16>
    %cst_106 = arith.constant dense<0.000000e+00> : vector<1x64xf32>
    %160 = tpu.matmul %157, %159, %cst_106 {dimension_numbers = #tpu.dot_dimension_numbers<[1], [0], [0], [1], [0, 0, 1, 1], [], []>} : vector<1x24xbf16>, vector<24x64xbf16>, vector<1x64xf32> -> vector<1x64xf32>
    %161 = vector.extract_strided_slice %139 {offsets = [5, 0], sizes = [1, 24], strides = [1, 1]} : vector<24x24xbf16> to vector<1x24xbf16>
    %c5_107 = arith.constant 5 : index
    %c0_108 = arith.constant 0 : index
    %c0_109 = arith.constant 0 : index
    %162 = vector.load %arg3[%c5_107, %c0_108, %c0_109] : memref<24x24x64xbf16, #tpu.memory_space<vmem>>, vector<1x24x64xbf16>
    %163 = vector.shape_cast %162 : vector<1x24x64xbf16> to vector<24x64xbf16>
    %cst_110 = arith.constant dense<0.000000e+00> : vector<1x64xf32>
    %164 = tpu.matmul %161, %163, %cst_110 {dimension_numbers = #tpu.dot_dimension_numbers<[1], [0], [0], [1], [0, 0, 1, 1], [], []>} : vector<1x24xbf16>, vector<24x64xbf16>, vector<1x64xf32> -> vector<1x64xf32>
    %165 = vector.extract_strided_slice %139 {offsets = [6, 0], sizes = [1, 24], strides = [1, 1]} : vector<24x24xbf16> to vector<1x24xbf16>
    %c6_111 = arith.constant 6 : index
    %c0_112 = arith.constant 0 : index
    %c0_113 = arith.constant 0 : index
    %166 = vector.load %arg3[%c6_111, %c0_112, %c0_113] : memref<24x24x64xbf16, #tpu.memory_space<vmem>>, vector<1x24x64xbf16>
    %167 = vector.shape_cast %166 : vector<1x24x64xbf16> to vector<24x64xbf16>
    %cst_114 = arith.constant dense<0.000000e+00> : vector<1x64xf32>
    %168 = tpu.matmul %165, %167, %cst_114 {dimension_numbers = #tpu.dot_dimension_numbers<[1], [0], [0], [1], [0, 0, 1, 1], [], []>} : vector<1x24xbf16>, vector<24x64xbf16>, vector<1x64xf32> -> vector<1x64xf32>
    %169 = vector.extract_strided_slice %139 {offsets = [7, 0], sizes = [1, 24], strides = [1, 1]} : vector<24x24xbf16> to vector<1x24xbf16>
    %c7_115 = arith.constant 7 : index
    %c0_116 = arith.constant 0 : index
    %c0_117 = arith.constant 0 : index
    %170 = vector.load %arg3[%c7_115, %c0_116, %c0_117] : memref<24x24x64xbf16, #tpu.memory_space<vmem>>, vector<1x24x64xbf16>
    %171 = vector.shape_cast %170 : vector<1x24x64xbf16> to vector<24x64xbf16>
    %cst_118 = arith.constant dense<0.000000e+00> : vector<1x64xf32>
    %172 = tpu.matmul %169, %171, %cst_118 {dimension_numbers = #tpu.dot_dimension_numbers<[1], [0], [0], [1], [0, 0, 1, 1], [], []>} : vector<1x24xbf16>, vector<24x64xbf16>, vector<1x64xf32> -> vector<1x64xf32>
    %173 = vector.extract_strided_slice %139 {offsets = [8, 0], sizes = [1, 24], strides = [1, 1]} : vector<24x24xbf16> to vector<1x24xbf16>
    %c8_119 = arith.constant 8 : index
    %c0_120 = arith.constant 0 : index
    %c0_121 = arith.constant 0 : index
    %174 = vector.load %arg3[%c8_119, %c0_120, %c0_121] : memref<24x24x64xbf16, #tpu.memory_space<vmem>>, vector<1x24x64xbf16>
    %175 = vector.shape_cast %174 : vector<1x24x64xbf16> to vector<24x64xbf16>
    %cst_122 = arith.constant dense<0.000000e+00> : vector<1x64xf32>
    %176 = tpu.matmul %173, %175, %cst_122 {dimension_numbers = #tpu.dot_dimension_numbers<[1], [0], [0], [1], [0, 0, 1, 1], [], []>} : vector<1x24xbf16>, vector<24x64xbf16>, vector<1x64xf32> -> vector<1x64xf32>
    %177 = vector.extract_strided_slice %139 {offsets = [9, 0], sizes = [1, 24], strides = [1, 1]} : vector<24x24xbf16> to vector<1x24xbf16>
    %c9_123 = arith.constant 9 : index
    %c0_124 = arith.constant 0 : index
    %c0_125 = arith.constant 0 : index
    %178 = vector.load %arg3[%c9_123, %c0_124, %c0_125] : memref<24x24x64xbf16, #tpu.memory_space<vmem>>, vector<1x24x64xbf16>
    %179 = vector.shape_cast %178 : vector<1x24x64xbf16> to vector<24x64xbf16>
    %cst_126 = arith.constant dense<0.000000e+00> : vector<1x64xf32>
    %180 = tpu.matmul %177, %179, %cst_126 {dimension_numbers = #tpu.dot_dimension_numbers<[1], [0], [0], [1], [0, 0, 1, 1], [], []>} : vector<1x24xbf16>, vector<24x64xbf16>, vector<1x64xf32> -> vector<1x64xf32>
    %181 = vector.extract_strided_slice %139 {offsets = [10, 0], sizes = [1, 24], strides = [1, 1]} : vector<24x24xbf16> to vector<1x24xbf16>
    %c10_127 = arith.constant 10 : index
    %c0_128 = arith.constant 0 : index
    %c0_129 = arith.constant 0 : index
    %182 = vector.load %arg3[%c10_127, %c0_128, %c0_129] : memref<24x24x64xbf16, #tpu.memory_space<vmem>>, vector<1x24x64xbf16>
    %183 = vector.shape_cast %182 : vector<1x24x64xbf16> to vector<24x64xbf16>
    %cst_130 = arith.constant dense<0.000000e+00> : vector<1x64xf32>
    %184 = tpu.matmul %181, %183, %cst_130 {dimension_numbers = #tpu.dot_dimension_numbers<[1], [0], [0], [1], [0, 0, 1, 1], [], []>} : vector<1x24xbf16>, vector<24x64xbf16>, vector<1x64xf32> -> vector<1x64xf32>
    %185 = vector.extract_strided_slice %139 {offsets = [11, 0], sizes = [1, 24], strides = [1, 1]} : vector<24x24xbf16> to vector<1x24xbf16>
    %c11_131 = arith.constant 11 : index
    %c0_132 = arith.constant 0 : index
    %c0_133 = arith.constant 0 : index
    %186 = vector.load %arg3[%c11_131, %c0_132, %c0_133] : memref<24x24x64xbf16, #tpu.memory_space<vmem>>, vector<1x24x64xbf16>
    %187 = vector.shape_cast %186 : vector<1x24x64xbf16> to vector<24x64xbf16>
    %cst_134 = arith.constant dense<0.000000e+00> : vector<1x64xf32>
    %188 = tpu.matmul %185, %187, %cst_134 {dimension_numbers = #tpu.dot_dimension_numbers<[1], [0], [0], [1], [0, 0, 1, 1], [], []>} : vector<1x24xbf16>, vector<24x64xbf16>, vector<1x64xf32> -> vector<1x64xf32>
    %189 = vector.extract_strided_slice %139 {offsets = [12, 0], sizes = [1, 24], strides = [1, 1]} : vector<24x24xbf16> to vector<1x24xbf16>
    %c12_135 = arith.constant 12 : index
    %c0_136 = arith.constant 0 : index
    %c0_137 = arith.constant 0 : index
    %190 = vector.load %arg3[%c12_135, %c0_136, %c0_137] : memref<24x24x64xbf16, #tpu.memory_space<vmem>>, vector<1x24x64xbf16>
    %191 = vector.shape_cast %190 : vector<1x24x64xbf16> to vector<24x64xbf16>
    %cst_138 = arith.constant dense<0.000000e+00> : vector<1x64xf32>
    %192 = tpu.matmul %189, %191, %cst_138 {dimension_numbers = #tpu.dot_dimension_numbers<[1], [0], [0], [1], [0, 0, 1, 1], [], []>} : vector<1x24xbf16>, vector<24x64xbf16>, vector<1x64xf32> -> vector<1x64xf32>
    %193 = vector.extract_strided_slice %139 {offsets = [13, 0], sizes = [1, 24], strides = [1, 1]} : vector<24x24xbf16> to vector<1x24xbf16>
    %c13_139 = arith.constant 13 : index
    %c0_140 = arith.constant 0 : index
    %c0_141 = arith.constant 0 : index
    %194 = vector.load %arg3[%c13_139, %c0_140, %c0_141] : memref<24x24x64xbf16, #tpu.memory_space<vmem>>, vector<1x24x64xbf16>
    %195 = vector.shape_cast %194 : vector<1x24x64xbf16> to vector<24x64xbf16>
    %cst_142 = arith.constant dense<0.000000e+00> : vector<1x64xf32>
    %196 = tpu.matmul %193, %195, %cst_142 {dimension_numbers = #tpu.dot_dimension_numbers<[1], [0], [0], [1], [0, 0, 1, 1], [], []>} : vector<1x24xbf16>, vector<24x64xbf16>, vector<1x64xf32> -> vector<1x64xf32>
    %197 = vector.extract_strided_slice %139 {offsets = [14, 0], sizes = [1, 24], strides = [1, 1]} : vector<24x24xbf16> to vector<1x24xbf16>
    %c14_143 = arith.constant 14 : index
    %c0_144 = arith.constant 0 : index
    %c0_145 = arith.constant 0 : index
    %198 = vector.load %arg3[%c14_143, %c0_144, %c0_145] : memref<24x24x64xbf16, #tpu.memory_space<vmem>>, vector<1x24x64xbf16>
    %199 = vector.shape_cast %198 : vector<1x24x64xbf16> to vector<24x64xbf16>
    %cst_146 = arith.constant dense<0.000000e+00> : vector<1x64xf32>
    %200 = tpu.matmul %197, %199, %cst_146 {dimension_numbers = #tpu.dot_dimension_numbers<[1], [0], [0], [1], [0, 0, 1, 1], [], []>} : vector<1x24xbf16>, vector<24x64xbf16>, vector<1x64xf32> -> vector<1x64xf32>
    %201 = vector.extract_strided_slice %139 {offsets = [15, 0], sizes = [1, 24], strides = [1, 1]} : vector<24x24xbf16> to vector<1x24xbf16>
    %c15_147 = arith.constant 15 : index
    %c0_148 = arith.constant 0 : index
    %c0_149 = arith.constant 0 : index
    %202 = vector.load %arg3[%c15_147, %c0_148, %c0_149] : memref<24x24x64xbf16, #tpu.memory_space<vmem>>, vector<1x24x64xbf16>
    %203 = vector.shape_cast %202 : vector<1x24x64xbf16> to vector<24x64xbf16>
    %cst_150 = arith.constant dense<0.000000e+00> : vector<1x64xf32>
    %204 = tpu.matmul %201, %203, %cst_150 {dimension_numbers = #tpu.dot_dimension_numbers<[1], [0], [0], [1], [0, 0, 1, 1], [], []>} : vector<1x24xbf16>, vector<24x64xbf16>, vector<1x64xf32> -> vector<1x64xf32>
    %205 = vector.extract_strided_slice %139 {offsets = [16, 0], sizes = [1, 24], strides = [1, 1]} : vector<24x24xbf16> to vector<1x24xbf16>
    %c16_151 = arith.constant 16 : index
    %c0_152 = arith.constant 0 : index
    %c0_153 = arith.constant 0 : index
    %206 = vector.load %arg3[%c16_151, %c0_152, %c0_153] : memref<24x24x64xbf16, #tpu.memory_space<vmem>>, vector<1x24x64xbf16>
    %207 = vector.shape_cast %206 : vector<1x24x64xbf16> to vector<24x64xbf16>
    %cst_154 = arith.constant dense<0.000000e+00> : vector<1x64xf32>
    %208 = tpu.matmul %205, %207, %cst_154 {dimension_numbers = #tpu.dot_dimension_numbers<[1], [0], [0], [1], [0, 0, 1, 1], [], []>} : vector<1x24xbf16>, vector<24x64xbf16>, vector<1x64xf32> -> vector<1x64xf32>
    %209 = vector.extract_strided_slice %139 {offsets = [17, 0], sizes = [1, 24], strides = [1, 1]} : vector<24x24xbf16> to vector<1x24xbf16>
    %c17_155 = arith.constant 17 : index
    %c0_156 = arith.constant 0 : index
    %c0_157 = arith.constant 0 : index
    %210 = vector.load %arg3[%c17_155, %c0_156, %c0_157] : memref<24x24x64xbf16, #tpu.memory_space<vmem>>, vector<1x24x64xbf16>
    %211 = vector.shape_cast %210 : vector<1x24x64xbf16> to vector<24x64xbf16>
    %cst_158 = arith.constant dense<0.000000e+00> : vector<1x64xf32>
    %212 = tpu.matmul %209, %211, %cst_158 {dimension_numbers = #tpu.dot_dimension_numbers<[1], [0], [0], [1], [0, 0, 1, 1], [], []>} : vector<1x24xbf16>, vector<24x64xbf16>, vector<1x64xf32> -> vector<1x64xf32>
    %213 = vector.extract_strided_slice %139 {offsets = [18, 0], sizes = [1, 24], strides = [1, 1]} : vector<24x24xbf16> to vector<1x24xbf16>
    %c18_159 = arith.constant 18 : index
    %c0_160 = arith.constant 0 : index
    %c0_161 = arith.constant 0 : index
    %214 = vector.load %arg3[%c18_159, %c0_160, %c0_161] : memref<24x24x64xbf16, #tpu.memory_space<vmem>>, vector<1x24x64xbf16>
    %215 = vector.shape_cast %214 : vector<1x24x64xbf16> to vector<24x64xbf16>
    %cst_162 = arith.constant dense<0.000000e+00> : vector<1x64xf32>
    %216 = tpu.matmul %213, %215, %cst_162 {dimension_numbers = #tpu.dot_dimension_numbers<[1], [0], [0], [1], [0, 0, 1, 1], [], []>} : vector<1x24xbf16>, vector<24x64xbf16>, vector<1x64xf32> -> vector<1x64xf32>
    %217 = vector.extract_strided_slice %139 {offsets = [19, 0], sizes = [1, 24], strides = [1, 1]} : vector<24x24xbf16> to vector<1x24xbf16>
    %c19_163 = arith.constant 19 : index
    %c0_164 = arith.constant 0 : index
    %c0_165 = arith.constant 0 : index
    %218 = vector.load %arg3[%c19_163, %c0_164, %c0_165] : memref<24x24x64xbf16, #tpu.memory_space<vmem>>, vector<1x24x64xbf16>
    %219 = vector.shape_cast %218 : vector<1x24x64xbf16> to vector<24x64xbf16>
    %cst_166 = arith.constant dense<0.000000e+00> : vector<1x64xf32>
    %220 = tpu.matmul %217, %219, %cst_166 {dimension_numbers = #tpu.dot_dimension_numbers<[1], [0], [0], [1], [0, 0, 1, 1], [], []>} : vector<1x24xbf16>, vector<24x64xbf16>, vector<1x64xf32> -> vector<1x64xf32>
    %221 = vector.extract_strided_slice %139 {offsets = [20, 0], sizes = [1, 24], strides = [1, 1]} : vector<24x24xbf16> to vector<1x24xbf16>
    %c20_167 = arith.constant 20 : index
    %c0_168 = arith.constant 0 : index
    %c0_169 = arith.constant 0 : index
    %222 = vector.load %arg3[%c20_167, %c0_168, %c0_169] : memref<24x24x64xbf16, #tpu.memory_space<vmem>>, vector<1x24x64xbf16>
    %223 = vector.shape_cast %222 : vector<1x24x64xbf16> to vector<24x64xbf16>
    %cst_170 = arith.constant dense<0.000000e+00> : vector<1x64xf32>
    %224 = tpu.matmul %221, %223, %cst_170 {dimension_numbers = #tpu.dot_dimension_numbers<[1], [0], [0], [1], [0, 0, 1, 1], [], []>} : vector<1x24xbf16>, vector<24x64xbf16>, vector<1x64xf32> -> vector<1x64xf32>
    %225 = vector.extract_strided_slice %139 {offsets = [21, 0], sizes = [1, 24], strides = [1, 1]} : vector<24x24xbf16> to vector<1x24xbf16>
    %c21_171 = arith.constant 21 : index
    %c0_172 = arith.constant 0 : index
    %c0_173 = arith.constant 0 : index
    %226 = vector.load %arg3[%c21_171, %c0_172, %c0_173] : memref<24x24x64xbf16, #tpu.memory_space<vmem>>, vector<1x24x64xbf16>
    %227 = vector.shape_cast %226 : vector<1x24x64xbf16> to vector<24x64xbf16>
    %cst_174 = arith.constant dense<0.000000e+00> : vector<1x64xf32>
    %228 = tpu.matmul %225, %227, %cst_174 {dimension_numbers = #tpu.dot_dimension_numbers<[1], [0], [0], [1], [0, 0, 1, 1], [], []>} : vector<1x24xbf16>, vector<24x64xbf16>, vector<1x64xf32> -> vector<1x64xf32>
    %229 = vector.extract_strided_slice %139 {offsets = [22, 0], sizes = [1, 24], strides = [1, 1]} : vector<24x24xbf16> to vector<1x24xbf16>
    %c22_175 = arith.constant 22 : index
    %c0_176 = arith.constant 0 : index
    %c0_177 = arith.constant 0 : index
    %230 = vector.load %arg3[%c22_175, %c0_176, %c0_177] : memref<24x24x64xbf16, #tpu.memory_space<vmem>>, vector<1x24x64xbf16>
    %231 = vector.shape_cast %230 : vector<1x24x64xbf16> to vector<24x64xbf16>
    %cst_178 = arith.constant dense<0.000000e+00> : vector<1x64xf32>
    %232 = tpu.matmul %229, %231, %cst_178 {dimension_numbers = #tpu.dot_dimension_numbers<[1], [0], [0], [1], [0, 0, 1, 1], [], []>} : vector<1x24xbf16>, vector<24x64xbf16>, vector<1x64xf32> -> vector<1x64xf32>
    %233 = vector.extract_strided_slice %139 {offsets = [23, 0], sizes = [1, 24], strides = [1, 1]} : vector<24x24xbf16> to vector<1x24xbf16>
    %c23_179 = arith.constant 23 : index
    %c0_180 = arith.constant 0 : index
    %c0_181 = arith.constant 0 : index
    %234 = vector.load %arg3[%c23_179, %c0_180, %c0_181] : memref<24x24x64xbf16, #tpu.memory_space<vmem>>, vector<1x24x64xbf16>
    %235 = vector.shape_cast %234 : vector<1x24x64xbf16> to vector<24x64xbf16>
    %cst_182 = arith.constant dense<0.000000e+00> : vector<1x64xf32>
    %236 = tpu.matmul %233, %235, %cst_182 {dimension_numbers = #tpu.dot_dimension_numbers<[1], [0], [0], [1], [0, 0, 1, 1], [], []>} : vector<1x24xbf16>, vector<24x64xbf16>, vector<1x64xf32> -> vector<1x64xf32>
    %237 = arith.addf %144, %148 : vector<1x64xf32>
    %238 = arith.addf %152, %156 : vector<1x64xf32>
    %239 = arith.addf %160, %164 : vector<1x64xf32>
    %240 = arith.addf %168, %172 : vector<1x64xf32>
    %241 = arith.addf %176, %180 : vector<1x64xf32>
    %242 = arith.addf %184, %188 : vector<1x64xf32>
    %243 = arith.addf %192, %196 : vector<1x64xf32>
    %244 = arith.addf %200, %204 : vector<1x64xf32>
    %245 = arith.addf %208, %212 : vector<1x64xf32>
    %246 = arith.addf %216, %220 : vector<1x64xf32>
    %247 = arith.addf %224, %228 : vector<1x64xf32>
    %248 = arith.addf %232, %236 : vector<1x64xf32>
    %249 = arith.addf %237, %238 : vector<1x64xf32>
    %250 = arith.addf %239, %240 : vector<1x64xf32>
    %251 = arith.addf %241, %242 : vector<1x64xf32>
    %252 = arith.addf %243, %244 : vector<1x64xf32>
    %253 = arith.addf %245, %246 : vector<1x64xf32>
    %254 = arith.addf %247, %248 : vector<1x64xf32>
    %255 = arith.addf %249, %250 : vector<1x64xf32>
    %256 = arith.addf %251, %252 : vector<1x64xf32>
    %257 = arith.addf %253, %254 : vector<1x64xf32>
    %258 = arith.addf %255, %256 : vector<1x64xf32>
    %259 = arith.addf %258, %257 : vector<1x64xf32>
    %260 = tpu.concatenate %130, %259 in 0 : vector<1x64xf32>, vector<1x64xf32> -> vector<2x64xf32>
    %c0_183 = arith.constant 0 : index
    %c0_184 = arith.constant 0 : index
    %261 = vector.load %arg4[%c0_183, %c0_184] : memref<1x64xf32, #tpu.memory_space<vmem>>, vector<1x64xf32>
    %262 = vector.broadcast %261 : vector<1x64xf32> to vector<2x64xf32>
    %263 = arith.addf %260, %262 : vector<2x64xf32>
    tpu.wait_dma2 semaphore(%arg16 : memref<!tpu.dma_semaphore, #tpu.memory_space<semaphore_mem>>) src(%arg5 : memref<24x64x64xbf16, #tpu.memory_space<any>>) dst(%arg15 : memref<24x64x64xbf16, #tpu.memory_space<vmem>>)
    %264 = vector.extract_strided_slice %11 {offsets = [0, 0], sizes = [1, 64], strides = [1, 1]} : vector<24x64xbf16> to vector<1x64xbf16>
    %c0_185 = arith.constant 0 : index
    %c0_186 = arith.constant 0 : index
    %c0_187 = arith.constant 0 : index
    %265 = vector.load %arg15[%c0_185, %c0_186, %c0_187] : memref<24x64x64xbf16, #tpu.memory_space<vmem>>, vector<1x64x64xbf16>
    %266 = vector.shape_cast %265 : vector<1x64x64xbf16> to vector<64x64xbf16>
    %cst_188 = arith.constant dense<0.000000e+00> : vector<1x64xf32>
    %267 = tpu.matmul %264, %266, %cst_188 {dimension_numbers = #tpu.dot_dimension_numbers<[1], [0], [0], [1], [0, 0, 1, 1], [], []>} : vector<1x64xbf16>, vector<64x64xbf16>, vector<1x64xf32> -> vector<1x64xf32>
    %268 = vector.extract_strided_slice %11 {offsets = [1, 0], sizes = [1, 64], strides = [1, 1]} : vector<24x64xbf16> to vector<1x64xbf16>
    %c1_189 = arith.constant 1 : index
    %c0_190 = arith.constant 0 : index
    %c0_191 = arith.constant 0 : index
    %269 = vector.load %arg15[%c1_189, %c0_190, %c0_191] : memref<24x64x64xbf16, #tpu.memory_space<vmem>>, vector<1x64x64xbf16>
    %270 = vector.shape_cast %269 : vector<1x64x64xbf16> to vector<64x64xbf16>
    %cst_192 = arith.constant dense<0.000000e+00> : vector<1x64xf32>
    %271 = tpu.matmul %268, %270, %cst_192 {dimension_numbers = #tpu.dot_dimension_numbers<[1], [0], [0], [1], [0, 0, 1, 1], [], []>} : vector<1x64xbf16>, vector<64x64xbf16>, vector<1x64xf32> -> vector<1x64xf32>
    %272 = vector.extract_strided_slice %11 {offsets = [2, 0], sizes = [1, 64], strides = [1, 1]} : vector<24x64xbf16> to vector<1x64xbf16>
    %c2_193 = arith.constant 2 : index
    %c0_194 = arith.constant 0 : index
    %c0_195 = arith.constant 0 : index
    %273 = vector.load %arg15[%c2_193, %c0_194, %c0_195] : memref<24x64x64xbf16, #tpu.memory_space<vmem>>, vector<1x64x64xbf16>
    %274 = vector.shape_cast %273 : vector<1x64x64xbf16> to vector<64x64xbf16>
    %cst_196 = arith.constant dense<0.000000e+00> : vector<1x64xf32>
    %275 = tpu.matmul %272, %274, %cst_196 {dimension_numbers = #tpu.dot_dimension_numbers<[1], [0], [0], [1], [0, 0, 1, 1], [], []>} : vector<1x64xbf16>, vector<64x64xbf16>, vector<1x64xf32> -> vector<1x64xf32>
    %276 = vector.extract_strided_slice %11 {offsets = [3, 0], sizes = [1, 64], strides = [1, 1]} : vector<24x64xbf16> to vector<1x64xbf16>
    %c3_197 = arith.constant 3 : index
    %c0_198 = arith.constant 0 : index
    %c0_199 = arith.constant 0 : index
    %277 = vector.load %arg15[%c3_197, %c0_198, %c0_199] : memref<24x64x64xbf16, #tpu.memory_space<vmem>>, vector<1x64x64xbf16>
    %278 = vector.shape_cast %277 : vector<1x64x64xbf16> to vector<64x64xbf16>
    %cst_200 = arith.constant dense<0.000000e+00> : vector<1x64xf32>
    %279 = tpu.matmul %276, %278, %cst_200 {dimension_numbers = #tpu.dot_dimension_numbers<[1], [0], [0], [1], [0, 0, 1, 1], [], []>} : vector<1x64xbf16>, vector<64x64xbf16>, vector<1x64xf32> -> vector<1x64xf32>
    %280 = vector.extract_strided_slice %11 {offsets = [4, 0], sizes = [1, 64], strides = [1, 1]} : vector<24x64xbf16> to vector<1x64xbf16>
    %c4_201 = arith.constant 4 : index
    %c0_202 = arith.constant 0 : index
    %c0_203 = arith.constant 0 : index
    %281 = vector.load %arg15[%c4_201, %c0_202, %c0_203] : memref<24x64x64xbf16, #tpu.memory_space<vmem>>, vector<1x64x64xbf16>
    %282 = vector.shape_cast %281 : vector<1x64x64xbf16> to vector<64x64xbf16>
    %cst_204 = arith.constant dense<0.000000e+00> : vector<1x64xf32>
    %283 = tpu.matmul %280, %282, %cst_204 {dimension_numbers = #tpu.dot_dimension_numbers<[1], [0], [0], [1], [0, 0, 1, 1], [], []>} : vector<1x64xbf16>, vector<64x64xbf16>, vector<1x64xf32> -> vector<1x64xf32>
    %284 = vector.extract_strided_slice %11 {offsets = [5, 0], sizes = [1, 64], strides = [1, 1]} : vector<24x64xbf16> to vector<1x64xbf16>
    %c5_205 = arith.constant 5 : index
    %c0_206 = arith.constant 0 : index
    %c0_207 = arith.constant 0 : index
    %285 = vector.load %arg15[%c5_205, %c0_206, %c0_207] : memref<24x64x64xbf16, #tpu.memory_space<vmem>>, vector<1x64x64xbf16>
    %286 = vector.shape_cast %285 : vector<1x64x64xbf16> to vector<64x64xbf16>
    %cst_208 = arith.constant dense<0.000000e+00> : vector<1x64xf32>
    %287 = tpu.matmul %284, %286, %cst_208 {dimension_numbers = #tpu.dot_dimension_numbers<[1], [0], [0], [1], [0, 0, 1, 1], [], []>} : vector<1x64xbf16>, vector<64x64xbf16>, vector<1x64xf32> -> vector<1x64xf32>
    %288 = vector.extract_strided_slice %11 {offsets = [6, 0], sizes = [1, 64], strides = [1, 1]} : vector<24x64xbf16> to vector<1x64xbf16>
    %c6_209 = arith.constant 6 : index
    %c0_210 = arith.constant 0 : index
    %c0_211 = arith.constant 0 : index
    %289 = vector.load %arg15[%c6_209, %c0_210, %c0_211] : memref<24x64x64xbf16, #tpu.memory_space<vmem>>, vector<1x64x64xbf16>
    %290 = vector.shape_cast %289 : vector<1x64x64xbf16> to vector<64x64xbf16>
    %cst_212 = arith.constant dense<0.000000e+00> : vector<1x64xf32>
    %291 = tpu.matmul %288, %290, %cst_212 {dimension_numbers = #tpu.dot_dimension_numbers<[1], [0], [0], [1], [0, 0, 1, 1], [], []>} : vector<1x64xbf16>, vector<64x64xbf16>, vector<1x64xf32> -> vector<1x64xf32>
    %292 = vector.extract_strided_slice %11 {offsets = [7, 0], sizes = [1, 64], strides = [1, 1]} : vector<24x64xbf16> to vector<1x64xbf16>
    %c7_213 = arith.constant 7 : index
    %c0_214 = arith.constant 0 : index
    %c0_215 = arith.constant 0 : index
    %293 = vector.load %arg15[%c7_213, %c0_214, %c0_215] : memref<24x64x64xbf16, #tpu.memory_space<vmem>>, vector<1x64x64xbf16>
    %294 = vector.shape_cast %293 : vector<1x64x64xbf16> to vector<64x64xbf16>
    %cst_216 = arith.constant dense<0.000000e+00> : vector<1x64xf32>
    %295 = tpu.matmul %292, %294, %cst_216 {dimension_numbers = #tpu.dot_dimension_numbers<[1], [0], [0], [1], [0, 0, 1, 1], [], []>} : vector<1x64xbf16>, vector<64x64xbf16>, vector<1x64xf32> -> vector<1x64xf32>
    %296 = vector.extract_strided_slice %11 {offsets = [8, 0], sizes = [1, 64], strides = [1, 1]} : vector<24x64xbf16> to vector<1x64xbf16>
    %c8_217 = arith.constant 8 : index
    %c0_218 = arith.constant 0 : index
    %c0_219 = arith.constant 0 : index
    %297 = vector.load %arg15[%c8_217, %c0_218, %c0_219] : memref<24x64x64xbf16, #tpu.memory_space<vmem>>, vector<1x64x64xbf16>
    %298 = vector.shape_cast %297 : vector<1x64x64xbf16> to vector<64x64xbf16>
    %cst_220 = arith.constant dense<0.000000e+00> : vector<1x64xf32>
    %299 = tpu.matmul %296, %298, %cst_220 {dimension_numbers = #tpu.dot_dimension_numbers<[1], [0], [0], [1], [0, 0, 1, 1], [], []>} : vector<1x64xbf16>, vector<64x64xbf16>, vector<1x64xf32> -> vector<1x64xf32>
    %300 = vector.extract_strided_slice %11 {offsets = [9, 0], sizes = [1, 64], strides = [1, 1]} : vector<24x64xbf16> to vector<1x64xbf16>
    %c9_221 = arith.constant 9 : index
    %c0_222 = arith.constant 0 : index
    %c0_223 = arith.constant 0 : index
    %301 = vector.load %arg15[%c9_221, %c0_222, %c0_223] : memref<24x64x64xbf16, #tpu.memory_space<vmem>>, vector<1x64x64xbf16>
    %302 = vector.shape_cast %301 : vector<1x64x64xbf16> to vector<64x64xbf16>
    %cst_224 = arith.constant dense<0.000000e+00> : vector<1x64xf32>
    %303 = tpu.matmul %300, %302, %cst_224 {dimension_numbers = #tpu.dot_dimension_numbers<[1], [0], [0], [1], [0, 0, 1, 1], [], []>} : vector<1x64xbf16>, vector<64x64xbf16>, vector<1x64xf32> -> vector<1x64xf32>
    %304 = vector.extract_strided_slice %11 {offsets = [10, 0], sizes = [1, 64], strides = [1, 1]} : vector<24x64xbf16> to vector<1x64xbf16>
    %c10_225 = arith.constant 10 : index
    %c0_226 = arith.constant 0 : index
    %c0_227 = arith.constant 0 : index
    %305 = vector.load %arg15[%c10_225, %c0_226, %c0_227] : memref<24x64x64xbf16, #tpu.memory_space<vmem>>, vector<1x64x64xbf16>
    %306 = vector.shape_cast %305 : vector<1x64x64xbf16> to vector<64x64xbf16>
    %cst_228 = arith.constant dense<0.000000e+00> : vector<1x64xf32>
    %307 = tpu.matmul %304, %306, %cst_228 {dimension_numbers = #tpu.dot_dimension_numbers<[1], [0], [0], [1], [0, 0, 1, 1], [], []>} : vector<1x64xbf16>, vector<64x64xbf16>, vector<1x64xf32> -> vector<1x64xf32>
    %308 = vector.extract_strided_slice %11 {offsets = [11, 0], sizes = [1, 64], strides = [1, 1]} : vector<24x64xbf16> to vector<1x64xbf16>
    %c11_229 = arith.constant 11 : index
    %c0_230 = arith.constant 0 : index
    %c0_231 = arith.constant 0 : index
    %309 = vector.load %arg15[%c11_229, %c0_230, %c0_231] : memref<24x64x64xbf16, #tpu.memory_space<vmem>>, vector<1x64x64xbf16>
    %310 = vector.shape_cast %309 : vector<1x64x64xbf16> to vector<64x64xbf16>
    %cst_232 = arith.constant dense<0.000000e+00> : vector<1x64xf32>
    %311 = tpu.matmul %308, %310, %cst_232 {dimension_numbers = #tpu.dot_dimension_numbers<[1], [0], [0], [1], [0, 0, 1, 1], [], []>} : vector<1x64xbf16>, vector<64x64xbf16>, vector<1x64xf32> -> vector<1x64xf32>
    %312 = vector.extract_strided_slice %11 {offsets = [12, 0], sizes = [1, 64], strides = [1, 1]} : vector<24x64xbf16> to vector<1x64xbf16>
    %c12_233 = arith.constant 12 : index
    %c0_234 = arith.constant 0 : index
    %c0_235 = arith.constant 0 : index
    %313 = vector.load %arg15[%c12_233, %c0_234, %c0_235] : memref<24x64x64xbf16, #tpu.memory_space<vmem>>, vector<1x64x64xbf16>
    %314 = vector.shape_cast %313 : vector<1x64x64xbf16> to vector<64x64xbf16>
    %cst_236 = arith.constant dense<0.000000e+00> : vector<1x64xf32>
    %315 = tpu.matmul %312, %314, %cst_236 {dimension_numbers = #tpu.dot_dimension_numbers<[1], [0], [0], [1], [0, 0, 1, 1], [], []>} : vector<1x64xbf16>, vector<64x64xbf16>, vector<1x64xf32> -> vector<1x64xf32>
    %316 = vector.extract_strided_slice %11 {offsets = [13, 0], sizes = [1, 64], strides = [1, 1]} : vector<24x64xbf16> to vector<1x64xbf16>
    %c13_237 = arith.constant 13 : index
    %c0_238 = arith.constant 0 : index
    %c0_239 = arith.constant 0 : index
    %317 = vector.load %arg15[%c13_237, %c0_238, %c0_239] : memref<24x64x64xbf16, #tpu.memory_space<vmem>>, vector<1x64x64xbf16>
    %318 = vector.shape_cast %317 : vector<1x64x64xbf16> to vector<64x64xbf16>
    %cst_240 = arith.constant dense<0.000000e+00> : vector<1x64xf32>
    %319 = tpu.matmul %316, %318, %cst_240 {dimension_numbers = #tpu.dot_dimension_numbers<[1], [0], [0], [1], [0, 0, 1, 1], [], []>} : vector<1x64xbf16>, vector<64x64xbf16>, vector<1x64xf32> -> vector<1x64xf32>
    %320 = vector.extract_strided_slice %11 {offsets = [14, 0], sizes = [1, 64], strides = [1, 1]} : vector<24x64xbf16> to vector<1x64xbf16>
    %c14_241 = arith.constant 14 : index
    %c0_242 = arith.constant 0 : index
    %c0_243 = arith.constant 0 : index
    %321 = vector.load %arg15[%c14_241, %c0_242, %c0_243] : memref<24x64x64xbf16, #tpu.memory_space<vmem>>, vector<1x64x64xbf16>
    %322 = vector.shape_cast %321 : vector<1x64x64xbf16> to vector<64x64xbf16>
    %cst_244 = arith.constant dense<0.000000e+00> : vector<1x64xf32>
    %323 = tpu.matmul %320, %322, %cst_244 {dimension_numbers = #tpu.dot_dimension_numbers<[1], [0], [0], [1], [0, 0, 1, 1], [], []>} : vector<1x64xbf16>, vector<64x64xbf16>, vector<1x64xf32> -> vector<1x64xf32>
    %324 = vector.extract_strided_slice %11 {offsets = [15, 0], sizes = [1, 64], strides = [1, 1]} : vector<24x64xbf16> to vector<1x64xbf16>
    %c15_245 = arith.constant 15 : index
    %c0_246 = arith.constant 0 : index
    %c0_247 = arith.constant 0 : index
    %325 = vector.load %arg15[%c15_245, %c0_246, %c0_247] : memref<24x64x64xbf16, #tpu.memory_space<vmem>>, vector<1x64x64xbf16>
    %326 = vector.shape_cast %325 : vector<1x64x64xbf16> to vector<64x64xbf16>
    %cst_248 = arith.constant dense<0.000000e+00> : vector<1x64xf32>
    %327 = tpu.matmul %324, %326, %cst_248 {dimension_numbers = #tpu.dot_dimension_numbers<[1], [0], [0], [1], [0, 0, 1, 1], [], []>} : vector<1x64xbf16>, vector<64x64xbf16>, vector<1x64xf32> -> vector<1x64xf32>
    %328 = vector.extract_strided_slice %11 {offsets = [16, 0], sizes = [1, 64], strides = [1, 1]} : vector<24x64xbf16> to vector<1x64xbf16>
    %c16_249 = arith.constant 16 : index
    %c0_250 = arith.constant 0 : index
    %c0_251 = arith.constant 0 : index
    %329 = vector.load %arg15[%c16_249, %c0_250, %c0_251] : memref<24x64x64xbf16, #tpu.memory_space<vmem>>, vector<1x64x64xbf16>
    %330 = vector.shape_cast %329 : vector<1x64x64xbf16> to vector<64x64xbf16>
    %cst_252 = arith.constant dense<0.000000e+00> : vector<1x64xf32>
    %331 = tpu.matmul %328, %330, %cst_252 {dimension_numbers = #tpu.dot_dimension_numbers<[1], [0], [0], [1], [0, 0, 1, 1], [], []>} : vector<1x64xbf16>, vector<64x64xbf16>, vector<1x64xf32> -> vector<1x64xf32>
    %332 = vector.extract_strided_slice %11 {offsets = [17, 0], sizes = [1, 64], strides = [1, 1]} : vector<24x64xbf16> to vector<1x64xbf16>
    %c17_253 = arith.constant 17 : index
    %c0_254 = arith.constant 0 : index
    %c0_255 = arith.constant 0 : index
    %333 = vector.load %arg15[%c17_253, %c0_254, %c0_255] : memref<24x64x64xbf16, #tpu.memory_space<vmem>>, vector<1x64x64xbf16>
    %334 = vector.shape_cast %333 : vector<1x64x64xbf16> to vector<64x64xbf16>
    %cst_256 = arith.constant dense<0.000000e+00> : vector<1x64xf32>
    %335 = tpu.matmul %332, %334, %cst_256 {dimension_numbers = #tpu.dot_dimension_numbers<[1], [0], [0], [1], [0, 0, 1, 1], [], []>} : vector<1x64xbf16>, vector<64x64xbf16>, vector<1x64xf32> -> vector<1x64xf32>
    %336 = vector.extract_strided_slice %11 {offsets = [18, 0], sizes = [1, 64], strides = [1, 1]} : vector<24x64xbf16> to vector<1x64xbf16>
    %c18_257 = arith.constant 18 : index
    %c0_258 = arith.constant 0 : index
    %c0_259 = arith.constant 0 : index
    %337 = vector.load %arg15[%c18_257, %c0_258, %c0_259] : memref<24x64x64xbf16, #tpu.memory_space<vmem>>, vector<1x64x64xbf16>
    %338 = vector.shape_cast %337 : vector<1x64x64xbf16> to vector<64x64xbf16>
    %cst_260 = arith.constant dense<0.000000e+00> : vector<1x64xf32>
    %339 = tpu.matmul %336, %338, %cst_260 {dimension_numbers = #tpu.dot_dimension_numbers<[1], [0], [0], [1], [0, 0, 1, 1], [], []>} : vector<1x64xbf16>, vector<64x64xbf16>, vector<1x64xf32> -> vector<1x64xf32>
    %340 = vector.extract_strided_slice %11 {offsets = [19, 0], sizes = [1, 64], strides = [1, 1]} : vector<24x64xbf16> to vector<1x64xbf16>
    %c19_261 = arith.constant 19 : index
    %c0_262 = arith.constant 0 : index
    %c0_263 = arith.constant 0 : index
    %341 = vector.load %arg15[%c19_261, %c0_262, %c0_263] : memref<24x64x64xbf16, #tpu.memory_space<vmem>>, vector<1x64x64xbf16>
    %342 = vector.shape_cast %341 : vector<1x64x64xbf16> to vector<64x64xbf16>
    %cst_264 = arith.constant dense<0.000000e+00> : vector<1x64xf32>
    %343 = tpu.matmul %340, %342, %cst_264 {dimension_numbers = #tpu.dot_dimension_numbers<[1], [0], [0], [1], [0, 0, 1, 1], [], []>} : vector<1x64xbf16>, vector<64x64xbf16>, vector<1x64xf32> -> vector<1x64xf32>
    %344 = vector.extract_strided_slice %11 {offsets = [20, 0], sizes = [1, 64], strides = [1, 1]} : vector<24x64xbf16> to vector<1x64xbf16>
    %c20_265 = arith.constant 20 : index
    %c0_266 = arith.constant 0 : index
    %c0_267 = arith.constant 0 : index
    %345 = vector.load %arg15[%c20_265, %c0_266, %c0_267] : memref<24x64x64xbf16, #tpu.memory_space<vmem>>, vector<1x64x64xbf16>
    %346 = vector.shape_cast %345 : vector<1x64x64xbf16> to vector<64x64xbf16>
    %cst_268 = arith.constant dense<0.000000e+00> : vector<1x64xf32>
    %347 = tpu.matmul %344, %346, %cst_268 {dimension_numbers = #tpu.dot_dimension_numbers<[1], [0], [0], [1], [0, 0, 1, 1], [], []>} : vector<1x64xbf16>, vector<64x64xbf16>, vector<1x64xf32> -> vector<1x64xf32>
    %348 = vector.extract_strided_slice %11 {offsets = [21, 0], sizes = [1, 64], strides = [1, 1]} : vector<24x64xbf16> to vector<1x64xbf16>
    %c21_269 = arith.constant 21 : index
    %c0_270 = arith.constant 0 : index
    %c0_271 = arith.constant 0 : index
    %349 = vector.load %arg15[%c21_269, %c0_270, %c0_271] : memref<24x64x64xbf16, #tpu.memory_space<vmem>>, vector<1x64x64xbf16>
    %350 = vector.shape_cast %349 : vector<1x64x64xbf16> to vector<64x64xbf16>
    %cst_272 = arith.constant dense<0.000000e+00> : vector<1x64xf32>
    %351 = tpu.matmul %348, %350, %cst_272 {dimension_numbers = #tpu.dot_dimension_numbers<[1], [0], [0], [1], [0, 0, 1, 1], [], []>} : vector<1x64xbf16>, vector<64x64xbf16>, vector<1x64xf32> -> vector<1x64xf32>
    %352 = vector.extract_strided_slice %11 {offsets = [22, 0], sizes = [1, 64], strides = [1, 1]} : vector<24x64xbf16> to vector<1x64xbf16>
    %c22_273 = arith.constant 22 : index
    %c0_274 = arith.constant 0 : index
    %c0_275 = arith.constant 0 : index
    %353 = vector.load %arg15[%c22_273, %c0_274, %c0_275] : memref<24x64x64xbf16, #tpu.memory_space<vmem>>, vector<1x64x64xbf16>
    %354 = vector.shape_cast %353 : vector<1x64x64xbf16> to vector<64x64xbf16>
    %cst_276 = arith.constant dense<0.000000e+00> : vector<1x64xf32>
    %355 = tpu.matmul %352, %354, %cst_276 {dimension_numbers = #tpu.dot_dimension_numbers<[1], [0], [0], [1], [0, 0, 1, 1], [], []>} : vector<1x64xbf16>, vector<64x64xbf16>, vector<1x64xf32> -> vector<1x64xf32>
    %356 = vector.extract_strided_slice %11 {offsets = [23, 0], sizes = [1, 64], strides = [1, 1]} : vector<24x64xbf16> to vector<1x64xbf16>
    %c23_277 = arith.constant 23 : index
    %c0_278 = arith.constant 0 : index
    %c0_279 = arith.constant 0 : index
    %357 = vector.load %arg15[%c23_277, %c0_278, %c0_279] : memref<24x64x64xbf16, #tpu.memory_space<vmem>>, vector<1x64x64xbf16>
    %358 = vector.shape_cast %357 : vector<1x64x64xbf16> to vector<64x64xbf16>
    %cst_280 = arith.constant dense<0.000000e+00> : vector<1x64xf32>
    %359 = tpu.matmul %356, %358, %cst_280 {dimension_numbers = #tpu.dot_dimension_numbers<[1], [0], [0], [1], [0, 0, 1, 1], [], []>} : vector<1x64xbf16>, vector<64x64xbf16>, vector<1x64xf32> -> vector<1x64xf32>
    %360 = arith.addf %267, %271 : vector<1x64xf32>
    %361 = arith.addf %275, %279 : vector<1x64xf32>
    %362 = arith.addf %283, %287 : vector<1x64xf32>
    %363 = arith.addf %291, %295 : vector<1x64xf32>
    %364 = arith.addf %299, %303 : vector<1x64xf32>
    %365 = arith.addf %307, %311 : vector<1x64xf32>
    %366 = arith.addf %315, %319 : vector<1x64xf32>
    %367 = arith.addf %323, %327 : vector<1x64xf32>
    %368 = arith.addf %331, %335 : vector<1x64xf32>
    %369 = arith.addf %339, %343 : vector<1x64xf32>
    %370 = arith.addf %347, %351 : vector<1x64xf32>
    %371 = arith.addf %355, %359 : vector<1x64xf32>
    %372 = arith.addf %360, %361 : vector<1x64xf32>
    %373 = arith.addf %362, %363 : vector<1x64xf32>
    %374 = arith.addf %364, %365 : vector<1x64xf32>
    %375 = arith.addf %366, %367 : vector<1x64xf32>
    %376 = arith.addf %368, %369 : vector<1x64xf32>
    %377 = arith.addf %370, %371 : vector<1x64xf32>
    %378 = arith.addf %372, %373 : vector<1x64xf32>
    %379 = arith.addf %374, %375 : vector<1x64xf32>
    %380 = arith.addf %376, %377 : vector<1x64xf32>
    %381 = arith.addf %378, %379 : vector<1x64xf32>
    %382 = arith.addf %381, %380 : vector<1x64xf32>
    %383 = vector.extract_strided_slice %140 {offsets = [0, 0], sizes = [1, 64], strides = [1, 1]} : vector<24x64xbf16> to vector<1x64xbf16>
    %c0_281 = arith.constant 0 : index
    %c0_282 = arith.constant 0 : index
    %c0_283 = arith.constant 0 : index
    %384 = vector.load %arg15[%c0_281, %c0_282, %c0_283] : memref<24x64x64xbf16, #tpu.memory_space<vmem>>, vector<1x64x64xbf16>
    %385 = vector.shape_cast %384 : vector<1x64x64xbf16> to vector<64x64xbf16>
    %cst_284 = arith.constant dense<0.000000e+00> : vector<1x64xf32>
    %386 = tpu.matmul %383, %385, %cst_284 {dimension_numbers = #tpu.dot_dimension_numbers<[1], [0], [0], [1], [0, 0, 1, 1], [], []>} : vector<1x64xbf16>, vector<64x64xbf16>, vector<1x64xf32> -> vector<1x64xf32>
    %387 = vector.extract_strided_slice %140 {offsets = [1, 0], sizes = [1, 64], strides = [1, 1]} : vector<24x64xbf16> to vector<1x64xbf16>
    %c1_285 = arith.constant 1 : index
    %c0_286 = arith.constant 0 : index
    %c0_287 = arith.constant 0 : index
    %388 = vector.load %arg15[%c1_285, %c0_286, %c0_287] : memref<24x64x64xbf16, #tpu.memory_space<vmem>>, vector<1x64x64xbf16>
    %389 = vector.shape_cast %388 : vector<1x64x64xbf16> to vector<64x64xbf16>
    %cst_288 = arith.constant dense<0.000000e+00> : vector<1x64xf32>
    %390 = tpu.matmul %387, %389, %cst_288 {dimension_numbers = #tpu.dot_dimension_numbers<[1], [0], [0], [1], [0, 0, 1, 1], [], []>} : vector<1x64xbf16>, vector<64x64xbf16>, vector<1x64xf32> -> vector<1x64xf32>
    %391 = vector.extract_strided_slice %140 {offsets = [2, 0], sizes = [1, 64], strides = [1, 1]} : vector<24x64xbf16> to vector<1x64xbf16>
    %c2_289 = arith.constant 2 : index
    %c0_290 = arith.constant 0 : index
    %c0_291 = arith.constant 0 : index
    %392 = vector.load %arg15[%c2_289, %c0_290, %c0_291] : memref<24x64x64xbf16, #tpu.memory_space<vmem>>, vector<1x64x64xbf16>
    %393 = vector.shape_cast %392 : vector<1x64x64xbf16> to vector<64x64xbf16>
    %cst_292 = arith.constant dense<0.000000e+00> : vector<1x64xf32>
    %394 = tpu.matmul %391, %393, %cst_292 {dimension_numbers = #tpu.dot_dimension_numbers<[1], [0], [0], [1], [0, 0, 1, 1], [], []>} : vector<1x64xbf16>, vector<64x64xbf16>, vector<1x64xf32> -> vector<1x64xf32>
    %395 = vector.extract_strided_slice %140 {offsets = [3, 0], sizes = [1, 64], strides = [1, 1]} : vector<24x64xbf16> to vector<1x64xbf16>
    %c3_293 = arith.constant 3 : index
    %c0_294 = arith.constant 0 : index
    %c0_295 = arith.constant 0 : index
    %396 = vector.load %arg15[%c3_293, %c0_294, %c0_295] : memref<24x64x64xbf16, #tpu.memory_space<vmem>>, vector<1x64x64xbf16>
    %397 = vector.shape_cast %396 : vector<1x64x64xbf16> to vector<64x64xbf16>
    %cst_296 = arith.constant dense<0.000000e+00> : vector<1x64xf32>
    %398 = tpu.matmul %395, %397, %cst_296 {dimension_numbers = #tpu.dot_dimension_numbers<[1], [0], [0], [1], [0, 0, 1, 1], [], []>} : vector<1x64xbf16>, vector<64x64xbf16>, vector<1x64xf32> -> vector<1x64xf32>
    %399 = vector.extract_strided_slice %140 {offsets = [4, 0], sizes = [1, 64], strides = [1, 1]} : vector<24x64xbf16> to vector<1x64xbf16>
    %c4_297 = arith.constant 4 : index
    %c0_298 = arith.constant 0 : index
    %c0_299 = arith.constant 0 : index
    %400 = vector.load %arg15[%c4_297, %c0_298, %c0_299] : memref<24x64x64xbf16, #tpu.memory_space<vmem>>, vector<1x64x64xbf16>
    %401 = vector.shape_cast %400 : vector<1x64x64xbf16> to vector<64x64xbf16>
    %cst_300 = arith.constant dense<0.000000e+00> : vector<1x64xf32>
    %402 = tpu.matmul %399, %401, %cst_300 {dimension_numbers = #tpu.dot_dimension_numbers<[1], [0], [0], [1], [0, 0, 1, 1], [], []>} : vector<1x64xbf16>, vector<64x64xbf16>, vector<1x64xf32> -> vector<1x64xf32>
    %403 = vector.extract_strided_slice %140 {offsets = [5, 0], sizes = [1, 64], strides = [1, 1]} : vector<24x64xbf16> to vector<1x64xbf16>
    %c5_301 = arith.constant 5 : index
    %c0_302 = arith.constant 0 : index
    %c0_303 = arith.constant 0 : index
    %404 = vector.load %arg15[%c5_301, %c0_302, %c0_303] : memref<24x64x64xbf16, #tpu.memory_space<vmem>>, vector<1x64x64xbf16>
    %405 = vector.shape_cast %404 : vector<1x64x64xbf16> to vector<64x64xbf16>
    %cst_304 = arith.constant dense<0.000000e+00> : vector<1x64xf32>
    %406 = tpu.matmul %403, %405, %cst_304 {dimension_numbers = #tpu.dot_dimension_numbers<[1], [0], [0], [1], [0, 0, 1, 1], [], []>} : vector<1x64xbf16>, vector<64x64xbf16>, vector<1x64xf32> -> vector<1x64xf32>
    %407 = vector.extract_strided_slice %140 {offsets = [6, 0], sizes = [1, 64], strides = [1, 1]} : vector<24x64xbf16> to vector<1x64xbf16>
    %c6_305 = arith.constant 6 : index
    %c0_306 = arith.constant 0 : index
    %c0_307 = arith.constant 0 : index
    %408 = vector.load %arg15[%c6_305, %c0_306, %c0_307] : memref<24x64x64xbf16, #tpu.memory_space<vmem>>, vector<1x64x64xbf16>
    %409 = vector.shape_cast %408 : vector<1x64x64xbf16> to vector<64x64xbf16>
    %cst_308 = arith.constant dense<0.000000e+00> : vector<1x64xf32>
    %410 = tpu.matmul %407, %409, %cst_308 {dimension_numbers = #tpu.dot_dimension_numbers<[1], [0], [0], [1], [0, 0, 1, 1], [], []>} : vector<1x64xbf16>, vector<64x64xbf16>, vector<1x64xf32> -> vector<1x64xf32>
    %411 = vector.extract_strided_slice %140 {offsets = [7, 0], sizes = [1, 64], strides = [1, 1]} : vector<24x64xbf16> to vector<1x64xbf16>
    %c7_309 = arith.constant 7 : index
    %c0_310 = arith.constant 0 : index
    %c0_311 = arith.constant 0 : index
    %412 = vector.load %arg15[%c7_309, %c0_310, %c0_311] : memref<24x64x64xbf16, #tpu.memory_space<vmem>>, vector<1x64x64xbf16>
    %413 = vector.shape_cast %412 : vector<1x64x64xbf16> to vector<64x64xbf16>
    %cst_312 = arith.constant dense<0.000000e+00> : vector<1x64xf32>
    %414 = tpu.matmul %411, %413, %cst_312 {dimension_numbers = #tpu.dot_dimension_numbers<[1], [0], [0], [1], [0, 0, 1, 1], [], []>} : vector<1x64xbf16>, vector<64x64xbf16>, vector<1x64xf32> -> vector<1x64xf32>
    %415 = vector.extract_strided_slice %140 {offsets = [8, 0], sizes = [1, 64], strides = [1, 1]} : vector<24x64xbf16> to vector<1x64xbf16>
    %c8_313 = arith.constant 8 : index
    %c0_314 = arith.constant 0 : index
    %c0_315 = arith.constant 0 : index
    %416 = vector.load %arg15[%c8_313, %c0_314, %c0_315] : memref<24x64x64xbf16, #tpu.memory_space<vmem>>, vector<1x64x64xbf16>
    %417 = vector.shape_cast %416 : vector<1x64x64xbf16> to vector<64x64xbf16>
    %cst_316 = arith.constant dense<0.000000e+00> : vector<1x64xf32>
    %418 = tpu.matmul %415, %417, %cst_316 {dimension_numbers = #tpu.dot_dimension_numbers<[1], [0], [0], [1], [0, 0, 1, 1], [], []>} : vector<1x64xbf16>, vector<64x64xbf16>, vector<1x64xf32> -> vector<1x64xf32>
    %419 = vector.extract_strided_slice %140 {offsets = [9, 0], sizes = [1, 64], strides = [1, 1]} : vector<24x64xbf16> to vector<1x64xbf16>
    %c9_317 = arith.constant 9 : index
    %c0_318 = arith.constant 0 : index
    %c0_319 = arith.constant 0 : index
    %420 = vector.load %arg15[%c9_317, %c0_318, %c0_319] : memref<24x64x64xbf16, #tpu.memory_space<vmem>>, vector<1x64x64xbf16>
    %421 = vector.shape_cast %420 : vector<1x64x64xbf16> to vector<64x64xbf16>
    %cst_320 = arith.constant dense<0.000000e+00> : vector<1x64xf32>
    %422 = tpu.matmul %419, %421, %cst_320 {dimension_numbers = #tpu.dot_dimension_numbers<[1], [0], [0], [1], [0, 0, 1, 1], [], []>} : vector<1x64xbf16>, vector<64x64xbf16>, vector<1x64xf32> -> vector<1x64xf32>
    %423 = vector.extract_strided_slice %140 {offsets = [10, 0], sizes = [1, 64], strides = [1, 1]} : vector<24x64xbf16> to vector<1x64xbf16>
    %c10_321 = arith.constant 10 : index
    %c0_322 = arith.constant 0 : index
    %c0_323 = arith.constant 0 : index
    %424 = vector.load %arg15[%c10_321, %c0_322, %c0_323] : memref<24x64x64xbf16, #tpu.memory_space<vmem>>, vector<1x64x64xbf16>
    %425 = vector.shape_cast %424 : vector<1x64x64xbf16> to vector<64x64xbf16>
    %cst_324 = arith.constant dense<0.000000e+00> : vector<1x64xf32>
    %426 = tpu.matmul %423, %425, %cst_324 {dimension_numbers = #tpu.dot_dimension_numbers<[1], [0], [0], [1], [0, 0, 1, 1], [], []>} : vector<1x64xbf16>, vector<64x64xbf16>, vector<1x64xf32> -> vector<1x64xf32>
    %427 = vector.extract_strided_slice %140 {offsets = [11, 0], sizes = [1, 64], strides = [1, 1]} : vector<24x64xbf16> to vector<1x64xbf16>
    %c11_325 = arith.constant 11 : index
    %c0_326 = arith.constant 0 : index
    %c0_327 = arith.constant 0 : index
    %428 = vector.load %arg15[%c11_325, %c0_326, %c0_327] : memref<24x64x64xbf16, #tpu.memory_space<vmem>>, vector<1x64x64xbf16>
    %429 = vector.shape_cast %428 : vector<1x64x64xbf16> to vector<64x64xbf16>
    %cst_328 = arith.constant dense<0.000000e+00> : vector<1x64xf32>
    %430 = tpu.matmul %427, %429, %cst_328 {dimension_numbers = #tpu.dot_dimension_numbers<[1], [0], [0], [1], [0, 0, 1, 1], [], []>} : vector<1x64xbf16>, vector<64x64xbf16>, vector<1x64xf32> -> vector<1x64xf32>
    %431 = vector.extract_strided_slice %140 {offsets = [12, 0], sizes = [1, 64], strides = [1, 1]} : vector<24x64xbf16> to vector<1x64xbf16>
    %c12_329 = arith.constant 12 : index
    %c0_330 = arith.constant 0 : index
    %c0_331 = arith.constant 0 : index
    %432 = vector.load %arg15[%c12_329, %c0_330, %c0_331] : memref<24x64x64xbf16, #tpu.memory_space<vmem>>, vector<1x64x64xbf16>
    %433 = vector.shape_cast %432 : vector<1x64x64xbf16> to vector<64x64xbf16>
    %cst_332 = arith.constant dense<0.000000e+00> : vector<1x64xf32>
    %434 = tpu.matmul %431, %433, %cst_332 {dimension_numbers = #tpu.dot_dimension_numbers<[1], [0], [0], [1], [0, 0, 1, 1], [], []>} : vector<1x64xbf16>, vector<64x64xbf16>, vector<1x64xf32> -> vector<1x64xf32>
    %435 = vector.extract_strided_slice %140 {offsets = [13, 0], sizes = [1, 64], strides = [1, 1]} : vector<24x64xbf16> to vector<1x64xbf16>
    %c13_333 = arith.constant 13 : index
    %c0_334 = arith.constant 0 : index
    %c0_335 = arith.constant 0 : index
    %436 = vector.load %arg15[%c13_333, %c0_334, %c0_335] : memref<24x64x64xbf16, #tpu.memory_space<vmem>>, vector<1x64x64xbf16>
    %437 = vector.shape_cast %436 : vector<1x64x64xbf16> to vector<64x64xbf16>
    %cst_336 = arith.constant dense<0.000000e+00> : vector<1x64xf32>
    %438 = tpu.matmul %435, %437, %cst_336 {dimension_numbers = #tpu.dot_dimension_numbers<[1], [0], [0], [1], [0, 0, 1, 1], [], []>} : vector<1x64xbf16>, vector<64x64xbf16>, vector<1x64xf32> -> vector<1x64xf32>
    %439 = vector.extract_strided_slice %140 {offsets = [14, 0], sizes = [1, 64], strides = [1, 1]} : vector<24x64xbf16> to vector<1x64xbf16>
    %c14_337 = arith.constant 14 : index
    %c0_338 = arith.constant 0 : index
    %c0_339 = arith.constant 0 : index
    %440 = vector.load %arg15[%c14_337, %c0_338, %c0_339] : memref<24x64x64xbf16, #tpu.memory_space<vmem>>, vector<1x64x64xbf16>
    %441 = vector.shape_cast %440 : vector<1x64x64xbf16> to vector<64x64xbf16>
    %cst_340 = arith.constant dense<0.000000e+00> : vector<1x64xf32>
    %442 = tpu.matmul %439, %441, %cst_340 {dimension_numbers = #tpu.dot_dimension_numbers<[1], [0], [0], [1], [0, 0, 1, 1], [], []>} : vector<1x64xbf16>, vector<64x64xbf16>, vector<1x64xf32> -> vector<1x64xf32>
    %443 = vector.extract_strided_slice %140 {offsets = [15, 0], sizes = [1, 64], strides = [1, 1]} : vector<24x64xbf16> to vector<1x64xbf16>
    %c15_341 = arith.constant 15 : index
    %c0_342 = arith.constant 0 : index
    %c0_343 = arith.constant 0 : index
    %444 = vector.load %arg15[%c15_341, %c0_342, %c0_343] : memref<24x64x64xbf16, #tpu.memory_space<vmem>>, vector<1x64x64xbf16>
    %445 = vector.shape_cast %444 : vector<1x64x64xbf16> to vector<64x64xbf16>
    %cst_344 = arith.constant dense<0.000000e+00> : vector<1x64xf32>
    %446 = tpu.matmul %443, %445, %cst_344 {dimension_numbers = #tpu.dot_dimension_numbers<[1], [0], [0], [1], [0, 0, 1, 1], [], []>} : vector<1x64xbf16>, vector<64x64xbf16>, vector<1x64xf32> -> vector<1x64xf32>
    %447 = vector.extract_strided_slice %140 {offsets = [16, 0], sizes = [1, 64], strides = [1, 1]} : vector<24x64xbf16> to vector<1x64xbf16>
    %c16_345 = arith.constant 16 : index
    %c0_346 = arith.constant 0 : index
    %c0_347 = arith.constant 0 : index
    %448 = vector.load %arg15[%c16_345, %c0_346, %c0_347] : memref<24x64x64xbf16, #tpu.memory_space<vmem>>, vector<1x64x64xbf16>
    %449 = vector.shape_cast %448 : vector<1x64x64xbf16> to vector<64x64xbf16>
    %cst_348 = arith.constant dense<0.000000e+00> : vector<1x64xf32>
    %450 = tpu.matmul %447, %449, %cst_348 {dimension_numbers = #tpu.dot_dimension_numbers<[1], [0], [0], [1], [0, 0, 1, 1], [], []>} : vector<1x64xbf16>, vector<64x64xbf16>, vector<1x64xf32> -> vector<1x64xf32>
    %451 = vector.extract_strided_slice %140 {offsets = [17, 0], sizes = [1, 64], strides = [1, 1]} : vector<24x64xbf16> to vector<1x64xbf16>
    %c17_349 = arith.constant 17 : index
    %c0_350 = arith.constant 0 : index
    %c0_351 = arith.constant 0 : index
    %452 = vector.load %arg15[%c17_349, %c0_350, %c0_351] : memref<24x64x64xbf16, #tpu.memory_space<vmem>>, vector<1x64x64xbf16>
    %453 = vector.shape_cast %452 : vector<1x64x64xbf16> to vector<64x64xbf16>
    %cst_352 = arith.constant dense<0.000000e+00> : vector<1x64xf32>
    %454 = tpu.matmul %451, %453, %cst_352 {dimension_numbers = #tpu.dot_dimension_numbers<[1], [0], [0], [1], [0, 0, 1, 1], [], []>} : vector<1x64xbf16>, vector<64x64xbf16>, vector<1x64xf32> -> vector<1x64xf32>
    %455 = vector.extract_strided_slice %140 {offsets = [18, 0], sizes = [1, 64], strides = [1, 1]} : vector<24x64xbf16> to vector<1x64xbf16>
    %c18_353 = arith.constant 18 : index
    %c0_354 = arith.constant 0 : index
    %c0_355 = arith.constant 0 : index
    %456 = vector.load %arg15[%c18_353, %c0_354, %c0_355] : memref<24x64x64xbf16, #tpu.memory_space<vmem>>, vector<1x64x64xbf16>
    %457 = vector.shape_cast %456 : vector<1x64x64xbf16> to vector<64x64xbf16>
    %cst_356 = arith.constant dense<0.000000e+00> : vector<1x64xf32>
    %458 = tpu.matmul %455, %457, %cst_356 {dimension_numbers = #tpu.dot_dimension_numbers<[1], [0], [0], [1], [0, 0, 1, 1], [], []>} : vector<1x64xbf16>, vector<64x64xbf16>, vector<1x64xf32> -> vector<1x64xf32>
    %459 = vector.extract_strided_slice %140 {offsets = [19, 0], sizes = [1, 64], strides = [1, 1]} : vector<24x64xbf16> to vector<1x64xbf16>
    %c19_357 = arith.constant 19 : index
    %c0_358 = arith.constant 0 : index
    %c0_359 = arith.constant 0 : index
    %460 = vector.load %arg15[%c19_357, %c0_358, %c0_359] : memref<24x64x64xbf16, #tpu.memory_space<vmem>>, vector<1x64x64xbf16>
    %461 = vector.shape_cast %460 : vector<1x64x64xbf16> to vector<64x64xbf16>
    %cst_360 = arith.constant dense<0.000000e+00> : vector<1x64xf32>
    %462 = tpu.matmul %459, %461, %cst_360 {dimension_numbers = #tpu.dot_dimension_numbers<[1], [0], [0], [1], [0, 0, 1, 1], [], []>} : vector<1x64xbf16>, vector<64x64xbf16>, vector<1x64xf32> -> vector<1x64xf32>
    %463 = vector.extract_strided_slice %140 {offsets = [20, 0], sizes = [1, 64], strides = [1, 1]} : vector<24x64xbf16> to vector<1x64xbf16>
    %c20_361 = arith.constant 20 : index
    %c0_362 = arith.constant 0 : index
    %c0_363 = arith.constant 0 : index
    %464 = vector.load %arg15[%c20_361, %c0_362, %c0_363] : memref<24x64x64xbf16, #tpu.memory_space<vmem>>, vector<1x64x64xbf16>
    %465 = vector.shape_cast %464 : vector<1x64x64xbf16> to vector<64x64xbf16>
    %cst_364 = arith.constant dense<0.000000e+00> : vector<1x64xf32>
    %466 = tpu.matmul %463, %465, %cst_364 {dimension_numbers = #tpu.dot_dimension_numbers<[1], [0], [0], [1], [0, 0, 1, 1], [], []>} : vector<1x64xbf16>, vector<64x64xbf16>, vector<1x64xf32> -> vector<1x64xf32>
    %467 = vector.extract_strided_slice %140 {offsets = [21, 0], sizes = [1, 64], strides = [1, 1]} : vector<24x64xbf16> to vector<1x64xbf16>
    %c21_365 = arith.constant 21 : index
    %c0_366 = arith.constant 0 : index
    %c0_367 = arith.constant 0 : index
    %468 = vector.load %arg15[%c21_365, %c0_366, %c0_367] : memref<24x64x64xbf16, #tpu.memory_space<vmem>>, vector<1x64x64xbf16>
    %469 = vector.shape_cast %468 : vector<1x64x64xbf16> to vector<64x64xbf16>
    %cst_368 = arith.constant dense<0.000000e+00> : vector<1x64xf32>
    %470 = tpu.matmul %467, %469, %cst_368 {dimension_numbers = #tpu.dot_dimension_numbers<[1], [0], [0], [1], [0, 0, 1, 1], [], []>} : vector<1x64xbf16>, vector<64x64xbf16>, vector<1x64xf32> -> vector<1x64xf32>
    %471 = vector.extract_strided_slice %140 {offsets = [22, 0], sizes = [1, 64], strides = [1, 1]} : vector<24x64xbf16> to vector<1x64xbf16>
    %c22_369 = arith.constant 22 : index
    %c0_370 = arith.constant 0 : index
    %c0_371 = arith.constant 0 : index
    %472 = vector.load %arg15[%c22_369, %c0_370, %c0_371] : memref<24x64x64xbf16, #tpu.memory_space<vmem>>, vector<1x64x64xbf16>
    %473 = vector.shape_cast %472 : vector<1x64x64xbf16> to vector<64x64xbf16>
    %cst_372 = arith.constant dense<0.000000e+00> : vector<1x64xf32>
    %474 = tpu.matmul %471, %473, %cst_372 {dimension_numbers = #tpu.dot_dimension_numbers<[1], [0], [0], [1], [0, 0, 1, 1], [], []>} : vector<1x64xbf16>, vector<64x64xbf16>, vector<1x64xf32> -> vector<1x64xf32>
    %475 = vector.extract_strided_slice %140 {offsets = [23, 0], sizes = [1, 64], strides = [1, 1]} : vector<24x64xbf16> to vector<1x64xbf16>
    %c23_373 = arith.constant 23 : index
    %c0_374 = arith.constant 0 : index
    %c0_375 = arith.constant 0 : index
    %476 = vector.load %arg15[%c23_373, %c0_374, %c0_375] : memref<24x64x64xbf16, #tpu.memory_space<vmem>>, vector<1x64x64xbf16>
    %477 = vector.shape_cast %476 : vector<1x64x64xbf16> to vector<64x64xbf16>
    %cst_376 = arith.constant dense<0.000000e+00> : vector<1x64xf32>
    %478 = tpu.matmul %475, %477, %cst_376 {dimension_numbers = #tpu.dot_dimension_numbers<[1], [0], [0], [1], [0, 0, 1, 1], [], []>} : vector<1x64xbf16>, vector<64x64xbf16>, vector<1x64xf32> -> vector<1x64xf32>
    %479 = arith.addf %386, %390 : vector<1x64xf32>
    %480 = arith.addf %394, %398 : vector<1x64xf32>
    %481 = arith.addf %402, %406 : vector<1x64xf32>
    %482 = arith.addf %410, %414 : vector<1x64xf32>
    %483 = arith.addf %418, %422 : vector<1x64xf32>
    %484 = arith.addf %426, %430 : vector<1x64xf32>
    %485 = arith.addf %434, %438 : vector<1x64xf32>
    %486 = arith.addf %442, %446 : vector<1x64xf32>
    %487 = arith.addf %450, %454 : vector<1x64xf32>
    %488 = arith.addf %458, %462 : vector<1x64xf32>
    %489 = arith.addf %466, %470 : vector<1x64xf32>
    %490 = arith.addf %474, %478 : vector<1x64xf32>
    %491 = arith.addf %479, %480 : vector<1x64xf32>
    %492 = arith.addf %481, %482 : vector<1x64xf32>
    %493 = arith.addf %483, %484 : vector<1x64xf32>
    %494 = arith.addf %485, %486 : vector<1x64xf32>
    %495 = arith.addf %487, %488 : vector<1x64xf32>
    %496 = arith.addf %489, %490 : vector<1x64xf32>
    %497 = arith.addf %491, %492 : vector<1x64xf32>
    %498 = arith.addf %493, %494 : vector<1x64xf32>
    %499 = arith.addf %495, %496 : vector<1x64xf32>
    %500 = arith.addf %497, %498 : vector<1x64xf32>
    %501 = arith.addf %500, %499 : vector<1x64xf32>
    %502 = tpu.concatenate %382, %501 in 0 : vector<1x64xf32>, vector<1x64xf32> -> vector<2x64xf32>
    %c0_377 = arith.constant 0 : index
    %c0_378 = arith.constant 0 : index
    %503 = vector.load %arg6[%c0_377, %c0_378] : memref<1x64xf32, #tpu.memory_space<vmem>>, vector<1x64xf32>
    %504 = vector.broadcast %503 : vector<1x64xf32> to vector<2x64xf32>
    %505 = arith.addf %502, %504 : vector<2x64xf32>
    %c0_379 = arith.constant 0 : index
    %c0_380 = arith.constant 0 : index
    %506 = vector.load %arg7[%c0_379, %c0_380] : memref<64x64xf32, #tpu.memory_space<vmem>>, vector<64x64xf32>
    %cst_381 = arith.constant dense<0.000000e+00> : vector<2x64xf32>
    %507 = tpu.matmul %263, %506, %cst_381 {dimension_numbers = #tpu.dot_dimension_numbers<[1], [0], [0], [1], [0, 0, 1, 1], [], []>} : vector<2x64xf32>, vector<64x64xf32>, vector<2x64xf32> -> vector<2x64xf32>
    %c0_382 = arith.constant 0 : index
    %c0_383 = arith.constant 0 : index
    %508 = vector.load %arg8[%c0_382, %c0_383] : memref<64x64xf32, #tpu.memory_space<vmem>>, vector<64x64xf32>
    %cst_384 = arith.constant dense<0.000000e+00> : vector<2x64xf32>
    %509 = tpu.matmul %505, %508, %cst_384 {dimension_numbers = #tpu.dot_dimension_numbers<[1], [0], [0], [1], [0, 0, 1, 1], [], []>} : vector<2x64xf32>, vector<64x64xf32>, vector<2x64xf32> -> vector<2x64xf32>
    %510 = arith.addf %507, %509 : vector<2x64xf32>
    %c0_385 = arith.constant 0 : index
    %c0_386 = arith.constant 0 : index
    %511 = vector.load %arg9[%c0_385, %c0_386] : memref<1x64xf32, #tpu.memory_space<vmem>>, vector<1x64xf32>
    %512 = vector.broadcast %511 : vector<1x64xf32> to vector<2x64xf32>
    %513 = arith.addf %510, %512 : vector<2x64xf32>
    %cst_387 = arith.constant 0.000000e+00 : f32
    %514 = vector.broadcast %cst_387 : f32 to vector<2x64xf32>
    %515 = arith.maximumf %513, %514 : vector<2x64xf32>
    %c0_388 = arith.constant 0 : index
    %c0_389 = arith.constant 0 : index
    %516 = vector.load %arg10[%c0_388, %c0_389] : memref<64x32xf32, #tpu.memory_space<vmem>>, vector<64x32xf32>
    %cst_390 = arith.constant dense<0.000000e+00> : vector<2x32xf32>
    %517 = tpu.matmul %515, %516, %cst_390 {dimension_numbers = #tpu.dot_dimension_numbers<[1], [0], [0], [1], [0, 0, 1, 1], [], []>} : vector<2x64xf32>, vector<64x32xf32>, vector<2x32xf32> -> vector<2x32xf32>
    %c0_391 = arith.constant 0 : index
    %c0_392 = arith.constant 0 : index
    %518 = vector.load %arg11[%c0_391, %c0_392] : memref<1x32xf32, #tpu.memory_space<vmem>>, vector<1x32xf32>
    %519 = vector.broadcast %518 : vector<1x32xf32> to vector<2x32xf32>
    %520 = arith.addf %517, %519 : vector<2x32xf32>
    %cst_393 = arith.constant 0.000000e+00 : f32
    %521 = vector.broadcast %cst_393 : f32 to vector<2x32xf32>
    %522 = arith.maximumf %520, %521 : vector<2x32xf32>
    %c0_394 = arith.constant 0 : index
    %c0_395 = arith.constant 0 : index
    %523 = vector.load %arg12[%c0_394, %c0_395] : memref<32x128xf32, #tpu.memory_space<vmem>>, vector<32x128xf32>
    %cst_396 = arith.constant dense<0.000000e+00> : vector<2x128xf32>
    %524 = tpu.matmul %522, %523, %cst_396 {dimension_numbers = #tpu.dot_dimension_numbers<[1], [0], [0], [1], [0, 0, 1, 1], [], []>} : vector<2x32xf32>, vector<32x128xf32>, vector<2x128xf32> -> vector<2x128xf32>
    %c0_397 = arith.constant 0 : index
    %c0_398 = arith.constant 0 : index
    %525 = vector.load %arg13[%c0_397, %c0_398] : memref<1x128xf32, #tpu.memory_space<vmem>>, vector<1x128xf32>
    %526 = vector.broadcast %525 : vector<1x128xf32> to vector<2x128xf32>
    %527 = arith.addf %524, %526 : vector<2x128xf32>
    %c0_399 = arith.constant 0 : index
    %c0_400 = arith.constant 0 : index
    %528 = vector.load %arg14[%c0_399, %c0_400] : memref<2x128xf32, #tpu.memory_space<vmem>>, vector<2x128xf32>
    tpu.vector_store %arg14[%c0_399, %c0_400], %527 {strides = array<i32>} : memref<2x128xf32, #tpu.memory_space<vmem>>, vector<2x128xf32>,
    return
  }
}

</mosaic_0001>

<bundles_post_ra>
// kernel: res_sn_fc_forward.1
= control target key start
LH: loop header
LB: loop body
LE: loop exit
PB: predicated region body
PF: predicated region fallthrough
CT: control target
= control target key end

     0   :  { %19 = vsyncpa [#allocation5], 0  ;;  %s10257_s0 = inlined_call_operand.vmem [shape: f32[2,48,64], index: 0, kind: input, shape index: {}]   ;;  %s10258_s1 = inlined_call_operand.vmem [shape: f32[24,48], index: 1, kind: input, shape index: {}]   ;;  %s10259_s2 = inlined_call_operand.vmem [shape: f32[24,1], index: 2, kind: input, shape index: {}]   ;;  %s10260_s3 = inlined_call_operand.vmem [shape: bf16[24,24,64], index: 3, kind: input, shape index: {}]   ;;  %s10261_s4 = inlined_call_operand.vmem [shape: f32[1,64], index: 4, kind: input, shape index: {}]   ;;  %s10262_s5 = inlined_call_operand.vmem [shape: bf16[24,64,64], index: 5, kind: input, shape index: {}]   ;;  %s10263_s6 = inlined_call_operand.vmem [shape: f32[1,64], index: 6, kind: input, shape index: {}]   ;;  %s10264_s7 = inlined_call_operand.vmem [shape: f32[64,64], index: 7, kind: input, shape index: {}]   ;;  %s10265_s8 = inlined_call_operand.vmem [shape: f32[64,64], index: 8, kind: input, shape index: {}]   ;;  %s10266_s9 = inlined_call_operand.vmem [shape: f32[1,64], index: 9, kind: input, shape index: {}]   ;;  %s10267_s10 = inlined_call_operand.vmem [shape: f32[64,32], index: 10, kind: input, shape index: {}]   ;;  %s10268_s11 = inlined_call_operand.vmem [shape: f32[1,32], index: 11, kind: input, shape index: {}]   ;;  %s10269_s12 = inlined_call_operand.vmem [shape: f32[32,128], index: 12, kind: input, shape index: {}]   ;;  %s10270_s13 = inlined_call_operand.vmem [shape: f32[1,128], index: 13, kind: input, shape index: {}]   ;;  %s10271_s14 = inlined_call_operand.hbm [shape: f32[2,128], index: 14, kind: output, shape index: {}]  }
   0x1   :  { %v8253_v0 = vld [vmem:[%s10262_s5] sm:$0xff]  ;;  %v8258_v1 = vld [vmem:[%s10262_s5 + $0x8] sm:$0xff]  ;;  %v8263_v2 = vld [vmem:[%s10262_s5 + $0x10] sm:$0xff] }
   0x2   :  { %10365 = vst [vmem:[#allocation9_spill] sm:$0xff] %v8253_v0  ;;  %10366 = vst [vmem:[#allocation10_spill] sm:$0xff] %v8258_v1  ;;  %v8268_v3 = vld [vmem:[%s10262_s5 + $0x18] sm:$0xff]  ;;  %v8273_v4 = vld [vmem:[%s10262_s5 + $0x20] sm:$0xff] }
   0x3   :  { %10367 = vst [vmem:[#allocation11_spill] sm:$0xff] %v8263_v2  ;;  %10368 = vst [vmem:[#allocation12_spill] sm:$0xff] %v8268_v3  ;;  %v8278_v5 = vld [vmem:[%s10262_s5 + $0x28] sm:$0xff]  ;;  %v8283_v6 = vld [vmem:[%s10262_s5 + $0x30] sm:$0xff] }
   0x4   :  { %v8288_v7 = vld [vmem:[%s10262_s5 + $0x38] sm:$0xff]  ;;  %v8293_v8 = vld [vmem:[%s10262_s5 + $0x40] sm:$0xff]  ;;  %v8298_v9 = vld [vmem:[%s10262_s5 + $0x48] sm:$0xff] }
   0x5   :  { %10369 = vst [vmem:[#allocation13_spill] sm:$0xff] %v8293_v8  ;;  %10370 = vst [vmem:[#allocation14_spill] sm:$0xff] %v8298_v9  ;;  %v8303_v10 = vld [vmem:[%s10262_s5 + $0x50] sm:$0xff]  ;;  %v8308_v11 = vld [vmem:[%s10262_s5 + $0x58] sm:$0xff] }
   0x6   :  { %10371 = vst [vmem:[#allocation15_spill] sm:$0xff] %v8303_v10  ;;  %10372 = vst [vmem:[#allocation16_spill] sm:$0xff] %v8308_v11  ;;  %v8313_v12 = vld [vmem:[%s10262_s5 + $0x60] sm:$0xff]  ;;  %v8318_v13 = vld [vmem:[%s10262_s5 + $0x68] sm:$0xff] }
   0x7   :  { %v8323_v14 = vld [vmem:[%s10262_s5 + $0x70] sm:$0xff]  ;;  %v8328_v15 = vld [vmem:[%s10262_s5 + $0x78] sm:$0xff]  ;;  %v8333_v16 = vld [vmem:[%s10262_s5 + $0x80] sm:$0xff] }
   0x8   :  { %10373 = vst [vmem:[#allocation17_spill] sm:$0xff] %v8333_v16  ;;  %v8338_v17 = vld [vmem:[%s10262_s5 + $0x88] sm:$0xff]  ;;  %v8343_v18 = vld [vmem:[%s10262_s5 + $0x90] sm:$0xff]  ;;  %v8348_v19 = vld [vmem:[%s10262_s5 + $0x98] sm:$0xff] }
   0x9   :  { %10374 = vst [vmem:[#allocation18_spill] sm:$0xff] %v8338_v17  ;;  %10375 = vst [vmem:[#allocation19_spill] sm:$0xff] %v8343_v18  ;;  %v8353_v20 = vld [vmem:[%s10262_s5 + $0xa0] sm:$0xff]  ;;  %v8358_v21 = vld [vmem:[%s10262_s5 + $0xa8] sm:$0xff] }
   0xa   :  { %10376 = vst [vmem:[#allocation20_spill] sm:$0xff] %v8348_v19  ;;  %v8363_v22 = vld [vmem:[%s10262_s5 + $0xb0] sm:$0xff]  ;;  %v8368_v23 = vld [vmem:[%s10262_s5 + $0xb8] sm:$0xff]  ;;  %v8373_v24 = vld [vmem:[%s10262_s5 + $0xc0] sm:$0xff] }
   0xb   :  { %10377 = vst [vmem:[#allocation21_spill] sm:$0xff] %v8363_v22  ;;  %10378 = vst [vmem:[#allocation22_spill] sm:$0xff] %v8368_v23  ;;  %v8378_v25 = vld [vmem:[%s10262_s5 + $0xc8] sm:$0xff]  ;;  %v8383_v26 = vld [vmem:[%s10262_s5 + $0xd0] sm:$0xff] }
   0xc   :  { %10379 = vst [vmem:[#allocation23_spill] sm:$0xff] %v8373_v24  ;;  %10380 = vst [vmem:[#allocation24_spill] sm:$0xff] %v8378_v25  ;;  %v8388_v27 = vld [vmem:[%s10262_s5 + $0xd8] sm:$0xff]  ;;  %v8393_v28 = vld [vmem:[%s10262_s5 + $0xe0] sm:$0xff] }
   0xd   :  { %10381 = vst [vmem:[#allocation25_spill] sm:$0xff] %v8383_v26  ;;  %10382 = vst [vmem:[#allocation26_spill] sm:$0xff] %v8388_v27  ;;  %v8398_v29 = vld [vmem:[%s10262_s5 + $0xe8] sm:$0xff]  ;;  %v8403_v30 = vld [vmem:[%s10262_s5 + $0xf0] sm:$0xff] }
   0xe   :  { %10383 = vst [vmem:[#allocation27_spill] sm:$0xff] %v8393_v28  ;;  %10384 = vst [vmem:[#allocation28_spill] sm:$0xff] %v8398_v29  ;;  %v8408_v31 = vld [vmem:[%s10262_s5 + $0xf8] sm:$0xff]  ;;  %v8413_v32 = vld [vmem:[%s10262_s5 + $0x100] sm:$0xff] }
   0xf   :  { %10385 = vst [vmem:[#allocation29_spill] sm:$0xff] %v8403_v30  ;;  %10386 = vst [vmem:[#allocation30_spill] sm:$0xff] %v8408_v31  ;;  %v8418_v33 = vld [vmem:[%s10262_s5 + $0x108] sm:$0xff]  ;;  %v8423_v34 = vld [vmem:[%s10262_s5 + $0x110] sm:$0xff] }
  0x10   :  { %10387 = vst [vmem:[#allocation31_spill] sm:$0xff] %v8413_v32  ;;  %10388 = vst [vmem:[#allocation32_spill] sm:$0xff] %v8418_v33  ;;  %v8428_v35 = vld [vmem:[%s10262_s5 + $0x118] sm:$0xff]  ;;  %v8433_v36 = vld [vmem:[%s10262_s5 + $0x120] sm:$0xff] }
  0x11   :  { %10389 = vst [vmem:[#allocation33_spill] sm:$0xff] %v8423_v34  ;;  %10390 = vst [vmem:[#allocation34_spill] sm:$0xff] %v8428_v35  ;;  %v8438_v37 = vld [vmem:[%s10262_s5 + $0x128] sm:$0xff]  ;;  %v8443_v38 = vld [vmem:[%s10262_s5 + $0x130] sm:$0xff] }
  0x12   :  { %10391 = vst [vmem:[#allocation35_spill] sm:$0xff] %v8433_v36  ;;  %10392 = vst [vmem:[#allocation36_spill] sm:$0xff] %v8438_v37  ;;  %v8448_v39 = vld [vmem:[%s10262_s5 + $0x138] sm:$0xff]  ;;  %v8453_v40 = vld [vmem:[%s10262_s5 + $0x140] sm:$0xff] }
  0x13   :  { %10393 = vst [vmem:[#allocation37_spill] sm:$0xff] %v8443_v38  ;;  %10394 = vst [vmem:[#allocation38_spill] sm:$0xff] %v8448_v39  ;;  %v8458_v41 = vld [vmem:[%s10262_s5 + $0x148] sm:$0xff]  ;;  %v8463_v42 = vld [vmem:[%s10262_s5 + $0x150] sm:$0xff] }
  0x14   :  { %10395 = vst [vmem:[#allocation39_spill] sm:$0xff] %v8453_v40  ;;  %10396 = vst [vmem:[#allocation40_spill] sm:$0xff] %v8458_v41  ;;  %v8468_v43 = vld [vmem:[%s10262_s5 + $0x158] sm:$0xff]  ;;  %v8473_v44 = vld [vmem:[%s10262_s5 + $0x160] sm:$0xff] }
  0x15   :  { %10397 = vst [vmem:[#allocation41_spill] sm:$0xff] %v8463_v42  ;;  %10398 = vst [vmem:[#allocation42_spill] sm:$0xff] %v8468_v43  ;;  %v8478_v45 = vld [vmem:[%s10262_s5 + $0x168] sm:$0xff]  ;;  %v8483_v46 = vld [vmem:[%s10262_s5 + $0x170] sm:$0xff] }
  0x16   :  { %10399 = vst [vmem:[#allocation43_spill] sm:$0xff] %v8473_v44  ;;  %10400 = vst [vmem:[#allocation44_spill] sm:$0xff] %v8478_v45  ;;  %v8488_v47 = vld [vmem:[%s10262_s5 + $0x178] sm:$0xff]  ;;  %v8493_v48 = vld [vmem:[%s10262_s5 + $0x180] sm:$0xff] }
  0x17   :  { %10401 = vst [vmem:[#allocation45_spill] sm:$0xff] %v8483_v46  ;;  %10402 = vst [vmem:[#allocation46_spill] sm:$0xff] %v8488_v47  ;;  %v8498_v49 = vld [vmem:[%s10262_s5 + $0x188] sm:$0xff]  ;;  %v8503_v50 = vld [vmem:[%s10262_s5 + $0x190] sm:$0xff] }
  0x18   :  { %10403 = vst [vmem:[#allocation47_spill] sm:$0xff] %v8493_v48  ;;  %10404 = vst [vmem:[#allocation48_spill] sm:$0xff] %v8498_v49  ;;  %v8508_v51 = vld [vmem:[%s10262_s5 + $0x198] sm:$0xff]  ;;  %v8513_v52 = vld [vmem:[%s10262_s5 + $0x1a0] sm:$0xff] }
  0x19   :  { %10405 = vst [vmem:[#allocation49_spill] sm:$0xff] %v8503_v50  ;;  %10406 = vst [vmem:[#allocation50_spill] sm:$0xff] %v8508_v51  ;;  %v8518_v53 = vld [vmem:[%s10262_s5 + $0x1a8] sm:$0xff]  ;;  %v8523_v54 = vld [vmem:[%s10262_s5 + $0x1b0] sm:$0xff] }
  0x1a   :  { %10407 = vst [vmem:[#allocation51_spill] sm:$0xff] %v8513_v52  ;;  %10408 = vst [vmem:[#allocation52_spill] sm:$0xff] %v8518_v53  ;;  %v8528_v55 = vld [vmem:[%s10262_s5 + $0x1b8] sm:$0xff]  ;;  %v8533_v56 = vld [vmem:[%s10262_s5 + $0x1c0] sm:$0xff] }
  0x1b   :  { %10409 = vst [vmem:[#allocation53_spill] sm:$0xff] %v8523_v54  ;;  %10410 = vst [vmem:[#allocation54_spill] sm:$0xff] %v8528_v55  ;;  %v8538_v57 = vld [vmem:[%s10262_s5 + $0x1c8] sm:$0xff]  ;;  %v8543_v58 = vld [vmem:[%s10262_s5 + $0x1d0] sm:$0xff] }
  0x1c   :  { %10411 = vst [vmem:[#allocation55_spill] sm:$0xff] %v8533_v56  ;;  %10412 = vst [vmem:[#allocation56_spill] sm:$0xff] %v8538_v57  ;;  %v8548_v59 = vld [vmem:[%s10262_s5 + $0x1d8] sm:$0xff]  ;;  %v8553_v60 = vld [vmem:[%s10262_s5 + $0x1e0] sm:$0xff] }
  0x1d   :  { %10413 = vst [vmem:[#allocation57_spill] sm:$0xff] %v8543_v58  ;;  %10414 = vst [vmem:[#allocation58_spill] sm:$0xff] %v8548_v59  ;;  %v8558_v61 = vld [vmem:[%s10262_s5 + $0x1e8] sm:$0xff]  ;;  %v8563_v62 = vld [vmem:[%s10262_s5 + $0x1f0] sm:$0xff] }
  0x1e   :  { %10415 = vst [vmem:[#allocation59_spill] sm:$0xff] %v8553_v60  ;;  %10416 = vst [vmem:[#allocation60_spill] sm:$0xff] %v8558_v61  ;;  %v8568_v63 = vld [vmem:[%s10262_s5 + $0x1f8] sm:$0xff]  ;;  %v8573_v59 = vld [vmem:[%s10262_s5 + $0x200] sm:$0xff] }
  0x1f   :  { %10417 = vst [vmem:[#allocation61_spill] sm:$0xff] %v8563_v62  ;;  %10418 = vst [vmem:[#allocation62_spill] sm:$0xff] %v8568_v63  ;;  %v8578_v58 = vld [vmem:[%s10262_s5 + $0x208] sm:$0xff]  ;;  %v8583_v57 = vld [vmem:[%s10262_s5 + $0x210] sm:$0xff] }
  0x20   :  { %10419 = vst [vmem:[#allocation63_spill] sm:$0xff] %v8573_v59  ;;  %10420 = vst [vmem:[#allocation64_spill] sm:$0xff] %v8578_v58  ;;  %v8588_v56 = vld [vmem:[%s10262_s5 + $0x218] sm:$0xff]  ;;  %v8593_v51 = vld [vmem:[%s10262_s5 + $0x220] sm:$0xff] }
  0x21   :  { %10421 = vst [vmem:[#allocation65_spill] sm:$0xff] %v8583_v57  ;;  %10422 = vst [vmem:[#allocation66_spill] sm:$0xff] %v8588_v56  ;;  %v8598_v59 = vld [vmem:[%s10262_s5 + $0x228] sm:$0xff]  ;;  %v8603_v58 = vld [vmem:[%s10262_s5 + $0x230] sm:$0xff] }
  0x22   :  { %10423 = vst [vmem:[#allocation67_spill] sm:$0xff] %v8593_v51  ;;  %10424 = vst [vmem:[#allocation68_spill] sm:$0xff] %v8598_v59  ;;  %v8608_v57 = vld [vmem:[%s10262_s5 + $0x238] sm:$0xff]  ;;  %v8613_v56 = vld [vmem:[%s10262_s5 + $0x240] sm:$0xff] }
  0x23   :  { %10425 = vst [vmem:[#allocation69_spill] sm:$0xff] %v8603_v58  ;;  %10426 = vst [vmem:[#allocation70_spill] sm:$0xff] %v8608_v57  ;;  %v8618_v50 = vld [vmem:[%s10262_s5 + $0x248] sm:$0xff]  ;;  %v8623_v49 = vld [vmem:[%s10262_s5 + $0x250] sm:$0xff] }
  0x24   :  { %10427 = vst [vmem:[#allocation71_spill] sm:$0xff] %v8613_v56  ;;  %10428 = vst [vmem:[#allocation72_spill] sm:$0xff] %v8618_v50  ;;  %v8628_v48 = vld [vmem:[%s10262_s5 + $0x258] sm:$0xff]  ;;  %v8633_v43 = vld [vmem:[%s10262_s5 + $0x260] sm:$0xff] }
  0x25   :  { %10429 = vst [vmem:[#allocation73_spill] sm:$0xff] %v8623_v49  ;;  %10430 = vst [vmem:[#allocation74_spill] sm:$0xff] %v8628_v48  ;;  %v8638_v56 = vld [vmem:[%s10262_s5 + $0x268] sm:$0xff]  ;;  %v8643_v50 = vld [vmem:[%s10262_s5 + $0x270] sm:$0xff] }
  0x26   :  { %10431 = vst [vmem:[#allocation75_spill] sm:$0xff] %v8633_v43  ;;  %10432 = vst [vmem:[#allocation76_spill] sm:$0xff] %v8638_v56  ;;  %v8648_v49 = vld [vmem:[%s10262_s5 + $0x278] sm:$0xff]  ;;  %v8653_v48 = vld [vmem:[%s10262_s5 + $0x280] sm:$0xff] }
  0x27   :  { %10433 = vst [vmem:[#allocation77_spill] sm:$0xff] %v8643_v50  ;;  %10434 = vst [vmem:[#allocation78_spill] sm:$0xff] %v8648_v49  ;;  %v8658_v42 = vld [vmem:[%s10262_s5 + $0x288] sm:$0xff]  ;;  %v8663_v41 = vld [vmem:[%s10262_s5 + $0x290] sm:$0xff] }
  0x28   :  { %10435 = vst [vmem:[#allocation79_spill] sm:$0xff] %v8653_v48  ;;  %10436 = vst [vmem:[#allocation80_spill] sm:$0xff] %v8658_v42  ;;  %v8668_v40 = vld [vmem:[%s10262_s5 + $0x298] sm:$0xff]  ;;  %v8673_v35 = vld [vmem:[%s10262_s5 + $0x2a0] sm:$0xff] }
  0x29   :  { %10437 = vst [vmem:[#allocation81_spill] sm:$0xff] %v8663_v41  ;;  %10438 = vst [vmem:[#allocation82_spill] sm:$0xff] %v8668_v40  ;;  %v8678_v48 = vld [vmem:[%s10262_s5 + $0x2a8] sm:$0xff]  ;;  %v8683_v42 = vld [vmem:[%s10262_s5 + $0x2b0] sm:$0xff] }
  0x2a   :  { %10439 = vst [vmem:[#allocation83_spill] sm:$0xff] %v8673_v35  ;;  %10440 = vst [vmem:[#allocation84_spill] sm:$0xff] %v8678_v48  ;;  %v8688_v41 = vld [vmem:[%s10262_s5 + $0x2b8] sm:$0xff]  ;;  %v8693_v40 = vld [vmem:[%s10262_s5 + $0x2c0] sm:$0xff] }
  0x2b   :  { %10441 = vst [vmem:[#allocation85_spill] sm:$0xff] %v8683_v42  ;;  %10442 = vst [vmem:[#allocation86_spill] sm:$0xff] %v8688_v41  ;;  %v8698_v34 = vld [vmem:[%s10262_s5 + $0x2c8] sm:$0xff]  ;;  %v8703_v33 = vld [vmem:[%s10262_s5 + $0x2d0] sm:$0xff] }
  0x2c   :  { %10443 = vst [vmem:[#allocation87_spill] sm:$0xff] %v8693_v40  ;;  %10444 = vst [vmem:[#allocation88_spill] sm:$0xff] %v8698_v34  ;;  %v8708_v32 = vld [vmem:[%s10262_s5 + $0x2d8] sm:$0xff]  ;;  %v8713_v27 = vld [vmem:[%s10262_s5 + $0x2e0] sm:$0xff] }
  0x2d   :  { %10445 = vst [vmem:[#allocation89_spill] sm:$0xff] %v8703_v33  ;;  %10446 = vst [vmem:[#allocation90_spill] sm:$0xff] %v8708_v32  ;;  %v8718_v40 = vld [vmem:[%s10262_s5 + $0x2e8] sm:$0xff]  ;;  %v8723_v34 = vld [vmem:[%s10262_s5 + $0x2f0] sm:$0xff] }
  0x2e   :  { %10447 = vst [vmem:[#allocation91_spill] sm:$0xff] %v8713_v27  ;;  %10448 = vst [vmem:[#allocation92_spill] sm:$0xff] %v8718_v40  ;;  %v8728_v33 = vld [vmem:[%s10262_s5 + $0x2f8] sm:$0xff] }
  0x2f   :  { %10449 = vst [vmem:[#allocation93_spill] sm:$0xff] %v8723_v34  ;;  %10450 = vst [vmem:[#allocation94_spill] sm:$0xff] %v8728_v33 }
  0x30   :  { %278 = vsyncadd [#allocation3], 12288  ;;  %v285_v32 = vld [vmem:[%s10257_s0] sm:$0xff]  ;;  %v286_v26 = vld [vmem:[%s10257_s0 + $0x8] sm:$0xff]  ;;  %v10313_v25 = vmov 0.0|0.0   ;;  %vm8171_vm0 = vmmov 0  }
  0x31   :  { %7653 = vmatprep.subr.bf16.mxu0 %v10313_v25  ;;  %v7654_v24 = vpack.c.bf16 %v286_v26, %v285_v32  ;;  %v287_v19 = vld [vmem:[%s10257_s0 + $0x10] sm:$0xff]  ;;  %v288_v18 = vld [vmem:[%s10257_s0 + $0x18] sm:$0xff]  ;;  %7662 = vmatprep.subr.bf16.mxu1 %v10313_v25  ;;  %v289_v17 = vld [vmem:[%s10257_s0 + $0x20] sm:$0xff]  ;;  %v10322_v16 = vmov 0.0   ;;  %v8173_v26 = vmov 0   ;;  %v10451_v9 = vmov 0.0|0.0  }
  0x32   :  { %6565 = vmatprep.mubr.msk.f32.mxu0 %vm8171_vm0, %v10322_v16  ;;  %8094 = vset.pattern.permute.xlu0 %v8173_v26  ;;  %v7657_v32 = vpack.c.bf16 %v288_v18, %v287_v19  ;;  %v290_v11 = vld [vmem:[%s10257_s0 + $0x28] sm:$0xff]  ;;  %v282_v25 = vld [vmem:[%s10259_s2] sm:$0xff]  ;;  %vm306_vm1 = vcmask 392192   ;;  %v284_v18 = vld [vmem:[%s10259_s2 + $0x10] sm:$0xff]  ;;  %vm399_vm2 = vcmask 523264   ;;  %vm516_vm4 = vcmask 1043456  }
  0x33   :  { %7655 = vmatpush3.bf16.msra.mxu0 %v7654_v24  ;;  %v283_v10 = vld [vmem:[%s10259_s2 + $0x8] sm:$0xff]  ;;  %8095 = vset.pattern.permute.xlu1 %v8173_v26  ;;  %v7660_v19 = vpack.c.bf16 %v290_v11, %v289_v17  ;;  %v279_v24 = vld [vmem:[%s10258_s1] sm:$0xff]  ;;  %vm8794_vm3 = vmpackc.low %vm399_vm2, %vm399_vm2  ;;  %vm512_vm5 = vcmask 195584   ;;  %vm3202_vm6 = vcmask 1040384  }
  0x34   :  { %7656 = vmatprep.subr.bf16.mxu0 %v10451_v9  ;;  %293 = vperm.xlu0 %8094, %v282_v25   ;;  %v280_v25 = vld [vmem:[%s10258_s1 + $0x8] sm:$0xff]  ;;  %v6011_v40 = vld [vmem:[%s10257_s0 + $0x38] sm:$0xff]  ;;  %v8113_v50 = vld [vmem:[%s10260_s3 + $0xd4] ss:$0 sps:$4 sm:$0xff]  }
  0x35   :  { %303 = vperm.xlu1 %8095, %v284_v18   ;;  %6580 = vmatprep.mubr.msk.f32.mxu1 %vm8171_vm0, %v10322_v16  ;;  %v8894_v42 = vld [vmem:[%s10260_s3 + $0x3c] sm:$0xff]   ;;  %v8121_v51 = vld [vmem:[%s10260_s3 + $0x8] ss:$0 sps:$4 sm:$0xff]   ;;  %v9147_v63 = vld [vmem:[%s10260_s3 + $0x30] sm:$0xff]  }
  0x36   :  { %v9074_v43 = vld [vmem:[%s10260_s3 + $0xfc] sm:$0xff]   ;;  %v8125_v61 = vld [vmem:[%s10260_s3 + $0x38] ss:$0 sps:$4 sm:$0xff]   ;;  %v9166_v60 = vld [vmem:[%s10260_s3 + $0x48] sm:$0xff]  }
  0x37   :  { %7658 = vmatpush3.bf16.msra.mxu0 %v7657_v32  ;;  %v8119_v58 = vld [vmem:[%s10260_s3 + $0x11c] ss:$0 sps:$4 sm:$0xff]   ;;  %v9110_v59 = vld [vmem:[%s10260_s3] sm:$0xff]   ;;  %v8127_v55 = vld [vmem:[%s10260_s3 + $0x50] ss:$0 sps:$4 sm:$0xff]  }
  0x38   :  { %7659 = vmatprep.subr.bf16.mxu0 %v10451_v9  ;;  %298 = vperm.xlu0 %8094, %v283_v10   ;;  %v281_v10 = vld [vmem:[%s10258_s1 + $0x10] sm:$0xff]  ;;  %v9185_v54 = vld [vmem:[%s10260_s3 + $0x60] sm:$0xff]   ;;  %v8129_v53 = vld [vmem:[%s10260_s3 + $0x68] ss:$0 sps:$4 sm:$0xff]  }
  0x39   :  { %v9204_v52 = vld [vmem:[%s10260_s3 + $0x78] sm:$0xff]   ;;  %v8131_v47 = vld [vmem:[%s10260_s3 + $0x80] ss:$0 sps:$4 sm:$0xff]   ;;  %v9223_v46 = vld [vmem:[%s10260_s3 + $0x90] sm:$0xff]  }
  0x3a   :  { %v8133_v45 = vld [vmem:[%s10260_s3 + $0x98] ss:$0 sps:$4 sm:$0xff]   ;;  %v9242_v44 = vld [vmem:[%s10260_s3 + $0xa8] sm:$0xff]   ;;  %v8135_v39 = vld [vmem:[%s10260_s3 + $0xb0] ss:$0 sps:$4 sm:$0xff]  }
  0x3b   :  { %7661 = vmatpush3.bf16.msra.mxu0 %v7660_v19  ;;  %v9261_v38 = vld [vmem:[%s10260_s3 + $0xc0] sm:$0xff]   ;;  %v8137_v37 = vld [vmem:[%s10260_s3 + $0xc8] ss:$0 sps:$4 sm:$0xff]  }
  0x3c   :  { %6589 = vmatprep.subr.bf16.mxu0 %v10322_v16  ;;  %v8139_v31 = vld [vmem:[%s10260_s3 + $0xe0] ss:$0 sps:$4 sm:$0xff]  }
  0x3e   :  { %6566 = vmatmul.mubr.msk.f32.vlgmr.msra.gmra.mrb[0].mxu0 %vm306_vm1, %v279_v24 }
  0x3f   :  { %6568 = vmatprep.mubr.msk.f32.mxu0 %vm8171_vm0, %v10322_v16 }
  0x42   :  { %6569 = vmatmul.mubr.msk.f32.gmra.mrb[2].mxu0 %vm306_vm1, %v280_v25 }
  0x43   :  { %6571 = vmatprep.mubr.msk.f32.mxu0 %vm8171_vm0, %v10322_v16 }
  0x46   :  { %6572 = vmatmul.mubr.msk.f32.gmra.mrb[4].mxu0 %vm306_vm1, %v281_v10 }
  0x47   :  { %6593 = vmatprep.mubr.msk.bf16.mxu0 %vm8171_vm0, %v10322_v16 }
  0xb3   :  { %v8784_v11 = vpop.permute.xlu0 %293 }
  0xb4   :  { %v8790_v2 = vpop.permute.xlu1 %303 }
  0xb7   :  { %v8787_v18 = vpop.permute.xlu0 %298 }
 0x111   :  { %v382_v17 = vpop.f32.mrb[0].mxu0 }
 0x112   :  { %v6567_v26 = vpop.f32.mrb[1].mxu0  ;;  %v383_v32 = vadd.f32 %v382_v17, %v8784_v11 }
 0x114   :  { %v396_v1 = vmax.f32 %v383_v32, 0.0  ;;  %v6010_v32 = vld [vmem:[%s10257_s0 + $0x30] sm:$0xff] }
 0x115   :  { %v387_v19 = vpop.f32.mrb[2].mxu0 }
 0x116   :  { %v388_v8 = vadd.f32 %v387_v19, %v8787_v18  ;;  %v6570_v3 = vpop.f32.mrb[3].mxu0  ;;  %v10454_v19 = vmov 0.0  }
 0x118   :  { %v397_v0 = vmax.f32 %v388_v8, 0.0 }
 0x119   :  { %v392_v26 = vpop.f32.mrb[4].mxu0 }
 0x11a   :  { %v8798_v33 = vpack.c.bf16 %v397_v0, %v396_v1  ;;  %v393_v17 = vadd.f32 %v392_v26, %v8790_v2  ;;  %v6573_v34 = vpop.f32.mrb[5].mxu0  ;;  %v6012_v26 = vld [vmem:[%s10257_s0 + $0x40] sm:$0xff] }
 0x11b   :  { %v7667_v34 = vpack.c.bf16 %v6011_v40, %v6010_v32  ;;  %v6014_v40 = vld [vmem:[%s10257_s0 + $0x50] sm:$0xff]  ;;  %v6015_v32 = vld [vmem:[%s10257_s0 + $0x58] sm:$0xff] }
 0x11c   :  { %7665 = vmatpush3.bf16.xpose.msk.msra.mxu1 %vm8794_vm3, %v8798_v33  ;;  %v398_v3 = vmax.f32 %v393_v17, 0.0  ;;  %v6013_v17 = vld [vmem:[%s10257_s0 + $0x48] sm:$0xff] }
 0x11d   :  { %6578 = vmatprep.subr.mxu1 %v10454_v19  ;;  %v7670_v27 = vpack.c.bf16 %v6013_v17, %v6012_v26  ;;  %v8868_v17 = vld [vmem:[%s10260_s3 + $0x24] sm:$0xff]  }
 0x11e   :  { %v8805_v8 = vpack.c.bf16 %v398_v3, %v398_v3 }
 0x120   :  { %10455 = vst [vmem:[#allocation95_spill] sm:$0xff] %v8805_v8  ;;  %v9092_v8 = vld [vmem:[%s10260_s3 + $0x114] sm:$0xff]  }
 0x124   :  { %6579 = vmatpush3.xpose.msk.msra.mxu1 %vm399_vm2, %v398_v3 }
 0x125   :  { %7666 = vmatprep.subr.bf16.mxu1 %v10451_v9 }
 0x127   :  { %6581 = vmatmul.mubr.msk.f32.vlgmr.msra.gmra.mrb[0].mxu1 %vm399_vm2, %v396_v1  ;;  %v7673_v1 = vpack.c.bf16 %v6015_v32, %v6014_v40  ;;  %v8099_v32 = vld [vmem:[%s10260_s3 + $0x2c] ss:$0 sps:$4 sm:$0xff]  }
 0x128   :  { %7668 = vmatpush3.bf16.msra.mxu1 %v7667_v34  ;;  %6583 = vmatprep.mubr.msk.f32.mxu1 %vm8171_vm0, %v10454_v19 }
 0x129   :  { %7669 = vmatprep.subr.bf16.mxu1 %v10451_v9 }
 0x12b   :  { %6584 = vmatmul.mubr.msk.f32.gmra.mrb[2].mxu1 %vm399_vm2, %v397_v0  ;;  %v8851_v0 = vld [vmem:[%s10260_s3 + $0xc] sm:$0xff]  }
 0x12c   :  { %7671 = vmatpush3.bf16.msra.mxu1 %v7670_v27  ;;  %6586 = vmatprep.mubr.msk.f32.mxu1 %vm8171_vm0, %v10454_v19  ;;  %v8097_v27 = vld [vmem:[%s10260_s3 + $0x14] ss:$0 sps:$4 sm:$0xff]  }
 0x12d   :  { %7672 = vmatprep.subr.bf16.mxu1 %v10451_v9  ;;  %6590 = vmatpush3.bf16.msra.mxu0 %v8851_v0 }
 0x12e   :  { %6591 = vmatprep.subr.bf16.mxu0 %v10454_v19 }
 0x12f   :  { %6587 = vmatmul.mubr.msk.f32.gmra.mrb[4].mxu1 %vm399_vm2, %v398_v3 }
 0x130   :  { %7674 = vmatpush3.bf16.msra.mxu1 %v7673_v1  ;;  %6793 = vmatprep.mubr.msk.f32.mxu1 %vm8171_vm0, %v10454_v19 }
 0x131   :  { %7675 = vmatprep.subr.bf16.mxu1 %v10451_v9 }
 0x133   :  { %6794 = vmatmul.mubr.msk.f32.vlgmr.msra.gmra.mrb[6].mxu1 %vm306_vm1, %v279_v24  ;;  %v8859_v24 = vsel %vm516_vm4, %v8097_v27, 0 }
 0x134   :  { %6796 = vmatprep.mubr.msk.f32.mxu1 %vm8171_vm0, %v10454_v19  ;;  %6592 = vmatpush3.bf16.msra.mxu0 %v8859_v24 }
 0x135   :  { %6597 = vmatprep.subr.bf16.mxu0 %v10454_v19 }
 0x137   :  { %6797 = vmatmul.mubr.msk.f32.gmra.mrb[8].mxu1 %vm306_vm1, %v280_v25 }
 0x138   :  { %6799 = vmatprep.mubr.msk.f32.mxu1 %vm8171_vm0, %v10454_v19 }
 0x13b   :  { %6800 = vmatmul.mubr.msk.f32.gmra.mrb[10].mxu1 %vm306_vm1, %v281_v10 }
 0x13c   :  { %6808 = vmatprep.mubr.msk.f32.mxu1 %vm8171_vm0, %v10454_v19 }
 0x1fa   :  { %v475_v25 = vpop.f32.mrb[0].mxu1 }
 0x1fb   :  { %v6582_v10 = vpop.f32.mrb[1].mxu1 }
 0x1fe   :  { %v480_v3 = vpop.f32.mrb[2].mxu1 }
 0x1ff   :  { %v8863_v34 = vpack.c.bf16 %v480_v3, %v475_v25  ;;  %v6585_v26 = vpop.f32.mrb[3].mxu1  ;;  %v8885_v25 = vsel %vm516_vm4, %v8099_v32, 0 }
 0x201   :  { %v8871_v40 = vshrl.u32 %v8863_v34, 16  ;;  %v1321_v62 = vrot.slane %v8863_v34, 1 }
 0x202   :  { %v8876_v1 = vpop.f32.mrb[4].mxu1 }
 0x203   :  { %v6588_v27 = vpop.f32.mrb[5].mxu1  ;;  %6594 = vmatmul.mubr.msk.bf16.vlgmr.msra.gmra.mrb[8].mxu0 %vm512_vm5, %v8871_v40  ;;  %v568_v35 = vrot.slane %v8871_v40, 1  ;;  %v632_v16 = vrot.slane %v8871_v40, 2 }
 0x204   :  { %6598 = vmatpush3.bf16.msra.mxu0 %v8868_v17  ;;  %6601 = vmatprep.mubr.msk.bf16.mxu0 %vm8171_vm0, %v10454_v19 }
 0x205   :  { %6599 = vmatprep.subr.bf16.mxu0 %v10454_v19 }
 0x206   :  { %v2020_v10 = vpop.f32.mrb[6].mxu1 }
 0x207   :  { %v6795_v3 = vpop.f32.mrb[7].mxu1  ;;  %v2021_v26 = vadd.f32 %v2020_v10, %v8784_v11 }
 0x208   :  { %6600 = vmatpush3.bf16.msra.mxu0 %v8885_v25  ;;  %v8101_v3 = vld [vmem:[%s10260_s3 + $0x44] ss:$0 sps:$4 sm:$0xff]  }
 0x209   :  { %6605 = vmatprep.subr.bf16.mxu0 %v10454_v19  ;;  %v2034_v48 = vmax.f32 %v2021_v26, 0.0 }
 0x20a   :  { %v2025_v27 = vpop.f32.mrb[8].mxu1 }
 0x20b   :  { %v2026_v9 = vadd.f32 %v2025_v27, %v8787_v18  ;;  %v6798_v41 = vpop.f32.mrb[9].mxu1  ;;  %v8912_v18 = vsel %vm516_vm4, %v8101_v3, 0  ;;  %v8105_v27 = vld [vmem:[%s10260_s3 + $0x74] ss:$0 sps:$4 sm:$0xff]   ;;  %v760_v3 = vrot.slane %v8871_v40, 4 }
 0x20d   :  { %v2035_v32 = vmax.f32 %v2026_v9, 0.0 }
 0x20e   :  { %v2030_v11 = vpop.f32.mrb[10].mxu1 }
 0x20f   :  { %v8900_v10 = vpack.c.bf16 %v2035_v32, %v2034_v48  ;;  %v2031_v49 = vadd.f32 %v2030_v11, %v8790_v2  ;;  %6602 = vmatmul.mubr.msk.bf16.vlgmr.msra.gmra.mrb[8].mxu0 %vm512_vm5, %v568_v35  ;;  %v6801_v41 = vpop.f32.mrb[11].mxu1  ;;  %v8922_v35 = vld [vmem:[%s10260_s3 + $0x54] sm:$0xff]   ;;  %v8107_v11 = vld [vmem:[%s10260_s3 + $0x8c] ss:$0 sps:$4 sm:$0xff]  }
 0x210   :  { %6606 = vmatpush3.bf16.msra.mxu0 %v8894_v42  ;;  %6609 = vmatprep.mubr.msk.bf16.mxu0 %vm8171_vm0, %v10454_v19  ;;  %v8987_v41 = vsel %vm516_vm4, %v8107_v11, 0  ;;  %v8111_v11 = vld [vmem:[%s10260_s3 + $0xbc] ss:$0 sps:$4 sm:$0xff]  }
 0x211   :  { %v2036_v9 = vmax.f32 %v2031_v49, 0.0  ;;  %7678 = vmatpush3.bf16.xpose.msk.msra.mxu1 %vm8794_vm3, %v8900_v10  ;;  %6607 = vmatprep.subr.bf16.mxu0 %v10454_v19  ;;  %v8103_v49 = vld [vmem:[%s10260_s3 + $0x5c] ss:$0 sps:$4 sm:$0xff]  }
 0x212   :  { %6806 = vmatprep.subr.mxu1 %v10454_v19  ;;  %v8937_v26 = vsel %vm516_vm4, %v8103_v49, 0  ;;  %v8109_v49 = vld [vmem:[%s10260_s3 + $0xa4] ss:$0 sps:$4 sm:$0xff]  }
 0x213   :  { %v8915_v2 = vpack.c.bf16 %v2036_v9, %v2036_v9 }
 0x214   :  { %6608 = vmatpush3.bf16.msra.mxu0 %v8912_v18 }
 0x215   :  { %10456 = vst [vmem:[#allocation96_spill] sm:$0xff] %v8915_v2  ;;  %6613 = vmatprep.subr.bf16.mxu0 %v10454_v19  ;;  %v8117_v2 = vld [vmem:[%s10260_s3 + $0x104] ss:$0 sps:$4 sm:$0xff]  }
 0x219   :  { %6807 = vmatpush3.xpose.msk.msra.mxu1 %vm399_vm2, %v2036_v9 }
 0x21a   :  { %6817 = vmatprep.subr.bf16.mxu1 %v10454_v19 }
 0x21b   :  { %6610 = vmatmul.mubr.msk.bf16.vlgmr.msra.gmra.mrb[8].mxu0 %vm512_vm5, %v632_v16  ;;  %v824_v16 = vrot.slane %v8871_v40, 5 }
 0x21c   :  { %6809 = vmatmul.mubr.msk.f32.vlgmr.msra.gmra.mrb[12].mxu1 %vm399_vm2, %v2034_v48  ;;  %6614 = vmatpush3.bf16.msra.mxu0 %v8922_v35  ;;  %v8954_v48 = vld [vmem:[%s10260_s3 + $0x6c] sm:$0xff]  }
 0x21d   :  { %6811 = vmatprep.mubr.msk.f32.mxu1 %vm8171_vm0, %v10454_v19  ;;  %6615 = vmatprep.subr.bf16.mxu0 %v10454_v19 }
 0x21e   :  { %6617 = vmatprep.mubr.msk.bf16.mxu0 %vm8171_vm0, %v10454_v19  ;;  %6818 = vmatpush3.bf16.msra.mxu1 %v8851_v0  ;;  %v696_v0 = vrot.slane %v8871_v40, 3 }
 0x21f   :  { %6819 = vmatprep.subr.bf16.mxu1 %v10454_v19 }
 0x220   :  { %6812 = vmatmul.mubr.msk.f32.gmra.mrb[14].mxu1 %vm399_vm2, %v2035_v32  ;;  %6616 = vmatpush3.bf16.msra.mxu0 %v8937_v26  ;;  %v8975_v32 = vld [vmem:[%s10260_s3 + $0x84] sm:$0xff]  }
 0x221   :  { %6814 = vmatprep.mubr.msk.f32.mxu1 %vm8171_vm0, %v10454_v19  ;;  %6621 = vmatprep.subr.bf16.mxu0 %v10454_v19 }
 0x222   :  { %6820 = vmatpush3.bf16.msra.mxu1 %v8859_v24  ;;  %v8968_v24 = vsel %vm516_vm4, %v8105_v27, 0  ;;  %v9013_v27 = vld [vmem:[%s10260_s3 + $0xb4] sm:$0xff]  }
 0x223   :  { %6825 = vmatprep.subr.bf16.mxu1 %v10454_v19 }
 0x224   :  { %6815 = vmatmul.mubr.msk.f32.gmra.mrb[16].mxu1 %vm399_vm2, %v2036_v9  ;;  %v8994_v9 = vld [vmem:[%s10260_s3 + $0x9c] sm:$0xff]  }
 0x225   :  { %6821 = vmatprep.mubr.msk.bf16.mxu1 %vm8171_vm0, %v10454_v19 }
 0x227   :  { %6618 = vmatmul.mubr.msk.bf16.vlgmr.msra.gmra.mrb[8].mxu0 %vm512_vm5, %v696_v0  ;;  %v9006_v0 = vsel %vm516_vm4, %v8109_v49, 0  ;;  %v9032_v49 = vld [vmem:[%s10260_s3 + $0xcc] sm:$0xff]  }
 0x228   :  { %6622 = vmatpush3.bf16.msra.mxu0 %v8954_v48  ;;  %6625 = vmatprep.mubr.msk.bf16.mxu0 %vm8171_vm0, %v10454_v19 }
 0x229   :  { %6623 = vmatprep.subr.bf16.mxu0 %v10454_v19 }
 0x22c   :  { %6624 = vmatpush3.bf16.msra.mxu0 %v8968_v24 }
 0x22d   :  { %6629 = vmatprep.subr.bf16.mxu0 %v10454_v19 }
 0x233   :  { %6626 = vmatmul.mubr.msk.bf16.vlgmr.msra.gmra.mrb[8].mxu0 %vm512_vm5, %v760_v3  ;;  %v888_v3 = vrot.slane %v8871_v40, 6 }
 0x234   :  { %6630 = vmatpush3.bf16.msra.mxu0 %v8975_v32  ;;  %6633 = vmatprep.mubr.msk.bf16.mxu0 %vm8171_vm0, %v10454_v19 }
 0x235   :  { %6631 = vmatprep.subr.bf16.mxu0 %v10454_v19 }
 0x238   :  { %6632 = vmatpush3.bf16.msra.mxu0 %v8987_v41 }
 0x239   :  { %6637 = vmatprep.subr.bf16.mxu0 %v10454_v19 }
 0x23f   :  { %6634 = vmatmul.mubr.msk.bf16.vlgmr.msra.gmra.mrb[8].mxu0 %vm512_vm5, %v824_v16  ;;  %v9025_v16 = vsel %vm516_vm4, %v8111_v11, 0  ;;  %v9044_v11 = vsel %vm516_vm4, %v8113_v50, 0  ;;  %v8115_v50 = vld [vmem:[%s10260_s3 + $0xec] ss:$0 sps:$4 sm:$0xff]  }
 0x240   :  { %6638 = vmatpush3.bf16.msra.mxu0 %v8994_v9  ;;  %6641 = vmatprep.mubr.msk.bf16.mxu0 %vm8171_vm0, %v10454_v19 }
 0x241   :  { %6639 = vmatprep.subr.bf16.mxu0 %v10454_v19 }
 0x244   :  { %6640 = vmatpush3.bf16.msra.mxu0 %v9006_v0 }
 0x245   :  { %6645 = vmatprep.subr.bf16.mxu0 %v10454_v19 }
 0x24b   :  { %6642 = vmatmul.mubr.msk.bf16.vlgmr.msra.gmra.mrb[8].mxu0 %vm512_vm5, %v888_v3  ;;  %v952_v3 = vrot.slane %v8871_v40, 7  ;;  %v9049_v40 = vpack.c.bf16 %v8876_v1, %v8876_v1  ;;  %v9067_v1 = vsel %vm516_vm4, %v8115_v50, 0  ;;  %v9085_v50 = vsel %vm516_vm4, %v8117_v2, 0 }
 0x24c   :  { %6646 = vmatpush3.bf16.msra.mxu0 %v9013_v27  ;;  %6649 = vmatprep.mubr.msk.bf16.mxu0 %vm8171_vm0, %v10454_v19  ;;  %v9103_v2 = vsel %vm516_vm4, %v8119_v58, 0  ;;  %v9121_v58 = vsel %vm516_vm4, %v8121_v51, 0 }
 0x24d   :  { %6647 = vmatprep.subr.bf16.mxu0 %v10454_v19  ;;  %v1017_v56 = vshrl.u32 %v9049_v40, 16 }
 0x24f   :  { %v1082_v57 = vrot.slane %v1017_v56, 1 }
 0x250   :  { %6648 = vmatpush3.bf16.msra.mxu0 %v9025_v16 }
 0x251   :  { %6653 = vmatprep.subr.bf16.mxu0 %v10454_v19 }
 0x257   :  { %6650 = vmatmul.mubr.msk.bf16.vlgmr.msra.gmra.mrb[8].mxu0 %vm512_vm5, %v952_v3  ;;  %v9055_v3 = vld [vmem:[%s10260_s3 + $0xe4] sm:$0xff]  }
 0x258   :  { %6654 = vmatpush3.bf16.msra.mxu0 %v9032_v49  ;;  %6657 = vmatprep.mubr.msk.bf16.mxu0 %vm8171_vm0, %v10454_v19 }
 0x259   :  { %6655 = vmatprep.subr.bf16.mxu0 %v10454_v19 }
 0x25c   :  { %6656 = vmatpush3.bf16.msra.mxu0 %v9044_v11 }
 0x25d   :  { %6661 = vmatprep.subr.bf16.mxu0 %v10454_v19 }
 0x263   :  { %6658 = vmatmul.mubr.msk.bf16.vlgmr.msra.gmra.mrb[8].mxu0 %vm512_vm5, %v1017_v56 }
 0x264   :  { %6662 = vmatpush3.bf16.msra.mxu0 %v9055_v3  ;;  %6665 = vmatprep.mubr.msk.bf16.mxu0 %vm8171_vm0, %v10454_v19 }
 0x265   :  { %6663 = vmatprep.subr.bf16.mxu0 %v10454_v19 }
 0x268   :  { %6664 = vmatpush3.bf16.msra.mxu0 %v9067_v1 }
 0x269   :  { %6669 = vmatprep.subr.bf16.mxu0 %v10454_v19 }
 0x26f   :  { %6666 = vmatmul.mubr.msk.bf16.vlgmr.msra.gmra.mrb[8].mxu0 %vm512_vm5, %v1082_v57  ;;  %v1146_v57 = vrot.slane %v1017_v56, 2 }
 0x270   :  { %6670 = vmatpush3.bf16.msra.mxu0 %v9074_v43  ;;  %6673 = vmatprep.mubr.msk.bf16.mxu0 %vm8171_vm0, %v10454_v19 }
 0x271   :  { %6671 = vmatprep.subr.bf16.mxu0 %v10454_v19 }
 0x274   :  { %6672 = vmatpush3.bf16.msra.mxu0 %v9085_v50 }
 0x275   :  { %6677 = vmatprep.subr.bf16.mxu0 %v10454_v19 }
 0x27b   :  { %6674 = vmatmul.mubr.msk.bf16.vlgmr.msra.gmra.mrb[8].mxu0 %vm512_vm5, %v1146_v57  ;;  %v1210_v57 = vrot.slane %v1017_v56, 3  ;;  %v9128_v56 = vld [vmem:[%s10260_s3 + $0x18] sm:$0xff]  }
 0x27c   :  { %6678 = vmatpush3.bf16.msra.mxu0 %v9092_v8  ;;  %6681 = vmatprep.mubr.msk.bf16.mxu0 %vm8171_vm0, %v10454_v19 }
 0x27d   :  { %6679 = vmatprep.subr.bf16.mxu0 %v10454_v19 }
 0x280   :  { %6680 = vmatpush3.bf16.msra.mxu0 %v9103_v2 }
 0x281   :  { %6685 = vmatprep.subr.bf16.mxu0 %v10454_v19 }
 0x287   :  { %6682 = vmatmul.mubr.msk.bf16.vlgmr.msra.gmra.mrb[8].mxu0 %vm512_vm5, %v1210_v57  ;;  %v8123_v57 = vld [vmem:[%s10260_s3 + $0x20] ss:$0 sps:$4 sm:$0xff]  }
 0x288   :  { %6686 = vmatpush3.bf16.msra.mxu0 %v9110_v59  ;;  %6689 = vmatprep.mubr.msk.bf16.mxu0 %vm8171_vm0, %v10454_v19  ;;  %v9140_v51 = vsel %vm516_vm4, %v8123_v57, 0  ;;  %v9159_v57 = vsel %vm516_vm4, %v8125_v61, 0  ;;  %v9178_v61 = vsel %vm516_vm4, %v8127_v55, 0  ;;  %v9197_v55 = vsel %vm516_vm4, %v8129_v53, 0 }
 0x289   :  { %6687 = vmatprep.subr.bf16.mxu0 %v10454_v19  ;;  %v9216_v53 = vsel %vm516_vm4, %v8131_v47, 0  ;;  %v9235_v47 = vsel %vm516_vm4, %v8133_v45, 0  ;;  %v9254_v45 = vsel %vm516_vm4, %v8135_v39, 0  ;;  %v9273_v39 = vsel %vm516_vm4, %v8137_v37, 0 }
 0x28c   :  { %6688 = vmatpush3.bf16.msra.mxu0 %v9121_v58 }
 0x28d   :  { %6693 = vmatprep.subr.bf16.mxu0 %v10454_v19 }
 0x293   :  { %6690 = vmatmul.mubr.msk.bf16.vlgmr.msra.gmra.mrb[8].mxu0 %vm512_vm5, %v8863_v34 }
 0x294   :  { %6694 = vmatpush3.bf16.msra.mxu0 %v9128_v56  ;;  %6697 = vmatprep.mubr.msk.bf16.mxu0 %vm8171_vm0, %v10454_v19 }
 0x295   :  { %6695 = vmatprep.subr.bf16.mxu0 %v10454_v19 }
 0x298   :  { %6696 = vmatpush3.bf16.msra.mxu0 %v9140_v51 }
 0x299   :  { %6701 = vmatprep.subr.bf16.mxu0 %v10454_v19 }
 0x29f   :  { %6698 = vmatmul.mubr.msk.bf16.vlgmr.msra.gmra.mrb[8].mxu0 %vm512_vm5, %v1321_v62  ;;  %v1377_v62 = vrot.slane %v8863_v34, 2 }
 0x2a0   :  { %6702 = vmatpush3.bf16.msra.mxu0 %v9147_v63  ;;  %6705 = vmatprep.mubr.msk.bf16.mxu0 %vm8171_vm0, %v10454_v19 }
 0x2a1   :  { %6703 = vmatprep.subr.bf16.mxu0 %v10454_v19 }
 0x2a4   :  { %6704 = vmatpush3.bf16.msra.mxu0 %v9159_v57 }
 0x2a5   :  { %6709 = vmatprep.subr.bf16.mxu0 %v10454_v19 }
 0x2ab   :  { %6706 = vmatmul.mubr.msk.bf16.vlgmr.msra.gmra.mrb[8].mxu0 %vm512_vm5, %v1377_v62  ;;  %v1433_v62 = vrot.slane %v8863_v34, 3 }
 0x2ac   :  { %6710 = vmatpush3.bf16.msra.mxu0 %v9166_v60  ;;  %6713 = vmatprep.mubr.msk.bf16.mxu0 %vm8171_vm0, %v10454_v19 }
 0x2ad   :  { %6711 = vmatprep.subr.bf16.mxu0 %v10454_v19 }
 0x2b0   :  { %6712 = vmatpush3.bf16.msra.mxu0 %v9178_v61 }
 0x2b1   :  { %6717 = vmatprep.subr.bf16.mxu0 %v10454_v19 }
 0x2b7   :  { %6714 = vmatmul.mubr.msk.bf16.vlgmr.msra.gmra.mrb[8].mxu0 %vm512_vm5, %v1433_v62  ;;  %v1489_v62 = vrot.slane %v8863_v34, 4 }
 0x2b8   :  { %6718 = vmatpush3.bf16.msra.mxu0 %v9185_v54  ;;  %6721 = vmatprep.mubr.msk.bf16.mxu0 %vm8171_vm0, %v10454_v19 }
 0x2b9   :  { %6719 = vmatprep.subr.bf16.mxu0 %v10454_v19 }
 0x2bc   :  { %6720 = vmatpush3.bf16.msra.mxu0 %v9197_v55 }
 0x2bd   :  { %6725 = vmatprep.subr.bf16.mxu0 %v10454_v19 }
 0x2c3   :  { %6722 = vmatmul.mubr.msk.bf16.vlgmr.msra.gmra.mrb[8].mxu0 %vm512_vm5, %v1489_v62  ;;  %v1545_v62 = vrot.slane %v8863_v34, 5 }
 0x2c4   :  { %6726 = vmatpush3.bf16.msra.mxu0 %v9204_v52  ;;  %6729 = vmatprep.mubr.msk.bf16.mxu0 %vm8171_vm0, %v10454_v19 }
 0x2c5   :  { %6727 = vmatprep.subr.bf16.mxu0 %v10454_v19 }
 0x2c8   :  { %6728 = vmatpush3.bf16.msra.mxu0 %v9216_v53 }
 0x2c9   :  { %6733 = vmatprep.subr.bf16.mxu0 %v10454_v19 }
 0x2cf   :  { %6730 = vmatmul.mubr.msk.bf16.vlgmr.msra.gmra.mrb[8].mxu0 %vm512_vm5, %v1545_v62  ;;  %v1601_v62 = vrot.slane %v8863_v34, 6 }
 0x2d0   :  { %6734 = vmatpush3.bf16.msra.mxu0 %v9223_v46  ;;  %6737 = vmatprep.mubr.msk.bf16.mxu0 %vm8171_vm0, %v10454_v19 }
 0x2d1   :  { %6735 = vmatprep.subr.bf16.mxu0 %v10454_v19 }
 0x2d4   :  { %6736 = vmatpush3.bf16.msra.mxu0 %v9235_v47 }
 0x2d5   :  { %6741 = vmatprep.subr.bf16.mxu0 %v10454_v19 }
 0x2db   :  { %6738 = vmatmul.mubr.msk.bf16.vlgmr.msra.gmra.mrb[8].mxu0 %vm512_vm5, %v1601_v62  ;;  %v1657_v62 = vrot.slane %v8863_v34, 7 }
 0x2dc   :  { %6742 = vmatpush3.bf16.msra.mxu0 %v9242_v44  ;;  %6745 = vmatprep.mubr.msk.bf16.mxu0 %vm8171_vm0, %v10454_v19 }
 0x2dd   :  { %6743 = vmatprep.subr.bf16.mxu0 %v10454_v19 }
 0x2e0   :  { %6744 = vmatpush3.bf16.msra.mxu0 %v9254_v45 }
 0x2e1   :  { %6749 = vmatprep.subr.bf16.mxu0 %v10454_v19 }
 0x2e7   :  { %6746 = vmatmul.mubr.msk.bf16.vlgmr.msra.gmra.mrb[8].mxu0 %vm512_vm5, %v1657_v62  ;;  %v9280_v62 = vld [vmem:[%s10260_s3 + $0xd8] sm:$0xff]  }
 0x2e8   :  { %6750 = vmatpush3.bf16.msra.mxu0 %v9261_v38  ;;  %6753 = vmatprep.mubr.msk.bf16.mxu0 %vm8171_vm0, %v10454_v19 }
 0x2e9   :  { %6751 = vmatprep.subr.bf16.mxu0 %v10454_v19 }
 0x2ec   :  { %6752 = vmatpush3.bf16.msra.mxu0 %v9273_v39 }
 0x2ed   :  { %6757 = vmatprep.subr.bf16.mxu0 %v10454_v19 }
 0x2ef   :  { %v2112_v34 = vpop.f32.mrb[12].mxu1 }
 0x2f0   :  { %v6810_v36 = vpop.f32.mrb[13].mxu1 }
 0x2f1   :  { %v9294_v36 = vsel %vm516_vm4, %v8139_v31, 0  ;;  %v8141_v31 = vld [vmem:[%s10260_s3 + $0xf8] ss:$0 sps:$4 sm:$0xff]  }
 0x2f3   :  { %6754 = vmatmul.mubr.msk.bf16.vlgmr.msra.gmra.mrb[8].mxu0 %vm512_vm5, %v9049_v40  ;;  %v2117_v37 = vpop.f32.mrb[14].mxu1 }
 0x2f4   :  { %v9287_v30 = vpack.c.bf16 %v2117_v37, %v2112_v34  ;;  %v6813_v29 = vpop.f32.mrb[15].mxu1  ;;  %6758 = vmatpush3.bf16.msra.mxu0 %v9280_v62  ;;  %6761 = vmatprep.mubr.msk.bf16.mxu0 %vm8171_vm0, %v10454_v19  ;;  %v9339_v34 = vld [vmem:[%s10260_s3 + $0x108] sm:$0xff]   ;;  %v1824_v37 = vrot.slane %v9049_v40, 2 }
 0x2f5   :  { %6759 = vmatprep.subr.bf16.mxu0 %v10454_v19  ;;  %v9312_v29 = vld [vmem:[%s10260_s3 + $0xf0] sm:$0xff]  }
 0x2f6   :  { %v9297_v28 = vshrl.u32 %v9287_v30, 16 }
 0x2f7   :  { %v9299_v23 = vpop.f32.mrb[16].mxu1 }
 0x2f8   :  { %v6816_v22 = vpop.f32.mrb[17].mxu1  ;;  %6822 = vmatmul.mubr.msk.bf16.vlgmr.msra.gmra.mrb[20].mxu1 %vm512_vm5, %v9297_v28  ;;  %6760 = vmatpush3.bf16.msra.mxu0 %v9294_v36 }
 0x2f9   :  { %6826 = vmatpush3.bf16.msra.mxu1 %v8868_v17  ;;  %6765 = vmatprep.subr.bf16.mxu0 %v10454_v19  ;;  %v1768_v22 = vrot.slane %v9049_v40, 1  ;;  %v9326_v17 = vsel %vm516_vm4, %v8141_v31, 0  ;;  %v1880_v31 = vrot.slane %v9049_v40, 3  ;;  %v6049_v40 = vld [vmem:[%s10261_s4] ss:$0 sm:$0xff] }
 0x2fa   :  { %6827 = vmatprep.subr.bf16.mxu1 %v10454_v19  ;;  %6829 = vmatprep.mubr.msk.bf16.mxu1 %vm8171_vm0, %v10454_v19 }
 0x2fd   :  { %6828 = vmatpush3.bf16.msra.mxu1 %v8885_v25  ;;  %v2176_v25 = vrot.slane %v9297_v28, 1 }
 0x2fe   :  { %6833 = vmatprep.subr.bf16.mxu1 %v10454_v19 }
 0x2ff   :  { %6762 = vmatmul.mubr.msk.bf16.vlgmr.msra.gmra.mrb[8].mxu0 %vm512_vm5, %v1768_v22 }
 0x300   :  { %6766 = vmatpush3.bf16.msra.mxu0 %v9312_v29  ;;  %6769 = vmatprep.mubr.msk.bf16.mxu0 %vm8171_vm0, %v10454_v19 }
 0x301   :  { %6767 = vmatprep.subr.bf16.mxu0 %v10454_v19 }
 0x304   :  { %6830 = vmatmul.mubr.msk.bf16.vlgmr.msra.gmra.mrb[20].mxu1 %vm512_vm5, %v2176_v25  ;;  %6768 = vmatpush3.bf16.msra.mxu0 %v9326_v17  ;;  %v2264_v25 = vrot.slane %v9297_v28, 3 }
 0x305   :  { %6834 = vmatpush3.bf16.msra.mxu1 %v8894_v42  ;;  %6773 = vmatprep.subr.bf16.mxu0 %v10454_v19  ;;  %v8143_v42 = vld [vmem:[%s10260_s3 + $0x110] ss:$0 sps:$4 sm:$0xff]  }
 0x306   :  { %6835 = vmatprep.subr.bf16.mxu1 %v10454_v19  ;;  %6837 = vmatprep.mubr.msk.bf16.mxu1 %vm8171_vm0, %v10454_v19  ;;  %v9353_v22 = vsel %vm516_vm4, %v8143_v42, 0 }
 0x309   :  { %6836 = vmatpush3.bf16.msra.mxu1 %v8912_v18  ;;  %v2220_v18 = vrot.slane %v9297_v28, 2 }
 0x30a   :  { %6841 = vmatprep.subr.bf16.mxu1 %v10454_v19 }
 0x30b   :  { %6770 = vmatmul.mubr.msk.bf16.vlgmr.msra.gmra.mrb[8].mxu0 %vm512_vm5, %v1824_v37 }
 0x30c   :  { %6774 = vmatpush3.bf16.msra.mxu0 %v9339_v34  ;;  %6777 = vmatprep.mubr.msk.bf16.mxu0 %vm8171_vm0, %v10454_v19 }
 0x30d   :  { %6775 = vmatprep.subr.bf16.mxu0 %v10454_v19 }
 0x310   :  { %6838 = vmatmul.mubr.msk.bf16.vlgmr.msra.gmra.mrb[20].mxu1 %vm512_vm5, %v2220_v18  ;;  %6776 = vmatpush3.bf16.msra.mxu0 %v9353_v22 }
 0x311   :  { %6842 = vmatpush3.bf16.msra.mxu1 %v8922_v35  ;;  %6845 = vmatprep.mubr.msk.bf16.mxu1 %vm8171_vm0, %v10454_v19  ;;  %v2308_v35 = vrot.slane %v9297_v28, 4 }
 0x312   :  { %6843 = vmatprep.subr.bf16.mxu1 %v10454_v19  ;;  %7009 = vmatprep.subr.bf16.mxu0 %v10454_v19 }
 0x315   :  { %6844 = vmatpush3.bf16.msra.mxu1 %v8937_v26  ;;  %v2352_v26 = vrot.slane %v9297_v28, 5 }
 0x316   :  { %6849 = vmatprep.subr.bf16.mxu1 %v10454_v19 }
 0x317   :  { %6778 = vmatmul.mubr.msk.bf16.vlgmr.msra.gmra.mrb[8].mxu0 %vm512_vm5, %v1880_v31 }
 0x31c   :  { %6846 = vmatmul.mubr.msk.bf16.vlgmr.msra.gmra.mrb[20].mxu1 %vm512_vm5, %v2264_v25 }
 0x31d   :  { %6850 = vmatpush3.bf16.msra.mxu1 %v8954_v48  ;;  %6853 = vmatprep.mubr.msk.bf16.mxu1 %vm8171_vm0, %v10454_v19  ;;  %v2396_v48 = vrot.slane %v9297_v28, 6 }
 0x31e   :  { %6851 = vmatprep.subr.bf16.mxu1 %v10454_v19 }
 0x321   :  { %6852 = vmatpush3.bf16.msra.mxu1 %v8968_v24  ;;  %v2440_v24 = vrot.slane %v9297_v28, 7 }
 0x322   :  { %6857 = vmatprep.subr.bf16.mxu1 %v10454_v19 }
 0x328   :  { %6854 = vmatmul.mubr.msk.bf16.vlgmr.msra.gmra.mrb[20].mxu1 %vm512_vm5, %v2308_v35 }
 0x329   :  { %6858 = vmatpush3.bf16.msra.mxu1 %v8975_v32  ;;  %6861 = vmatprep.mubr.msk.bf16.mxu1 %vm8171_vm0, %v10454_v19  ;;  %v9407_v32 = vpack.c.bf16 %v9299_v23, %v9299_v23 }
 0x32a   :  { %6859 = vmatprep.subr.bf16.mxu1 %v10454_v19 }
 0x32d   :  { %6860 = vmatpush3.bf16.msra.mxu1 %v8987_v41  ;;  %v2485_v41 = vshrl.u32 %v9407_v32, 16 }
 0x32e   :  { %6865 = vmatprep.subr.bf16.mxu1 %v10454_v19 }
 0x32f   :  { %v2530_v28 = vrot.slane %v2485_v41, 1  ;;  %v2574_v23 = vrot.slane %v2485_v41, 2 }
 0x334   :  { %6862 = vmatmul.mubr.msk.bf16.vlgmr.msra.gmra.mrb[20].mxu1 %vm512_vm5, %v2352_v26 }
 0x335   :  { %6866 = vmatpush3.bf16.msra.mxu1 %v8994_v9  ;;  %6869 = vmatprep.mubr.msk.bf16.mxu1 %vm8171_vm0, %v10454_v19 }
 0x336   :  { %6867 = vmatprep.subr.bf16.mxu1 %v10454_v19 }
 0x339   :  { %6868 = vmatpush3.bf16.msra.mxu1 %v9006_v0  ;;  %v3056_v0 = vrot.slane %v9407_v32, 1 }
 0x33a   :  { %6873 = vmatprep.subr.bf16.mxu1 %v10454_v19 }
 0x340   :  { %6870 = vmatmul.mubr.msk.bf16.vlgmr.msra.gmra.mrb[20].mxu1 %vm512_vm5, %v2396_v48 }
 0x341   :  { %6874 = vmatpush3.bf16.msra.mxu1 %v9013_v27  ;;  %6877 = vmatprep.mubr.msk.bf16.mxu1 %vm8171_vm0, %v10454_v19  ;;  %v3100_v27 = vrot.slane %v9407_v32, 2 }
 0x342   :  { %6875 = vmatprep.subr.bf16.mxu1 %v10454_v19 }
 0x345   :  { %6876 = vmatpush3.bf16.msra.mxu1 %v9025_v16  ;;  %v3144_v16 = vrot.slane %v9407_v32, 3 }
 0x346   :  { %6881 = vmatprep.subr.bf16.mxu1 %v10454_v19 }
 0x34c   :  { %6878 = vmatmul.mubr.msk.bf16.vlgmr.msra.gmra.mrb[20].mxu1 %vm512_vm5, %v2440_v24 }
 0x34d   :  { %6882 = vmatpush3.bf16.msra.mxu1 %v9032_v49  ;;  %6885 = vmatprep.mubr.msk.bf16.mxu1 %vm8171_vm0, %v10454_v19 }
 0x34e   :  { %6883 = vmatprep.subr.bf16.mxu1 %v10454_v19 }
 0x351   :  { %6884 = vmatpush3.bf16.msra.mxu1 %v9044_v11 }
 0x352   :  { %6889 = vmatprep.subr.bf16.mxu1 %v10454_v19 }
 0x358   :  { %6886 = vmatmul.mubr.msk.bf16.vlgmr.msra.gmra.mrb[20].mxu1 %vm512_vm5, %v2485_v41 }
 0x359   :  { %6890 = vmatpush3.bf16.msra.mxu1 %v9055_v3  ;;  %6893 = vmatprep.mubr.msk.bf16.mxu1 %vm8171_vm0, %v10454_v19 }
 0x35a   :  { %6891 = vmatprep.subr.bf16.mxu1 %v10454_v19 }
 0x35d   :  { %6892 = vmatpush3.bf16.msra.mxu1 %v9067_v1 }
 0x35e   :  { %6897 = vmatprep.subr.bf16.mxu1 %v10454_v19 }
 0x364   :  { %6894 = vmatmul.mubr.msk.bf16.vlgmr.msra.gmra.mrb[20].mxu1 %vm512_vm5, %v2530_v28 }
 0x365   :  { %6898 = vmatpush3.bf16.msra.mxu1 %v9074_v43  ;;  %6901 = vmatprep.mubr.msk.bf16.mxu1 %vm8171_vm0, %v10454_v19  ;;  %v2618_v43 = vrot.slane %v2485_v41, 3 }
 0x366   :  { %6899 = vmatprep.subr.bf16.mxu1 %v10454_v19 }
 0x369   :  { %6900 = vmatpush3.bf16.msra.mxu1 %v9085_v50 }
 0x36a   :  { %6905 = vmatprep.subr.bf16.mxu1 %v10454_v19 }
 0x370   :  { %6902 = vmatmul.mubr.msk.bf16.vlgmr.msra.gmra.mrb[20].mxu1 %vm512_vm5, %v2574_v23 }
 0x371   :  { %6906 = vmatpush3.bf16.msra.mxu1 %v9092_v8  ;;  %6909 = vmatprep.mubr.msk.bf16.mxu1 %vm8171_vm0, %v10454_v19  ;;  %v2749_v8 = vrot.slane %v9287_v30, 2 }
 0x372   :  { %6907 = vmatprep.subr.bf16.mxu1 %v10454_v19 }
 0x375   :  { %6908 = vmatpush3.bf16.msra.mxu1 %v9103_v2 }
 0x376   :  { %6913 = vmatprep.subr.bf16.mxu1 %v10454_v19 }
 0x37c   :  { %6910 = vmatmul.mubr.msk.bf16.vlgmr.msra.gmra.mrb[20].mxu1 %vm512_vm5, %v2618_v43 }
 0x37d   :  { %6914 = vmatpush3.bf16.msra.mxu1 %v9110_v59  ;;  %6917 = vmatprep.mubr.msk.bf16.mxu1 %vm8171_vm0, %v10454_v19  ;;  %v2705_v59 = vrot.slane %v9287_v30, 1 }
 0x37e   :  { %6915 = vmatprep.subr.bf16.mxu1 %v10454_v19 }
 0x381   :  { %6916 = vmatpush3.bf16.msra.mxu1 %v9121_v58 }
 0x382   :  { %6921 = vmatprep.subr.bf16.mxu1 %v10454_v19 }
 0x388   :  { %6918 = vmatmul.mubr.msk.bf16.vlgmr.msra.gmra.mrb[20].mxu1 %vm512_vm5, %v9287_v30 }
 0x389   :  { %6922 = vmatpush3.bf16.msra.mxu1 %v9128_v56  ;;  %6925 = vmatprep.mubr.msk.bf16.mxu1 %vm8171_vm0, %v10454_v19 }
 0x38a   :  { %6923 = vmatprep.subr.bf16.mxu1 %v10454_v19 }
 0x38d   :  { %6924 = vmatpush3.bf16.msra.mxu1 %v9140_v51 }
 0x38e   :  { %6929 = vmatprep.subr.bf16.mxu1 %v10454_v19 }
 0x394   :  { %6926 = vmatmul.mubr.msk.bf16.vlgmr.msra.gmra.mrb[20].mxu1 %vm512_vm5, %v2705_v59 }
 0x395   :  { %6930 = vmatpush3.bf16.msra.mxu1 %v9147_v63  ;;  %6933 = vmatprep.mubr.msk.bf16.mxu1 %vm8171_vm0, %v10454_v19  ;;  %v2793_v63 = vrot.slane %v9287_v30, 3 }
 0x396   :  { %6931 = vmatprep.subr.bf16.mxu1 %v10454_v19 }
 0x399   :  { %6932 = vmatpush3.bf16.msra.mxu1 %v9159_v57 }
 0x39a   :  { %6937 = vmatprep.subr.bf16.mxu1 %v10454_v19 }
 0x3a0   :  { %6934 = vmatmul.mubr.msk.bf16.vlgmr.msra.gmra.mrb[20].mxu1 %vm512_vm5, %v2749_v8 }
 0x3a1   :  { %6938 = vmatpush3.bf16.msra.mxu1 %v9166_v60  ;;  %6941 = vmatprep.mubr.msk.bf16.mxu1 %vm8171_vm0, %v10454_v19  ;;  %v2837_v60 = vrot.slane %v9287_v30, 4 }
 0x3a2   :  { %6939 = vmatprep.subr.bf16.mxu1 %v10454_v19 }
 0x3a5   :  { %6940 = vmatpush3.bf16.msra.mxu1 %v9178_v61 }
 0x3a6   :  { %6945 = vmatprep.subr.bf16.mxu1 %v10454_v19 }
 0x3ac   :  { %6942 = vmatmul.mubr.msk.bf16.vlgmr.msra.gmra.mrb[20].mxu1 %vm512_vm5, %v2793_v63 }
 0x3ad   :  { %6946 = vmatpush3.bf16.msra.mxu1 %v9185_v54  ;;  %6949 = vmatprep.mubr.msk.bf16.mxu1 %vm8171_vm0, %v10454_v19  ;;  %v2881_v54 = vrot.slane %v9287_v30, 5 }
 0x3ae   :  { %6947 = vmatprep.subr.bf16.mxu1 %v10454_v19 }
 0x3b1   :  { %6948 = vmatpush3.bf16.msra.mxu1 %v9197_v55 }
 0x3b2   :  { %6953 = vmatprep.subr.bf16.mxu1 %v10454_v19 }
 0x3b8   :  { %6950 = vmatmul.mubr.msk.bf16.vlgmr.msra.gmra.mrb[20].mxu1 %vm512_vm5, %v2837_v60 }
 0x3b9   :  { %6954 = vmatpush3.bf16.msra.mxu1 %v9204_v52  ;;  %6957 = vmatprep.mubr.msk.bf16.mxu1 %vm8171_vm0, %v10454_v19  ;;  %v2925_v52 = vrot.slane %v9287_v30, 6 }
 0x3ba   :  { %6955 = vmatprep.subr.bf16.mxu1 %v10454_v19 }
 0x3bd   :  { %6956 = vmatpush3.bf16.msra.mxu1 %v9216_v53 }
 0x3be   :  { %6961 = vmatprep.subr.bf16.mxu1 %v10454_v19 }
 0x3c4   :  { %6958 = vmatmul.mubr.msk.bf16.vlgmr.msra.gmra.mrb[20].mxu1 %vm512_vm5, %v2881_v54 }
 0x3c5   :  { %6962 = vmatpush3.bf16.msra.mxu1 %v9223_v46  ;;  %6965 = vmatprep.mubr.msk.bf16.mxu1 %vm8171_vm0, %v10454_v19  ;;  %v2969_v46 = vrot.slane %v9287_v30, 7 }
 0x3c6   :  { %6963 = vmatprep.subr.bf16.mxu1 %v10454_v19 }
 0x3c9   :  { %6964 = vmatpush3.bf16.msra.mxu1 %v9235_v47 }
 0x3ca   :  { %6969 = vmatprep.subr.bf16.mxu1 %v10454_v19 }
 0x3d0   :  { %6966 = vmatmul.mubr.msk.bf16.vlgmr.msra.gmra.mrb[20].mxu1 %vm512_vm5, %v2925_v52 }
 0x3d1   :  { %6970 = vmatpush3.bf16.msra.mxu1 %v9242_v44  ;;  %6973 = vmatprep.mubr.msk.bf16.mxu1 %vm8171_vm0, %v10454_v19 }
 0x3d2   :  { %6971 = vmatprep.subr.bf16.mxu1 %v10454_v19 }
 0x3d5   :  { %6972 = vmatpush3.bf16.msra.mxu1 %v9254_v45 }
 0x3d6   :  { %6977 = vmatprep.subr.bf16.mxu1 %v10454_v19 }
 0x3dc   :  { %6974 = vmatmul.mubr.msk.bf16.vlgmr.msra.gmra.mrb[20].mxu1 %vm512_vm5, %v2969_v46 }
 0x3dd   :  { %6978 = vmatpush3.bf16.msra.mxu1 %v9261_v38  ;;  %6981 = vmatprep.mubr.msk.bf16.mxu1 %vm8171_vm0, %v10454_v19 }
 0x3de   :  { %6979 = vmatprep.subr.bf16.mxu1 %v10454_v19 }
 0x3e1   :  { %6980 = vmatpush3.bf16.msra.mxu1 %v9273_v39 }
 0x3e2   :  { %6985 = vmatprep.subr.bf16.mxu1 %v10454_v19 }
 0x3e8   :  { %6982 = vmatmul.mubr.msk.bf16.vlgmr.msra.gmra.mrb[20].mxu1 %vm512_vm5, %v9407_v32 }
 0x3e9   :  { %6986 = vmatpush3.bf16.msra.mxu1 %v9280_v62  ;;  %6989 = vmatprep.mubr.msk.bf16.mxu1 %vm8171_vm0, %v10454_v19 }
 0x3ea   :  { %v1930_v30 = vpop.f32.mrb[8].mxu0  ;;  %6987 = vmatprep.subr.bf16.mxu1 %v10454_v19 }
 0x3eb   :  { %v6779_v38 = vpop.f32.mrb[9].mxu0 }
 0x3ec   :  { %v1933_v44 = vpop.f32.mrb[10].mxu0 }
 0x3ed   :  { %v6780_v9 = vpop.f32.mrb[11].mxu0  ;;  %6988 = vmatpush3.bf16.msra.mxu1 %v9294_v36 }
 0x3ee   :  { %6993 = vmatprep.subr.bf16.mxu1 %v10454_v19 }
 0x3f4   :  { %6990 = vmatmul.mubr.msk.bf16.vlgmr.msra.gmra.mrb[20].mxu1 %vm512_vm5, %v3056_v0 }
 0x3f5   :  { %6994 = vmatpush3.bf16.msra.mxu1 %v9312_v29  ;;  %6997 = vmatprep.mubr.msk.bf16.mxu1 %vm8171_vm0, %v10454_v19 }
 0x3f6   :  { %6995 = vmatprep.subr.bf16.mxu1 %v10454_v19 }
 0x3f9   :  { %6996 = vmatpush3.bf16.msra.mxu1 %v9326_v17 }
 0x3fa   :  { %7001 = vmatprep.subr.bf16.mxu1 %v10454_v19 }
 0x400   :  { %6998 = vmatmul.mubr.msk.bf16.vlgmr.msra.gmra.mrb[20].mxu1 %vm512_vm5, %v3100_v27 }
 0x401   :  { %7002 = vmatpush3.bf16.msra.mxu1 %v9339_v34  ;;  %7005 = vmatprep.mubr.msk.bf16.mxu1 %vm8171_vm0, %v10454_v19 }
 0x402   :  { %7003 = vmatprep.subr.bf16.mxu1 %v10454_v19 }
 0x405   :  { %7004 = vmatpush3.bf16.msra.mxu1 %v9353_v22 }
 0x406   :  { %7297 = vmatprep.subr.bf16.mxu1 %v10454_v19 }
 0x40c   :  { %7006 = vmatmul.mubr.msk.bf16.vlgmr.msra.gmra.mrb[20].mxu1 %vm512_vm5, %v3144_v16 }
 0x4df   :  { %v3182_v49 = vpop.f32.mrb[20].mxu1 }
 0x4e0   :  { %v3200_v11 = vrot.slane %v3182_v49, 7  ;;  %v7007_v3 = vpop.f32.mrb[21].mxu1 }
 0x4e1   :  { %v3185_v1 = vpop.f32.mrb[22].mxu1 }
 0x4e2   :  { %v3203_v50 = vsel %vm3202_vm6, %v1930_v30, %v3200_v11  ;;  %v7008_v2 = vpop.f32.mrb[23].mxu1 }
 0x4e3   :  { %v9532_v58 = vadd.f32 %v6049_v40, %v3203_v50 }
 0x4e4   :  { %8166 = dma.done.wait [#allocation3], 12288 }
 0x4e5   :  { %8167 = vsyncadd [#allocation3], 4294955008  ;;  %7010 = vmatpush3.bf16.msra.mxu0 %v8273_v4  ;;  %7298 = vmatpush3.bf16.msra.mxu1 %v8273_v4  ;;  %v9553_v4 = vshrl.u32 %v8798_v33, 16  ;;  %v9556_v56 = vshrl.u32 %v8900_v10, 16  ;;  %v10462_v61 = vld [vmem:[#allocation30_spill] sm:$0xff]  ;;  %v10463_v55 = vld [vmem:[#allocation35_spill] sm:$0xff] }
 0x4e6   :  { %7011 = vmatprep.subr.bf16.mxu0 %v10454_v19  ;;  %7299 = vmatprep.subr.bf16.mxu1 %v10454_v19  ;;  %v10464_v53 = vld [vmem:[#allocation36_spill] sm:$0xff]  ;;  %v10465_v47 = vld [vmem:[#allocation37_spill] sm:$0xff]  ;;  %v10466_v62 = vld [vmem:[#allocation38_spill] sm:$0xff]  ;;  %vm5757_vm7 = vcmask 261120   ;;  %s8174_s19 = smov [#allocation4]  }
 0x4e7   :  { %7017 = vmatprep.mubr.msk.bf16.mxu0 %vm8171_vm0, %v10454_v19  ;;  %7305 = vmatprep.mubr.msk.bf16.mxu1 %vm8171_vm0, %v10454_v19  ;;  %v3390_v51 = vrot.slane %v9553_v4, 3  ;;  %v4539_v57 = vrot.slane %v9556_v56, 3  ;;  %v3444_v45 = vrot.slane %v9553_v4, 4  ;;  %v4583_v39 = vrot.slane %v9556_v56, 4  ;;  %v10467_v36 = vld [vmem:[#allocation43_spill] sm:$0xff]  ;;  %v10468_v29 = vld [vmem:[#allocation44_spill] sm:$0xff] }
 0x4e8   :  { %v10469_v17 = vld [vmem:[#allocation45_spill] sm:$0xff]  ;;  %v3498_v34 = vrot.slane %v9553_v4, 5  ;;  %v4627_v37 = vrot.slane %v9556_v56, 5  ;;  %v10470_v42 = vld [vmem:[#allocation46_spill] sm:$0xff]  ;;  %v10471_v22 = vld [vmem:[#allocation51_spill] sm:$0xff]  ;;  %v3552_v25 = vrot.slane %v9553_v4, 6 }
 0x4e9   :  { %7012 = vmatpush3.bf16.msra.mxu0 %v8278_v5  ;;  %7300 = vmatpush3.bf16.msra.mxu1 %v8278_v5  ;;  %v3282_v5 = vrot.slane %v9553_v4, 1  ;;  %v10472_v18 = vld [vmem:[#allocation52_spill] sm:$0xff]  ;;  %v10473_v31 = vld [vmem:[#allocation53_spill] sm:$0xff]  ;;  %v4671_v35 = vrot.slane %v9556_v56, 6  ;;  %v10474_v26 = vld [vmem:[#allocation54_spill] sm:$0xff]  ;;  %v3606_v41 = vrot.slane %v9553_v4, 7 }
 0x4ea   :  { %7013 = vmatprep.subr.bf16.mxu0 %v10454_v19  ;;  %7301 = vmatprep.subr.bf16.mxu1 %v10454_v19  ;;  %v10475_v48 = vld [vmem:[#allocation59_spill] sm:$0xff]  ;;  %v10476_v24 = vld [vmem:[#allocation60_spill] sm:$0xff]  ;;  %v10477_v32 = vld [vmem:[#allocation61_spill] sm:$0xff]  ;;  %v4715_v28 = vrot.slane %v9556_v56, 7 }
 0x4eb   :  { %v10478_v23 = vld [vmem:[#allocation62_spill] sm:$0xff]  ;;  %v10479_v43 = vld [vmem:[#allocation67_spill] sm:$0xff]  ;;  %v10480_v59 = vld [vmem:[#allocation68_spill] sm:$0xff] }
 0x4ec   :  { %v10481_v8 = vld [vmem:[#allocation69_spill] sm:$0xff]  ;;  %v10482_v63 = vld [vmem:[#allocation95_spill] sm:$0xff]  ;;  %v10483_v54 = vld [vmem:[#allocation96_spill] sm:$0xff] }
 0x4ed   :  { %7014 = vmatpush3.bf16.msra.mxu0 %v8283_v6  ;;  %7302 = vmatpush3.bf16.msra.mxu1 %v8283_v6  ;;  %v4451_v6 = vrot.slane %v9556_v56, 1  ;;  %v9751_v60 = vshrl.u32 %v10482_v63, 16  ;;  %v9754_v52 = vshrl.u32 %v10483_v54, 16  ;;  %v10484_v46 = vld [vmem:[#allocation70_spill] sm:$0xff]  ;;  %v10485_v30 = vld [vmem:[#allocation75_spill] sm:$0xff]  ;;  %v10486_v38 = vld [vmem:[#allocation76_spill] sm:$0xff] }
 0x4ee   :  { %7015 = vmatprep.subr.bf16.mxu0 %v10454_v19  ;;  %7303 = vmatprep.subr.bf16.mxu1 %v10454_v19  ;;  %v10487_v44 = vld [vmem:[#allocation77_spill] sm:$0xff]  ;;  %v10488_v27 = vld [vmem:[#allocation78_spill] sm:$0xff]  ;;  %v10489_v16 = vld [vmem:[#allocation83_spill] sm:$0xff] }
 0x4ef   :  { %v3716_v9 = vrot.slane %v9751_v60, 1  ;;  %v4805_v0 = vrot.slane %v9754_v52, 1  ;;  %v10490_v49 = vld [vmem:[#allocation84_spill] sm:$0xff]  ;;  %v10491_v11 = vld [vmem:[#allocation85_spill] sm:$0xff]  ;;  %v3770_v40 = vrot.slane %v9751_v60, 2  ;;  %v4849_v3 = vrot.slane %v9754_v52, 2 }
 0x4f0   :  { %v10492_v1 = vld [vmem:[#allocation86_spill] sm:$0xff]  ;;  %v10493_v50 = vld [vmem:[#allocation91_spill] sm:$0xff]  ;;  %v10494_v2 = vld [vmem:[#allocation92_spill] sm:$0xff] }
 0x4f1   :  { %7016 = vmatpush3.bf16.msra.mxu0 %v8288_v7  ;;  %7304 = vmatpush3.bf16.msra.mxu1 %v8288_v7  ;;  %v10457_v7 = vld [vmem:[#allocation21_spill] sm:$0xff] }
 0x4f2   :  { %7021 = vmatprep.subr.bf16.mxu0 %v10454_v19  ;;  %7309 = vmatprep.subr.bf16.mxu1 %v10454_v19 }
 0x4f4   :  { %7018 = vmatmul.mubr.msk.bf16.vlgmr.msra.gmra.mrb[12].mxu0 %vm399_vm2, %v9553_v4  ;;  %7306 = vmatmul.mubr.msk.bf16.vlgmr.msra.gmra.mrb[24].mxu1 %vm399_vm2, %v9556_v56 }
 0x4f5   :  { %7022 = vmatpush3.bf16.msra.mxu0 %v8313_v12  ;;  %7310 = vmatpush3.bf16.msra.mxu1 %v8313_v12  ;;  %v3336_v12 = vrot.slane %v9553_v4, 2  ;;  %v10495_v4 = vld [vmem:[#allocation93_spill] sm:$0xff] }
 0x4f6   :  { %7023 = vmatprep.subr.bf16.mxu0 %v10454_v19  ;;  %7311 = vmatprep.subr.bf16.mxu1 %v10454_v19 }
 0x4f7   :  { %7029 = vmatprep.mubr.msk.bf16.mxu0 %vm8171_vm0, %v10454_v19  ;;  %7317 = vmatprep.mubr.msk.bf16.mxu1 %vm8171_vm0, %v10454_v19 }
 0x4f9   :  { %7024 = vmatpush3.bf16.msra.mxu0 %v8318_v13  ;;  %7312 = vmatpush3.bf16.msra.mxu1 %v8318_v13  ;;  %v4495_v13 = vrot.slane %v9556_v56, 2  ;;  %v3824_v56 = vrot.slane %v9751_v60, 3 }
 0x4fa   :  { %7025 = vmatprep.subr.bf16.mxu0 %v10454_v19  ;;  %7313 = vmatprep.subr.bf16.mxu1 %v10454_v19 }
 0x4fd   :  { %7026 = vmatpush3.bf16.msra.mxu0 %v8323_v14  ;;  %7314 = vmatpush3.bf16.msra.mxu1 %v8323_v14  ;;  %v10458_v14 = vld [vmem:[#allocation22_spill] sm:$0xff] }
 0x4fe   :  { %7027 = vmatprep.subr.bf16.mxu0 %v10454_v19  ;;  %7315 = vmatprep.subr.bf16.mxu1 %v10454_v19 }
 0x501   :  { %7028 = vmatpush3.bf16.msra.mxu0 %v8328_v15  ;;  %7316 = vmatpush3.bf16.msra.mxu1 %v8328_v15  ;;  %v10459_v15 = vld [vmem:[#allocation27_spill] sm:$0xff] }
 0x502   :  { %7033 = vmatprep.subr.bf16.mxu0 %v10454_v19  ;;  %7321 = vmatprep.subr.bf16.mxu1 %v10454_v19 }
 0x504   :  { %7030 = vmatmul.mubr.msk.bf16.vlgmr.msra.gmra.mrb[12].mxu0 %vm399_vm2, %v3282_v5  ;;  %7318 = vmatmul.mubr.msk.bf16.vlgmr.msra.gmra.mrb[24].mxu1 %vm399_vm2, %v4451_v6  ;;  %v4893_v5 = vrot.slane %v9754_v52, 3  ;;  %v10496_v6 = vld [vmem:[#allocation94_spill] sm:$0xff] }
 0x505   :  { %7034 = vmatpush3.bf16.msra.mxu0 %v8353_v20  ;;  %7322 = vmatpush3.bf16.msra.mxu1 %v8353_v20  ;;  %v10460_v20 = vld [vmem:[#allocation28_spill] sm:$0xff] }
 0x506   :  { %7035 = vmatprep.subr.bf16.mxu0 %v10454_v19  ;;  %7323 = vmatprep.subr.bf16.mxu1 %v10454_v19 }
 0x507   :  { %7041 = vmatprep.mubr.msk.bf16.mxu0 %vm8171_vm0, %v10454_v19  ;;  %7329 = vmatprep.mubr.msk.bf16.mxu1 %vm8171_vm0, %v10454_v19 }
 0x509   :  { %7036 = vmatpush3.bf16.msra.mxu0 %v8358_v21  ;;  %7324 = vmatpush3.bf16.msra.mxu1 %v8358_v21  ;;  %v10461_v21 = vld [vmem:[#allocation29_spill] sm:$0xff] }
 0x50a   :  { %7037 = vmatprep.subr.bf16.mxu0 %v10454_v19  ;;  %7325 = vmatprep.subr.bf16.mxu1 %v10454_v19 }
 0x50d   :  { %7038 = vmatpush3.bf16.msra.mxu0 %v10457_v7  ;;  %7326 = vmatpush3.bf16.msra.mxu1 %v10457_v7  ;;  %v10497_v7 = vld [vmem:[#allocation9_spill] sm:$0xff] }
 0x50e   :  { %7039 = vmatprep.subr.bf16.mxu0 %v10454_v19  ;;  %7327 = vmatprep.subr.bf16.mxu1 %v10454_v19 }
 0x511   :  { %7040 = vmatpush3.bf16.msra.mxu0 %v10458_v14  ;;  %7328 = vmatpush3.bf16.msra.mxu1 %v10458_v14  ;;  %v10500_v14 = vld [vmem:[#allocation12_spill] sm:$0xff] }
 0x512   :  { %7045 = vmatprep.subr.bf16.mxu0 %v10454_v19  ;;  %7333 = vmatprep.subr.bf16.mxu1 %v10454_v19 }
 0x514   :  { %7042 = vmatmul.mubr.msk.bf16.vlgmr.msra.gmra.mrb[12].mxu0 %vm399_vm2, %v3336_v12  ;;  %7330 = vmatmul.mubr.msk.bf16.vlgmr.msra.gmra.mrb[24].mxu1 %vm399_vm2, %v4495_v13  ;;  %v10498_v12 = vld [vmem:[#allocation10_spill] sm:$0xff]  ;;  %v10499_v13 = vld [vmem:[#allocation11_spill] sm:$0xff] }
 0x515   :  { %7046 = vmatpush3.bf16.msra.mxu0 %v10459_v15  ;;  %7334 = vmatpush3.bf16.msra.mxu1 %v10459_v15  ;;  %v10501_v15 = vld [vmem:[#allocation13_spill] sm:$0xff] }
 0x516   :  { %7047 = vmatprep.subr.bf16.mxu0 %v10454_v19  ;;  %7335 = vmatprep.subr.bf16.mxu1 %v10454_v19 }
 0x517   :  { %7053 = vmatprep.mubr.msk.bf16.mxu0 %vm8171_vm0, %v10454_v19  ;;  %7341 = vmatprep.mubr.msk.bf16.mxu1 %vm8171_vm0, %v10454_v19 }
 0x519   :  { %7048 = vmatpush3.bf16.msra.mxu0 %v10460_v20  ;;  %7336 = vmatpush3.bf16.msra.mxu1 %v10460_v20  ;;  %v10502_v20 = vld [vmem:[#allocation14_spill] sm:$0xff] }
 0x51a   :  { %7049 = vmatprep.subr.bf16.mxu0 %v10454_v19  ;;  %7337 = vmatprep.subr.bf16.mxu1 %v10454_v19 }
 0x51d   :  { %7050 = vmatpush3.bf16.msra.mxu0 %v10461_v21  ;;  %7338 = vmatpush3.bf16.msra.mxu1 %v10461_v21  ;;  %v10503_v21 = vld [vmem:[#allocation15_spill] sm:$0xff] }
 0x51e   :  { %7051 = vmatprep.subr.bf16.mxu0 %v10454_v19  ;;  %7339 = vmatprep.subr.bf16.mxu1 %v10454_v19 }
 0x521   :  { %7052 = vmatpush3.bf16.msra.mxu0 %v10462_v61  ;;  %7340 = vmatpush3.bf16.msra.mxu1 %v10462_v61  ;;  %v10504_v61 = vld [vmem:[#allocation16_spill] sm:$0xff] }
 0x522   :  { %7057 = vmatprep.subr.bf16.mxu0 %v10454_v19  ;;  %7345 = vmatprep.subr.bf16.mxu1 %v10454_v19 }
 0x524   :  { %7054 = vmatmul.mubr.msk.bf16.vlgmr.msra.gmra.mrb[12].mxu0 %vm399_vm2, %v3390_v51  ;;  %7342 = vmatmul.mubr.msk.bf16.vlgmr.msra.gmra.mrb[24].mxu1 %vm399_vm2, %v4539_v57  ;;  %v3911_v51 = vrot.slane %v8798_v33, 1  ;;  %v4980_v57 = vrot.slane %v8900_v10, 1 }
 0x525   :  { %7058 = vmatpush3.bf16.msra.mxu0 %v10463_v55  ;;  %7346 = vmatpush3.bf16.msra.mxu1 %v10463_v55  ;;  %v10505_v55 = vld [vmem:[#allocation17_spill] sm:$0xff] }
 0x526   :  { %7059 = vmatprep.subr.bf16.mxu0 %v10454_v19  ;;  %7347 = vmatprep.subr.bf16.mxu1 %v10454_v19 }
 0x527   :  { %7065 = vmatprep.mubr.msk.bf16.mxu0 %vm8171_vm0, %v10454_v19  ;;  %7353 = vmatprep.mubr.msk.bf16.mxu1 %vm8171_vm0, %v10454_v19 }
 0x529   :  { %7060 = vmatpush3.bf16.msra.mxu0 %v10464_v53  ;;  %7348 = vmatpush3.bf16.msra.mxu1 %v10464_v53  ;;  %v10506_v53 = vld [vmem:[#allocation18_spill] sm:$0xff] }
 0x52a   :  { %7061 = vmatprep.subr.bf16.mxu0 %v10454_v19  ;;  %7349 = vmatprep.subr.bf16.mxu1 %v10454_v19 }
 0x52d   :  { %7062 = vmatpush3.bf16.msra.mxu0 %v10465_v47  ;;  %7350 = vmatpush3.bf16.msra.mxu1 %v10465_v47  ;;  %v10507_v47 = vld [vmem:[#allocation19_spill] sm:$0xff] }
 0x52e   :  { %7063 = vmatprep.subr.bf16.mxu0 %v10454_v19  ;;  %7351 = vmatprep.subr.bf16.mxu1 %v10454_v19 }
 0x531   :  { %7064 = vmatpush3.bf16.msra.mxu0 %v10466_v62  ;;  %7352 = vmatpush3.bf16.msra.mxu1 %v10466_v62  ;;  %v10508_v62 = vld [vmem:[#allocation20_spill] sm:$0xff] }
 0x532   :  { %7069 = vmatprep.subr.bf16.mxu0 %v10454_v19  ;;  %7357 = vmatprep.subr.bf16.mxu1 %v10454_v19 }
 0x534   :  { %7066 = vmatmul.mubr.msk.bf16.vlgmr.msra.gmra.mrb[12].mxu0 %vm399_vm2, %v3444_v45  ;;  %7354 = vmatmul.mubr.msk.bf16.vlgmr.msra.gmra.mrb[24].mxu1 %vm399_vm2, %v4583_v39  ;;  %v3955_v45 = vrot.slane %v8798_v33, 2  ;;  %v5024_v39 = vrot.slane %v8900_v10, 2 }
 0x535   :  { %7070 = vmatpush3.bf16.msra.mxu0 %v10467_v36  ;;  %7358 = vmatpush3.bf16.msra.mxu1 %v10467_v36  ;;  %v10509_v36 = vld [vmem:[#allocation23_spill] sm:$0xff] }
 0x536   :  { %7071 = vmatprep.subr.bf16.mxu0 %v10454_v19  ;;  %7359 = vmatprep.subr.bf16.mxu1 %v10454_v19 }
 0x537   :  { %7077 = vmatprep.mubr.msk.bf16.mxu0 %vm8171_vm0, %v10454_v19  ;;  %7365 = vmatprep.mubr.msk.bf16.mxu1 %vm8171_vm0, %v10454_v19 }
 0x539   :  { %7072 = vmatpush3.bf16.msra.mxu0 %v10468_v29  ;;  %7360 = vmatpush3.bf16.msra.mxu1 %v10468_v29  ;;  %v10510_v29 = vld [vmem:[#allocation24_spill] sm:$0xff] }
 0x53a   :  { %7073 = vmatprep.subr.bf16.mxu0 %v10454_v19  ;;  %7361 = vmatprep.subr.bf16.mxu1 %v10454_v19 }
 0x53d   :  { %7074 = vmatpush3.bf16.msra.mxu0 %v10469_v17  ;;  %7362 = vmatpush3.bf16.msra.mxu1 %v10469_v17  ;;  %v10511_v17 = vld [vmem:[#allocation25_spill] sm:$0xff] }
 0x53e   :  { %7075 = vmatprep.subr.bf16.mxu0 %v10454_v19  ;;  %7363 = vmatprep.subr.bf16.mxu1 %v10454_v19 }
 0x541   :  { %7076 = vmatpush3.bf16.msra.mxu0 %v10470_v42  ;;  %7364 = vmatpush3.bf16.msra.mxu1 %v10470_v42  ;;  %v10512_v42 = vld [vmem:[#allocation26_spill] sm:$0xff] }
 0x542   :  { %7081 = vmatprep.subr.bf16.mxu0 %v10454_v19  ;;  %7369 = vmatprep.subr.bf16.mxu1 %v10454_v19 }
 0x544   :  { %7078 = vmatmul.mubr.msk.bf16.vlgmr.msra.gmra.mrb[12].mxu0 %vm399_vm2, %v3498_v34  ;;  %7366 = vmatmul.mubr.msk.bf16.vlgmr.msra.gmra.mrb[24].mxu1 %vm399_vm2, %v4627_v37  ;;  %v3999_v34 = vrot.slane %v8798_v33, 3  ;;  %v5068_v37 = vrot.slane %v8900_v10, 3 }
 0x545   :  { %7082 = vmatpush3.bf16.msra.mxu0 %v10471_v22  ;;  %7370 = vmatpush3.bf16.msra.mxu1 %v10471_v22  ;;  %v10513_v22 = vld [vmem:[#allocation31_spill] sm:$0xff] }
 0x546   :  { %7083 = vmatprep.subr.bf16.mxu0 %v10454_v19  ;;  %7371 = vmatprep.subr.bf16.mxu1 %v10454_v19 }
 0x547   :  { %7089 = vmatprep.mubr.msk.bf16.mxu0 %vm8171_vm0, %v10454_v19  ;;  %7377 = vmatprep.mubr.msk.bf16.mxu1 %vm8171_vm0, %v10454_v19 }
 0x549   :  { %7084 = vmatpush3.bf16.msra.mxu0 %v10472_v18  ;;  %7372 = vmatpush3.bf16.msra.mxu1 %v10472_v18  ;;  %v10514_v18 = vld [vmem:[#allocation32_spill] sm:$0xff] }
 0x54a   :  { %7085 = vmatprep.subr.bf16.mxu0 %v10454_v19  ;;  %7373 = vmatprep.subr.bf16.mxu1 %v10454_v19 }
 0x54d   :  { %7086 = vmatpush3.bf16.msra.mxu0 %v10473_v31  ;;  %7374 = vmatpush3.bf16.msra.mxu1 %v10473_v31  ;;  %v10515_v31 = vld [vmem:[#allocation33_spill] sm:$0xff] }
 0x54e   :  { %7087 = vmatprep.subr.bf16.mxu0 %v10454_v19  ;;  %7375 = vmatprep.subr.bf16.mxu1 %v10454_v19 }
 0x551   :  { %7088 = vmatpush3.bf16.msra.mxu0 %v10474_v26  ;;  %7376 = vmatpush3.bf16.msra.mxu1 %v10474_v26  ;;  %v10516_v26 = vld [vmem:[#allocation34_spill] sm:$0xff] }
 0x552   :  { %7093 = vmatprep.subr.bf16.mxu0 %v10454_v19  ;;  %7381 = vmatprep.subr.bf16.mxu1 %v10454_v19 }
 0x554   :  { %7090 = vmatmul.mubr.msk.bf16.vlgmr.msra.gmra.mrb[12].mxu0 %vm399_vm2, %v3552_v25  ;;  %7378 = vmatmul.mubr.msk.bf16.vlgmr.msra.gmra.mrb[24].mxu1 %vm399_vm2, %v4671_v35  ;;  %v4043_v25 = vrot.slane %v8798_v33, 4  ;;  %v5112_v35 = vrot.slane %v8900_v10, 4 }
 0x555   :  { %7094 = vmatpush3.bf16.msra.mxu0 %v10475_v48  ;;  %7382 = vmatpush3.bf16.msra.mxu1 %v10475_v48  ;;  %v10517_v48 = vld [vmem:[#allocation39_spill] sm:$0xff] }
 0x556   :  { %7095 = vmatprep.subr.bf16.mxu0 %v10454_v19  ;;  %7383 = vmatprep.subr.bf16.mxu1 %v10454_v19 }
 0x557   :  { %7101 = vmatprep.mubr.msk.bf16.mxu0 %vm8171_vm0, %v10454_v19  ;;  %7389 = vmatprep.mubr.msk.bf16.mxu1 %vm8171_vm0, %v10454_v19 }
 0x559   :  { %7096 = vmatpush3.bf16.msra.mxu0 %v10476_v24  ;;  %7384 = vmatpush3.bf16.msra.mxu1 %v10476_v24  ;;  %v10518_v24 = vld [vmem:[#allocation40_spill] sm:$0xff] }
 0x55a   :  { %7097 = vmatprep.subr.bf16.mxu0 %v10454_v19  ;;  %7385 = vmatprep.subr.bf16.mxu1 %v10454_v19 }
 0x55d   :  { %7098 = vmatpush3.bf16.msra.mxu0 %v10477_v32  ;;  %7386 = vmatpush3.bf16.msra.mxu1 %v10477_v32  ;;  %v10519_v32 = vld [vmem:[#allocation41_spill] sm:$0xff] }
 0x55e   :  { %7099 = vmatprep.subr.bf16.mxu0 %v10454_v19  ;;  %7387 = vmatprep.subr.bf16.mxu1 %v10454_v19 }
 0x561   :  { %7100 = vmatpush3.bf16.msra.mxu0 %v10478_v23  ;;  %7388 = vmatpush3.bf16.msra.mxu1 %v10478_v23  ;;  %v10520_v23 = vld [vmem:[#allocation42_spill] sm:$0xff] }
 0x562   :  { %7105 = vmatprep.subr.bf16.mxu0 %v10454_v19  ;;  %7393 = vmatprep.subr.bf16.mxu1 %v10454_v19 }
 0x564   :  { %7102 = vmatmul.mubr.msk.bf16.vlgmr.msra.gmra.mrb[12].mxu0 %vm399_vm2, %v3606_v41  ;;  %7390 = vmatmul.mubr.msk.bf16.vlgmr.msra.gmra.mrb[24].mxu1 %vm399_vm2, %v4715_v28  ;;  %v4087_v41 = vrot.slane %v8798_v33, 5  ;;  %v5156_v28 = vrot.slane %v8900_v10, 5 }
 0x565   :  { %7106 = vmatpush3.bf16.msra.mxu0 %v10479_v43  ;;  %7394 = vmatpush3.bf16.msra.mxu1 %v10479_v43  ;;  %v10521_v43 = vld [vmem:[#allocation47_spill] sm:$0xff] }
 0x566   :  { %7107 = vmatprep.subr.bf16.mxu0 %v10454_v19  ;;  %7395 = vmatprep.subr.bf16.mxu1 %v10454_v19 }
 0x567   :  { %7113 = vmatprep.mubr.msk.bf16.mxu0 %vm8171_vm0, %v10454_v19  ;;  %7401 = vmatprep.mubr.msk.bf16.mxu1 %vm8171_vm0, %v10454_v19 }
 0x569   :  { %7108 = vmatpush3.bf16.msra.mxu0 %v10480_v59  ;;  %7396 = vmatpush3.bf16.msra.mxu1 %v10480_v59  ;;  %v10522_v59 = vld [vmem:[#allocation48_spill] sm:$0xff] }
 0x56a   :  { %7109 = vmatprep.subr.bf16.mxu0 %v10454_v19  ;;  %7397 = vmatprep.subr.bf16.mxu1 %v10454_v19 }
 0x56d   :  { %7110 = vmatpush3.bf16.msra.mxu0 %v10481_v8  ;;  %7398 = vmatpush3.bf16.msra.mxu1 %v10481_v8  ;;  %v10523_v8 = vld [vmem:[#allocation49_spill] sm:$0xff] }
 0x56e   :  { %7111 = vmatprep.subr.bf16.mxu0 %v10454_v19  ;;  %7399 = vmatprep.subr.bf16.mxu1 %v10454_v19 }
 0x571   :  { %7112 = vmatpush3.bf16.msra.mxu0 %v10484_v46  ;;  %7400 = vmatpush3.bf16.msra.mxu1 %v10484_v46  ;;  %v10524_v46 = vld [vmem:[#allocation50_spill] sm:$0xff] }
 0x572   :  { %7117 = vmatprep.subr.bf16.mxu0 %v10454_v19  ;;  %7405 = vmatprep.subr.bf16.mxu1 %v10454_v19 }
 0x574   :  { %7114 = vmatmul.mubr.msk.bf16.vlgmr.msra.gmra.mrb[12].mxu0 %vm399_vm2, %v9751_v60  ;;  %7402 = vmatmul.mubr.msk.bf16.vlgmr.msra.gmra.mrb[24].mxu1 %vm399_vm2, %v9754_v52  ;;  %v4131_v60 = vrot.slane %v8798_v33, 6  ;;  %v5200_v52 = vrot.slane %v8900_v10, 6 }
 0x575   :  { %7118 = vmatpush3.bf16.msra.mxu0 %v10485_v30  ;;  %7406 = vmatpush3.bf16.msra.mxu1 %v10485_v30  ;;  %v10525_v30 = vld [vmem:[#allocation55_spill] sm:$0xff] }
 0x576   :  { %7119 = vmatprep.subr.bf16.mxu0 %v10454_v19  ;;  %7407 = vmatprep.subr.bf16.mxu1 %v10454_v19 }
 0x577   :  { %7125 = vmatprep.mubr.msk.bf16.mxu0 %vm8171_vm0, %v10454_v19  ;;  %7413 = vmatprep.mubr.msk.bf16.mxu1 %vm8171_vm0, %v10454_v19 }
 0x579   :  { %7120 = vmatpush3.bf16.msra.mxu0 %v10486_v38  ;;  %7408 = vmatpush3.bf16.msra.mxu1 %v10486_v38  ;;  %v10526_v38 = vld [vmem:[#allocation56_spill] sm:$0xff] }
 0x57a   :  { %7121 = vmatprep.subr.bf16.mxu0 %v10454_v19  ;;  %7409 = vmatprep.subr.bf16.mxu1 %v10454_v19 }
 0x57d   :  { %7122 = vmatpush3.bf16.msra.mxu0 %v10487_v44  ;;  %7410 = vmatpush3.bf16.msra.mxu1 %v10487_v44  ;;  %v10527_v44 = vld [vmem:[#allocation57_spill] sm:$0xff] }
 0x57e   :  { %7123 = vmatprep.subr.bf16.mxu0 %v10454_v19  ;;  %7411 = vmatprep.subr.bf16.mxu1 %v10454_v19 }
 0x581   :  { %7124 = vmatpush3.bf16.msra.mxu0 %v10488_v27  ;;  %7412 = vmatpush3.bf16.msra.mxu1 %v10488_v27  ;;  %v10528_v27 = vld [vmem:[#allocation58_spill] sm:$0xff] }
 0x582   :  { %7129 = vmatprep.subr.bf16.mxu0 %v10454_v19  ;;  %7417 = vmatprep.subr.bf16.mxu1 %v10454_v19 }
 0x584   :  { %7126 = vmatmul.mubr.msk.bf16.vlgmr.msra.gmra.mrb[12].mxu0 %vm399_vm2, %v3716_v9  ;;  %7414 = vmatmul.mubr.msk.bf16.vlgmr.msra.gmra.mrb[24].mxu1 %vm399_vm2, %v4805_v0  ;;  %v4175_v9 = vrot.slane %v8798_v33, 7  ;;  %v5244_v0 = vrot.slane %v8900_v10, 7 }
 0x585   :  { %7130 = vmatpush3.bf16.msra.mxu0 %v10489_v16  ;;  %7418 = vmatpush3.bf16.msra.mxu1 %v10489_v16  ;;  %v10529_v16 = vld [vmem:[#allocation63_spill] sm:$0xff] }
 0x586   :  { %7131 = vmatprep.subr.bf16.mxu0 %v10454_v19  ;;  %7419 = vmatprep.subr.bf16.mxu1 %v10454_v19 }
 0x587   :  { %7137 = vmatprep.mubr.msk.bf16.mxu0 %vm8171_vm0, %v10454_v19  ;;  %7425 = vmatprep.mubr.msk.bf16.mxu1 %vm8171_vm0, %v10454_v19 }
 0x589   :  { %7132 = vmatpush3.bf16.msra.mxu0 %v10490_v49  ;;  %7420 = vmatpush3.bf16.msra.mxu1 %v10490_v49  ;;  %v10532_v49 = vld [vmem:[#allocation66_spill] sm:$0xff] }
 0x58a   :  { %7133 = vmatprep.subr.bf16.mxu0 %v10454_v19  ;;  %7421 = vmatprep.subr.bf16.mxu1 %v10454_v19 }
 0x58d   :  { %7134 = vmatpush3.bf16.msra.mxu0 %v10491_v11  ;;  %7422 = vmatpush3.bf16.msra.mxu1 %v10491_v11  ;;  %v10533_v11 = vld [vmem:[#allocation71_spill] sm:$0xff] }
 0x58e   :  { %7135 = vmatprep.subr.bf16.mxu0 %v10454_v19  ;;  %7423 = vmatprep.subr.bf16.mxu1 %v10454_v19 }
 0x591   :  { %7136 = vmatpush3.bf16.msra.mxu0 %v10492_v1  ;;  %7424 = vmatpush3.bf16.msra.mxu1 %v10492_v1  ;;  %v4262_v1 = vrot.slane %v10482_v63, 1 }
 0x592   :  { %7141 = vmatprep.subr.bf16.mxu0 %v10454_v19  ;;  %7429 = vmatprep.subr.bf16.mxu1 %v10454_v19 }
 0x594   :  { %7138 = vmatmul.mubr.msk.bf16.vlgmr.msra.gmra.mrb[12].mxu0 %vm399_vm2, %v3770_v40  ;;  %7426 = vmatmul.mubr.msk.bf16.vlgmr.msra.gmra.mrb[24].mxu1 %vm399_vm2, %v4849_v3  ;;  %v10534_v40 = vld [vmem:[#allocation72_spill] sm:$0xff]  ;;  %v10535_v3 = vld [vmem:[#allocation73_spill] sm:$0xff] }
 0x595   :  { %7142 = vmatpush3.bf16.msra.mxu0 %v10493_v50  ;;  %7430 = vmatpush3.bf16.msra.mxu1 %v10493_v50  ;;  %v5331_v50 = vrot.slane %v10483_v54, 1 }
 0x596   :  { %7143 = vmatprep.subr.bf16.mxu0 %v10454_v19  ;;  %7431 = vmatprep.subr.bf16.mxu1 %v10454_v19 }
 0x597   :  { %7149 = vmatprep.mubr.msk.bf16.mxu0 %vm8171_vm0, %v10454_v19  ;;  %7437 = vmatprep.mubr.msk.bf16.mxu1 %vm8171_vm0, %v10454_v19 }
 0x599   :  { %7144 = vmatpush3.bf16.msra.mxu0 %v10494_v2  ;;  %7432 = vmatpush3.bf16.msra.mxu1 %v10494_v2  ;;  %v10536_v2 = vld [vmem:[#allocation74_spill] sm:$0xff] }
 0x59a   :  { %7145 = vmatprep.subr.bf16.mxu0 %v10454_v19  ;;  %7433 = vmatprep.subr.bf16.mxu1 %v10454_v19 }
 0x59d   :  { %7146 = vmatpush3.bf16.msra.mxu0 %v10495_v4  ;;  %7434 = vmatpush3.bf16.msra.mxu1 %v10495_v4  ;;  %v10537_v4 = vld [vmem:[#allocation79_spill] sm:$0xff] }
 0x59e   :  { %7147 = vmatprep.subr.bf16.mxu0 %v10454_v19  ;;  %7435 = vmatprep.subr.bf16.mxu1 %v10454_v19 }
 0x5a1   :  { %7148 = vmatpush3.bf16.msra.mxu0 %v10496_v6  ;;  %7436 = vmatpush3.bf16.msra.mxu1 %v10496_v6  ;;  %v4306_v6 = vrot.slane %v10482_v63, 2 }
 0x5a2   :  { %7153 = vmatprep.subr.bf16.mxu0 %v10454_v19  ;;  %7441 = vmatprep.subr.bf16.mxu1 %v10454_v19 }
 0x5a4   :  { %7150 = vmatmul.mubr.msk.bf16.vlgmr.msra.gmra.mrb[12].mxu0 %vm399_vm2, %v3824_v56  ;;  %7438 = vmatmul.mubr.msk.bf16.vlgmr.msra.gmra.mrb[24].mxu1 %vm399_vm2, %v4893_v5  ;;  %v10538_v56 = vld [vmem:[#allocation80_spill] sm:$0xff]  ;;  %v10539_v5 = vld [vmem:[#allocation81_spill] sm:$0xff] }
 0x5a5   :  { %7154 = vmatpush3.bf16.msra.mxu0 %v10497_v7  ;;  %7442 = vmatpush3.bf16.msra.mxu1 %v10497_v7  ;;  %v5375_v7 = vrot.slane %v10483_v54, 2 }
 0x5a6   :  { %7155 = vmatprep.subr.bf16.mxu0 %v10454_v19  ;;  %7443 = vmatprep.subr.bf16.mxu1 %v10454_v19 }
 0x5a7   :  { %7161 = vmatprep.mubr.msk.bf16.mxu0 %vm8171_vm0, %v10454_v19  ;;  %7449 = vmatprep.mubr.msk.bf16.mxu1 %vm8171_vm0, %v10454_v19 }
 0x5a9   :  { %7156 = vmatpush3.bf16.msra.mxu0 %v10498_v12  ;;  %7444 = vmatpush3.bf16.msra.mxu1 %v10498_v12  ;;  %v10540_v12 = vld [vmem:[#allocation82_spill] sm:$0xff] }
 0x5aa   :  { %7157 = vmatprep.subr.bf16.mxu0 %v10454_v19  ;;  %7445 = vmatprep.subr.bf16.mxu1 %v10454_v19 }
 0x5ad   :  { %7158 = vmatpush3.bf16.msra.mxu0 %v10499_v13  ;;  %7446 = vmatpush3.bf16.msra.mxu1 %v10499_v13  ;;  %v10541_v13 = vld [vmem:[#allocation87_spill] sm:$0xff] }
 0x5ae   :  { %7159 = vmatprep.subr.bf16.mxu0 %v10454_v19  ;;  %7447 = vmatprep.subr.bf16.mxu1 %v10454_v19 }
 0x5b1   :  { %7160 = vmatpush3.bf16.msra.mxu0 %v10500_v14  ;;  %7448 = vmatpush3.bf16.msra.mxu1 %v10500_v14  ;;  %v10542_v14 = vld [vmem:[#allocation88_spill] sm:$0xff] }
 0x5b2   :  { %7165 = vmatprep.subr.bf16.mxu0 %v10454_v19  ;;  %7453 = vmatprep.subr.bf16.mxu1 %v10454_v19 }
 0x5b4   :  { %7162 = vmatmul.mubr.msk.bf16.vlgmr.msra.gmra.mrb[12].mxu0 %vm399_vm2, %v8798_v33  ;;  %7450 = vmatmul.mubr.msk.bf16.vlgmr.msra.gmra.mrb[24].mxu1 %vm399_vm2, %v8900_v10  ;;  %v10530_v33 = vld [vmem:[#allocation64_spill] sm:$0xff]  ;;  %v10531_v10 = vld [vmem:[#allocation65_spill] sm:$0xff] }
 0x5b5   :  { %7166 = vmatpush3.bf16.msra.mxu0 %v10501_v15  ;;  %7454 = vmatpush3.bf16.msra.mxu1 %v10501_v15  ;;  %v10543_v15 = vld [vmem:[#allocation89_spill] sm:$0xff] }
 0x5b6   :  { %7167 = vmatprep.subr.bf16.mxu0 %v10454_v19  ;;  %7455 = vmatprep.subr.bf16.mxu1 %v10454_v19 }
 0x5b7   :  { %7173 = vmatprep.mubr.msk.bf16.mxu0 %vm8171_vm0, %v10454_v19  ;;  %7461 = vmatprep.mubr.msk.bf16.mxu1 %vm8171_vm0, %v10454_v19 }
 0x5b9   :  { %7168 = vmatpush3.bf16.msra.mxu0 %v10502_v20  ;;  %7456 = vmatpush3.bf16.msra.mxu1 %v10502_v20  ;;  %v5494_v20 = vld [vmem:[%s10265_s8] sm:$0xff] }
 0x5ba   :  { %7169 = vmatprep.subr.bf16.mxu0 %v10454_v19  ;;  %7457 = vmatprep.subr.bf16.mxu1 %v10454_v19 }
 0x5bd   :  { %7170 = vmatpush3.bf16.msra.mxu0 %v10503_v21  ;;  %7458 = vmatpush3.bf16.msra.mxu1 %v10503_v21  ;;  %v5495_v21 = vld [vmem:[%s10265_s8 + $0x8] sm:$0xff] }
 0x5be   :  { %7171 = vmatprep.subr.bf16.mxu0 %v10454_v19  ;;  %7459 = vmatprep.subr.bf16.mxu1 %v10454_v19 }
 0x5c1   :  { %7172 = vmatpush3.bf16.msra.mxu0 %v10504_v61  ;;  %7460 = vmatpush3.bf16.msra.mxu1 %v10504_v61  ;;  %v10544_v61 = vld [vmem:[#allocation90_spill] sm:$0xff] }
 0x5c2   :  { %7177 = vmatprep.subr.bf16.mxu0 %v10454_v19  ;;  %7465 = vmatprep.subr.bf16.mxu1 %v10454_v19 }
 0x5c4   :  { %7174 = vmatmul.mubr.msk.bf16.vlgmr.msra.gmra.mrb[12].mxu0 %vm399_vm2, %v3911_v51  ;;  %7462 = vmatmul.mubr.msk.bf16.vlgmr.msra.gmra.mrb[24].mxu1 %vm399_vm2, %v4980_v57  ;;  %v4350_v51 = vrot.slane %v10482_v63, 3  ;;  %v5419_v57 = vrot.slane %v10483_v54, 3 }
 0x5c5   :  { %7178 = vmatpush3.bf16.msra.mxu0 %v10505_v55  ;;  %7466 = vmatpush3.bf16.msra.mxu1 %v10505_v55  ;;  %v7680_v55 = vpack.c.bf16 %v5495_v21, %v5494_v20  ;;  %v5749_v20 = vld [vmem:[%s10269_s12 + $0x18] sm:$0xff] }
 0x5c6   :  { %7179 = vmatprep.subr.bf16.mxu0 %v10454_v19  ;;  %7467 = vmatprep.subr.bf16.mxu1 %v10454_v19 }
 0x5c7   :  { %7185 = vmatprep.mubr.msk.bf16.mxu0 %vm8171_vm0, %v10454_v19  ;;  %7473 = vmatprep.mubr.msk.bf16.mxu1 %vm8171_vm0, %v10454_v19 }
 0x5c9   :  { %7180 = vmatpush3.bf16.msra.mxu0 %v10506_v53  ;;  %7468 = vmatpush3.bf16.msra.mxu1 %v10506_v53  ;;  %v10545_v53 = vmov 0.0|0.0  }
 0x5ca   :  { %7181 = vmatprep.subr.bf16.mxu0 %v10454_v19  ;;  %7469 = vmatprep.subr.bf16.mxu1 %v10454_v19 }
 0x5cd   :  { %7182 = vmatpush3.bf16.msra.mxu0 %v10507_v47  ;;  %7470 = vmatpush3.bf16.msra.mxu1 %v10507_v47  ;;  %v5496_v47 = vld [vmem:[%s10265_s8 + $0x10] sm:$0xff] }
 0x5ce   :  { %7183 = vmatprep.subr.bf16.mxu0 %v10454_v19  ;;  %7471 = vmatprep.subr.bf16.mxu1 %v10454_v19 }
 0x5d1   :  { %7184 = vmatpush3.bf16.msra.mxu0 %v10508_v62  ;;  %7472 = vmatpush3.bf16.msra.mxu1 %v10508_v62 }
 0x5d2   :  { %7189 = vmatprep.subr.bf16.mxu0 %v10454_v19  ;;  %7477 = vmatprep.subr.bf16.mxu1 %v10454_v19 }
 0x5d4   :  { %7186 = vmatmul.mubr.msk.bf16.vlgmr.msra.gmra.mrb[12].mxu0 %vm399_vm2, %v3955_v45  ;;  %7474 = vmatmul.mubr.msk.bf16.vlgmr.msra.gmra.mrb[24].mxu1 %vm399_vm2, %v5024_v39  ;;  %v5497_v45 = vld [vmem:[%s10265_s8 + $0x18] sm:$0xff]  ;;  %v5499_v39 = vld [vmem:[%s10265_s8 + $0x28] sm:$0xff] }
 0x5d5   :  { %7190 = vmatpush3.bf16.msra.mxu0 %v10509_v36  ;;  %7478 = vmatpush3.bf16.msra.mxu1 %v10509_v36  ;;  %v5500_v36 = vld [vmem:[%s10265_s8 + $0x30] sm:$0xff] }
 0x5d6   :  { %7191 = vmatprep.subr.bf16.mxu0 %v10454_v19  ;;  %7479 = vmatprep.subr.bf16.mxu1 %v10454_v19 }
 0x5d7   :  { %7197 = vmatprep.mubr.msk.bf16.mxu0 %vm8171_vm0, %v10454_v19  ;;  %7485 = vmatprep.mubr.msk.bf16.mxu1 %vm8171_vm0, %v10454_v19 }
 0x5d9   :  { %7192 = vmatpush3.bf16.msra.mxu0 %v10510_v29  ;;  %7480 = vmatpush3.bf16.msra.mxu1 %v10510_v29  ;;  %v5501_v29 = vld [vmem:[%s10265_s8 + $0x38] sm:$0xff] }
 0x5da   :  { %7193 = vmatprep.subr.bf16.mxu0 %v10454_v19  ;;  %7481 = vmatprep.subr.bf16.mxu1 %v10454_v19 }
 0x5dd   :  { %7194 = vmatpush3.bf16.msra.mxu0 %v10511_v17  ;;  %7482 = vmatpush3.bf16.msra.mxu1 %v10511_v17  ;;  %v7689_v17 = vpack.c.bf16 %v5501_v29, %v5500_v36 }
 0x5de   :  { %7195 = vmatprep.subr.bf16.mxu0 %v10454_v19  ;;  %7483 = vmatprep.subr.bf16.mxu1 %v10454_v19 }
 0x5e1   :  { %7196 = vmatpush3.bf16.msra.mxu0 %v10512_v42  ;;  %7484 = vmatpush3.bf16.msra.mxu1 %v10512_v42  ;;  %v5486_v42 = vld [vmem:[%s10264_s7] sm:$0xff] }
 0x5e2   :  { %7201 = vmatprep.subr.bf16.mxu0 %v10454_v19  ;;  %7489 = vmatprep.subr.bf16.mxu1 %v10454_v19 }
 0x5e4   :  { %7198 = vmatmul.mubr.msk.bf16.vlgmr.msra.gmra.mrb[12].mxu0 %vm399_vm2, %v3999_v34  ;;  %7486 = vmatmul.mubr.msk.bf16.vlgmr.msra.gmra.mrb[24].mxu1 %vm399_vm2, %v5068_v37 }
 0x5e5   :  { %7202 = vmatpush3.bf16.msra.mxu0 %v10513_v22  ;;  %7490 = vmatpush3.bf16.msra.mxu1 %v10513_v22  ;;  %v5487_v22 = vld [vmem:[%s10264_s7 + $0x8] sm:$0xff] }
 0x5e6   :  { %7203 = vmatprep.subr.bf16.mxu0 %v10454_v19  ;;  %7491 = vmatprep.subr.bf16.mxu1 %v10454_v19 }
 0x5e7   :  { %7209 = vmatprep.mubr.msk.bf16.mxu0 %vm8171_vm0, %v10454_v19  ;;  %7497 = vmatprep.mubr.msk.bf16.mxu1 %vm8171_vm0, %v10454_v19 }
 0x5e9   :  { %7204 = vmatpush3.bf16.msra.mxu0 %v10514_v18  ;;  %7492 = vmatpush3.bf16.msra.mxu1 %v10514_v18 }
 0x5ea   :  { %7205 = vmatprep.subr.bf16.mxu0 %v10454_v19  ;;  %7493 = vmatprep.subr.bf16.mxu1 %v10454_v19 }
 0x5ed   :  { %7206 = vmatpush3.bf16.msra.mxu0 %v10515_v31  ;;  %7494 = vmatpush3.bf16.msra.mxu1 %v10515_v31  ;;  %v6098_v31 = vld [vmem:[%s10263_s6] ss:$0 sm:$0xff] }
 0x5ee   :  { %7207 = vmatprep.subr.bf16.mxu0 %v10454_v19  ;;  %7495 = vmatprep.subr.bf16.mxu1 %v10454_v19 }
 0x5f1   :  { %7208 = vmatpush3.bf16.msra.mxu0 %v10516_v26  ;;  %7496 = vmatpush3.bf16.msra.mxu1 %v10516_v26 }
 0x5f2   :  { %7213 = vmatprep.subr.bf16.mxu0 %v10454_v19  ;;  %7501 = vmatprep.subr.bf16.mxu1 %v10454_v19 }
 0x5f4   :  { %7210 = vmatmul.mubr.msk.bf16.vlgmr.msra.gmra.mrb[12].mxu0 %vm399_vm2, %v4043_v25  ;;  %7498 = vmatmul.mubr.msk.bf16.vlgmr.msra.gmra.mrb[24].mxu1 %vm399_vm2, %v5112_v35 }
 0x5f5   :  { %7214 = vmatpush3.bf16.msra.mxu0 %v10517_v48  ;;  %7502 = vmatpush3.bf16.msra.mxu1 %v10517_v48 }
 0x5f6   :  { %7215 = vmatprep.subr.bf16.mxu0 %v10454_v19  ;;  %7503 = vmatprep.subr.bf16.mxu1 %v10454_v19 }
 0x5f7   :  { %7221 = vmatprep.mubr.msk.bf16.mxu0 %vm8171_vm0, %v10454_v19  ;;  %7509 = vmatprep.mubr.msk.bf16.mxu1 %vm8171_vm0, %v10454_v19 }
 0x5f9   :  { %7216 = vmatpush3.bf16.msra.mxu0 %v10518_v24  ;;  %7504 = vmatpush3.bf16.msra.mxu1 %v10518_v24 }
 0x5fa   :  { %7217 = vmatprep.subr.bf16.mxu0 %v10454_v19  ;;  %7505 = vmatprep.subr.bf16.mxu1 %v10454_v19 }
 0x5fd   :  { %7218 = vmatpush3.bf16.msra.mxu0 %v10519_v32  ;;  %7506 = vmatpush3.bf16.msra.mxu1 %v10519_v32 }
 0x5fe   :  { %7219 = vmatprep.subr.bf16.mxu0 %v10454_v19  ;;  %7507 = vmatprep.subr.bf16.mxu1 %v10454_v19 }
 0x601   :  { %7220 = vmatpush3.bf16.msra.mxu0 %v10520_v23  ;;  %7508 = vmatpush3.bf16.msra.mxu1 %v10520_v23 }
 0x602   :  { %7225 = vmatprep.subr.bf16.mxu0 %v10454_v19  ;;  %7513 = vmatprep.subr.bf16.mxu1 %v10454_v19 }
 0x604   :  { %7222 = vmatmul.mubr.msk.bf16.vlgmr.msra.gmra.mrb[12].mxu0 %vm399_vm2, %v4087_v41  ;;  %7510 = vmatmul.mubr.msk.bf16.vlgmr.msra.gmra.mrb[24].mxu1 %vm399_vm2, %v5156_v28  ;;  %v7692_v28 = vpack.c.bf16 %v5487_v22, %v5486_v42 }
 0x605   :  { %7226 = vmatpush3.bf16.msra.mxu0 %v10521_v43  ;;  %7514 = vmatpush3.bf16.msra.mxu1 %v10521_v43  ;;  %v5488_v43 = vld [vmem:[%s10264_s7 + $0x10] sm:$0xff] }
 0x606   :  { %7227 = vmatprep.subr.bf16.mxu0 %v10454_v19  ;;  %7515 = vmatprep.subr.bf16.mxu1 %v10454_v19 }
 0x607   :  { %7233 = vmatprep.mubr.msk.bf16.mxu0 %vm8171_vm0, %v10454_v19  ;;  %7521 = vmatprep.mubr.msk.bf16.mxu1 %vm8171_vm0, %v10454_v19 }
 0x609   :  { %7228 = vmatpush3.bf16.msra.mxu0 %v10522_v59  ;;  %7516 = vmatpush3.bf16.msra.mxu1 %v10522_v59  ;;  %v5489_v59 = vld [vmem:[%s10264_s7 + $0x18] sm:$0xff] }
 0x60a   :  { %7229 = vmatprep.subr.bf16.mxu0 %v10454_v19  ;;  %7517 = vmatprep.subr.bf16.mxu1 %v10454_v19 }
 0x60d   :  { %7230 = vmatpush3.bf16.msra.mxu0 %v10523_v8  ;;  %7518 = vmatpush3.bf16.msra.mxu1 %v10523_v8  ;;  %v7695_v8 = vpack.c.bf16 %v5489_v59, %v5488_v43 }
 0x60e   :  { %7231 = vmatprep.subr.bf16.mxu0 %v10454_v19  ;;  %7519 = vmatprep.subr.bf16.mxu1 %v10454_v19 }
 0x611   :  { %7232 = vmatpush3.bf16.msra.mxu0 %v10524_v46  ;;  %7520 = vmatpush3.bf16.msra.mxu1 %v10524_v46 }
 0x612   :  { %7237 = vmatprep.subr.bf16.mxu0 %v10454_v19  ;;  %7525 = vmatprep.subr.bf16.mxu1 %v10454_v19 }
 0x614   :  { %7234 = vmatmul.mubr.msk.bf16.vlgmr.msra.gmra.mrb[12].mxu0 %vm399_vm2, %v4131_v60  ;;  %7522 = vmatmul.mubr.msk.bf16.vlgmr.msra.gmra.mrb[24].mxu1 %vm399_vm2, %v5200_v52  ;;  %v5490_v60 = vld [vmem:[%s10264_s7 + $0x20] sm:$0xff]  ;;  %v5491_v52 = vld [vmem:[%s10264_s7 + $0x28] sm:$0xff] }
 0x615   :  { %7238 = vmatpush3.bf16.msra.mxu0 %v10525_v30  ;;  %7526 = vmatpush3.bf16.msra.mxu1 %v10525_v30  ;;  %v7698_v46 = vpack.c.bf16 %v5491_v52, %v5490_v60  ;;  %v5492_v30 = vld [vmem:[%s10264_s7 + $0x30] sm:$0xff] }
 0x616   :  { %7239 = vmatprep.subr.bf16.mxu0 %v10454_v19  ;;  %7527 = vmatprep.subr.bf16.mxu1 %v10454_v19 }
 0x617   :  { %7245 = vmatprep.mubr.msk.bf16.mxu0 %vm8171_vm0, %v10454_v19  ;;  %7533 = vmatprep.mubr.msk.bf16.mxu1 %vm8171_vm0, %v10454_v19 }
 0x619   :  { %7240 = vmatpush3.bf16.msra.mxu0 %v10526_v38  ;;  %7528 = vmatpush3.bf16.msra.mxu1 %v10526_v38  ;;  %v5493_v38 = vld [vmem:[%s10264_s7 + $0x38] sm:$0xff]  ;;  %s5838_s7 = sshll.u32 %s8174_s19, 4  ;;  %s5839_s7 = int_to_ptr.vmem [resolvable:$true] %s5838_s7 }
 0x61a   :  { %7241 = vmatprep.subr.bf16.mxu0 %v10454_v19  ;;  %7529 = vmatprep.subr.bf16.mxu1 %v10454_v19  ;;  %p8149_p1 = scmp.lt.s32.totalorder %s5839_s7, %s5839_s7 }
 0x61d   :  { %7242 = vmatpush3.bf16.msra.mxu0 %v10527_v44  ;;  %7530 = vmatpush3.bf16.msra.mxu1 %v10527_v44  ;;  %v7701_v44 = vpack.c.bf16 %v5493_v38, %v5492_v30 }
 0x61e   :  { %7243 = vmatprep.subr.bf16.mxu0 %v10454_v19  ;;  %7531 = vmatprep.subr.bf16.mxu1 %v10454_v19 }
 0x621   :  { %7244 = vmatpush3.bf16.msra.mxu0 %v10528_v27  ;;  %7532 = vmatpush3.bf16.msra.mxu1 %v10528_v27  ;;  %v5659_v27 = vld [vmem:[%s10267_s10 + $0x10] sm:$0xff] }
 0x622   :  { %7249 = vmatprep.subr.bf16.mxu0 %v10454_v19  ;;  %7537 = vmatprep.subr.bf16.mxu1 %v10454_v19 }
 0x624   :  { %7246 = vmatmul.mubr.msk.bf16.vlgmr.msra.gmra.mrb[12].mxu0 %vm399_vm2, %v4175_v9  ;;  %7534 = vmatmul.mubr.msk.bf16.vlgmr.msra.gmra.mrb[24].mxu1 %vm399_vm2, %v5244_v0  ;;  %v5657_v9 = vld [vmem:[%s10267_s10] sm:$0xff]  ;;  %v5658_v0 = vld [vmem:[%s10267_s10 + $0x8] sm:$0xff] }
 0x625   :  { %7250 = vmatpush3.bf16.msra.mxu0 %v10529_v16  ;;  %7538 = vmatpush3.bf16.msra.mxu1 %v10529_v16  ;;  %v7704_v16 = vpack.c.bf16 %v5658_v0, %v5657_v9 }
 0x626   :  { %7251 = vmatprep.subr.bf16.mxu0 %v10454_v19  ;;  %7539 = vmatprep.subr.bf16.mxu1 %v10454_v19 }
 0x627   :  { %7257 = vmatprep.mubr.msk.bf16.mxu0 %vm8171_vm0, %v10454_v19  ;;  %7545 = vmatprep.mubr.msk.bf16.mxu1 %vm8171_vm0, %v10454_v19 }
 0x629   :  { %7252 = vmatpush3.bf16.msra.mxu0 %v10530_v33  ;;  %7540 = vmatpush3.bf16.msra.mxu1 %v10530_v33 }
 0x62a   :  { %7253 = vmatprep.subr.bf16.mxu0 %v10454_v19  ;;  %7541 = vmatprep.subr.bf16.mxu1 %v10454_v19 }
 0x62d   :  { %7254 = vmatpush3.bf16.msra.mxu0 %v10531_v10  ;;  %7542 = vmatpush3.bf16.msra.mxu1 %v10531_v10  ;;  %v5662_v10 = vld [vmem:[%s10267_s10 + $0x28] sm:$0xff] }
 0x62e   :  { %7255 = vmatprep.subr.bf16.mxu0 %v10454_v19  ;;  %7543 = vmatprep.subr.bf16.mxu1 %v10454_v19 }
 0x631   :  { %7256 = vmatpush3.bf16.msra.mxu0 %v10532_v49  ;;  %7544 = vmatpush3.bf16.msra.mxu1 %v10532_v49 }
 0x632   :  { %7261 = vmatprep.subr.bf16.mxu0 %v10454_v19  ;;  %7549 = vmatprep.subr.bf16.mxu1 %v10454_v19 }
 0x634   :  { %7258 = vmatmul.mubr.msk.bf16.vlgmr.msra.gmra.mrb[12].mxu0 %vm399_vm2, %v10482_v63  ;;  %7546 = vmatmul.mubr.msk.bf16.vlgmr.msra.gmra.mrb[24].mxu1 %vm399_vm2, %v10483_v54  ;;  %v7683_v63 = vpack.c.bf16 %v5497_v45, %v5496_v47  ;;  %v5498_v54 = vld [vmem:[%s10265_s8 + $0x20] sm:$0xff] }
 0x635   :  { %7262 = vmatpush3.bf16.msra.mxu0 %v10533_v11  ;;  %7550 = vmatpush3.bf16.msra.mxu1 %v10533_v11  ;;  %v7686_v62 = vpack.c.bf16 %v5499_v39, %v5498_v54  ;;  %v5663_v11 = vld [vmem:[%s10267_s10 + $0x30] sm:$0xff]  ;;  %v6104_v47 = vld [vmem:[%s10270_s13] ss:$0 sm:$0xff] }
 0x636   :  { %7263 = vmatprep.subr.bf16.mxu0 %v10454_v19  ;;  %7551 = vmatprep.subr.bf16.mxu1 %v10454_v19 }
 0x637   :  { %7269 = vmatprep.mubr.msk.bf16.mxu0 %vm8171_vm0, %v10454_v19  ;;  %7557 = vmatprep.mubr.msk.bf16.mxu1 %vm8171_vm0, %v10454_v19 }
 0x639   :  { %7264 = vmatpush3.bf16.msra.mxu0 %v10534_v40  ;;  %7552 = vmatpush3.bf16.msra.mxu1 %v10534_v40  ;;  %v5664_v40 = vld [vmem:[%s10267_s10 + $0x38] sm:$0xff] }
 0x63a   :  { %7265 = vmatprep.subr.bf16.mxu0 %v10454_v19  ;;  %7553 = vmatprep.subr.bf16.mxu1 %v10454_v19 }
 0x63d   :  { %7266 = vmatpush3.bf16.msra.mxu0 %v10535_v3  ;;  %7554 = vmatpush3.bf16.msra.mxu1 %v10535_v3  ;;  %v7713_v3 = vpack.c.bf16 %v5664_v40, %v5663_v11 }
 0x63e   :  { %7267 = vmatprep.subr.bf16.mxu0 %v10454_v19  ;;  %7555 = vmatprep.subr.bf16.mxu1 %v10454_v19 }
 0x641   :  { %7268 = vmatpush3.bf16.msra.mxu0 %v10536_v2  ;;  %7556 = vmatpush3.bf16.msra.mxu1 %v10536_v2 }
 0x642   :  { %7273 = vmatprep.subr.bf16.mxu0 %v10454_v19  ;;  %7561 = vmatprep.subr.bf16.mxu1 %v10454_v19 }
 0x644   :  { %7270 = vmatmul.mubr.msk.bf16.vlgmr.msra.gmra.mrb[12].mxu0 %vm399_vm2, %v4262_v1  ;;  %7558 = vmatmul.mubr.msk.bf16.vlgmr.msra.gmra.mrb[24].mxu1 %vm399_vm2, %v5331_v50  ;;  %v5746_v1 = vld [vmem:[%s10269_s12] sm:$0xff]  ;;  %v5747_v50 = vld [vmem:[%s10269_s12 + $0x8] sm:$0xff] }
 0x645   :  { %7274 = vmatpush3.bf16.msra.mxu0 %v10537_v4  ;;  %7562 = vmatpush3.bf16.msra.mxu1 %v10537_v4  ;;  %v7716_v2 = vpack.c.bf16 %v5747_v50, %v5746_v1 }
 0x646   :  { %7275 = vmatprep.subr.bf16.mxu0 %v10454_v19  ;;  %7563 = vmatprep.subr.bf16.mxu1 %v10454_v19 }
 0x647   :  { %7281 = vmatprep.mubr.msk.bf16.mxu0 %vm8171_vm0, %v10454_v19  ;;  %7569 = vmatprep.mubr.msk.bf16.mxu1 %vm8171_vm0, %v10454_v19 }
 0x649   :  { %7276 = vmatpush3.bf16.msra.mxu0 %v10538_v56  ;;  %7564 = vmatpush3.bf16.msra.mxu1 %v10538_v56 }
 0x64a   :  { %7277 = vmatprep.subr.bf16.mxu0 %v10454_v19  ;;  %7565 = vmatprep.subr.bf16.mxu1 %v10454_v19 }
 0x64d   :  { %7278 = vmatpush3.bf16.msra.mxu0 %v10539_v5  ;;  %7566 = vmatpush3.bf16.msra.mxu1 %v10539_v5 }
 0x64e   :  { %7279 = vmatprep.subr.bf16.mxu0 %v10454_v19  ;;  %7567 = vmatprep.subr.bf16.mxu1 %v10454_v19 }
 0x651   :  { %7280 = vmatpush3.bf16.msra.mxu0 %v10540_v12  ;;  %7568 = vmatpush3.bf16.msra.mxu1 %v10540_v12 }
 0x652   :  { %7285 = vmatprep.subr.bf16.mxu0 %v10454_v19  ;;  %7573 = vmatprep.subr.bf16.mxu1 %v10454_v19 }
 0x654   :  { %7282 = vmatmul.mubr.msk.bf16.vlgmr.msra.gmra.mrb[12].mxu0 %vm399_vm2, %v4306_v6  ;;  %7570 = vmatmul.mubr.msk.bf16.vlgmr.msra.gmra.mrb[24].mxu1 %vm399_vm2, %v5375_v7  ;;  %v6101_v6 = vld [vmem:[%s10266_s9] ss:$0 sm:$0xff] }
 0x655   :  { %7286 = vmatpush3.bf16.msra.mxu0 %v10541_v13  ;;  %7574 = vmatpush3.bf16.msra.mxu1 %v10541_v13 }
 0x656   :  { %7287 = vmatprep.subr.bf16.mxu0 %v10454_v19  ;;  %7575 = vmatprep.subr.bf16.mxu1 %v10454_v19 }
 0x657   :  { %7293 = vmatprep.mubr.msk.bf16.mxu0 %vm8171_vm0, %v10454_v19  ;;  %7581 = vmatprep.mubr.msk.bf16.mxu1 %vm8171_vm0, %v10454_v19 }
 0x659   :  { %7288 = vmatpush3.bf16.msra.mxu0 %v10542_v14  ;;  %7576 = vmatpush3.bf16.msra.mxu1 %v10542_v14 }
 0x65a   :  { %7289 = vmatprep.subr.bf16.mxu0 %v10454_v19  ;;  %7577 = vmatprep.subr.bf16.mxu1 %v10454_v19 }
 0x65d   :  { %7290 = vmatpush3.bf16.msra.mxu0 %v10543_v15  ;;  %7578 = vmatpush3.bf16.msra.mxu1 %v10543_v15  ;;  %v5748_v15 = vld [vmem:[%s10269_s12 + $0x10] sm:$0xff]  ;;  %s8144_s12 = scalar_lea.vmem %s5839_s7, 32 }
 0x65e   :  { %7291 = vmatprep.subr.bf16.mxu0 %v10454_v19  ;;  %7579 = vmatprep.subr.bf16.mxu1 %v10454_v19  ;;  %v7719_v21 = vpack.c.bf16 %v5749_v20, %v5748_v15  ;;  %p8145_p0 = scmp.ne.s32.totalorder %s5839_s7, %s8144_s12  ;;  %p8150_p2 = scmp.lt.s32.totalorder %s8144_s12, %s8144_s12 }
 0x660   :  { %p8151_p3 = por %p8150_p2, %p8149_p1 }
 0x661   :  { %7292 = vmatpush3.bf16.msra.mxu0 %v10544_v61  ;;  %7580 = vmatpush3.bf16.msra.mxu1 %v10544_v61 }
 0x662   :  { %7679 = vmatprep.subr.bf16.mxu0 %v10545_v53  ;;  %7703 = vmatprep.subr.bf16.mxu1 %v10545_v53  ;;  %p8152_p4 = pnand %p8151_p3, %p8145_p0 }
 0x664   :  { %7294 = vmatmul.mubr.msk.bf16.vlgmr.msra.gmra.mrb[12].mxu0 %vm399_vm2, %v4350_v51  ;;  %7582 = vmatmul.mubr.msk.bf16.vlgmr.msra.gmra.mrb[24].mxu1 %vm399_vm2, %v5419_v57  ;;  %v6102_v51 = vld [vmem:[%s10268_s11] ss:$0 sm:$0xff] }
 0x665   :  { %7681 = vmatpush3.bf16.msra.mxu0 %v7680_v55  ;;  %7601 = vmatprep.mubr.msk.f32.mxu0 %vm8171_vm0, %v10454_v19 }
 0x666   :  { %7682 = vmatprep.subr.bf16.mxu0 %v10545_v53  ;;  %7639 = vmatprep.mubr.msk.f32.mxu1 %vm8171_vm0, %v10454_v19 }
 0x667   :  { %7705 = vmatpush3.bf16.msra.mxu1 %v7704_v16 }
 0x668   :  { %7706 = vmatprep.subr.bf16.mxu1 %v10545_v53 }
 0x669   :  { %7684 = vmatpush3.bf16.msra.mxu0 %v7683_v63 }
 0x66a   :  { %7685 = vmatprep.subr.bf16.mxu0 %v10545_v53 }
 0x66d   :  { %7687 = vmatpush3.bf16.msra.mxu0 %v7686_v62 }
 0x66e   :  { %7688 = vmatprep.subr.bf16.mxu0 %v10545_v53 }
 0x671   :  { %7690 = vmatpush3.bf16.msra.mxu0 %v7689_v17 }
 0x672   :  { %7691 = vmatprep.subr.bf16.mxu0 %v10545_v53 }
 0x737   :  { %v4388_v34 = vpop.f32.mrb[12].mxu0  ;;  %v5457_v37 = vpop.f32.mrb[24].mxu1 }
 0x738   :  { %v5475_v18 = vrot.slane %v5457_v37, 7  ;;  %v7295_v25 = vpop.f32.mrb[13].mxu0  ;;  %v7583_v35 = vpop.f32.mrb[25].mxu1 }
 0x739   :  { %v4391_v26 = vpop.f32.mrb[14].mxu0  ;;  %v5460_v48 = vpop.f32.mrb[26].mxu1 }
 0x73a   :  { %v5477_v24 = vsel %vm3202_vm6, %v4388_v34, %v5475_v18  ;;  %v7296_v32 = vpop.f32.mrb[15].mxu0  ;;  %v7584_v41 = vpop.f32.mrb[27].mxu1 }
 0x73b   :  { %v5485_v23 = vadd.f32 %v6098_v31, %v5477_v24 }
 0x73d   :  { %7602 = vmatmul.mubr.msk.f32.vlgmr.msra.gmra.mrb[6].mxu0 %vm399_vm2, %v5485_v23 }
 0x73e   :  { %7693 = vmatpush3.bf16.msra.mxu0 %v7692_v28  ;;  %7620 = vmatprep.mubr.msk.f32.mxu0 %vm8171_vm0, %v10454_v19 }
 0x73f   :  { %7694 = vmatprep.subr.bf16.mxu0 %v10545_v53 }
 0x742   :  { %7696 = vmatpush3.bf16.msra.mxu0 %v7695_v8 }
 0x743   :  { %7697 = vmatprep.subr.bf16.mxu0 %v10545_v53 }
 0x746   :  { %7699 = vmatpush3.bf16.msra.mxu0 %v7698_v46 }
 0x747   :  { %7700 = vmatprep.subr.bf16.mxu0 %v10545_v53 }
 0x74a   :  { %7702 = vmatpush3.bf16.msra.mxu0 %v7701_v44 }
 0x74b   :  { %7715 = vmatprep.subr.bf16.mxu0 %v10545_v53 }
 0x74d   :  { %7621 = vmatmul.mubr.msk.f32.vlgmr.msra.gmra.mrb[16].mxu0 %vm399_vm2, %v9532_v58  ;;  %v5660_v58 = vld [vmem:[%s10267_s10 + $0x18] sm:$0xff] }
 0x74e   :  { %7650 = vmatprep.mubr.msk.f32.mxu0 %vm8171_vm0, %v10454_v19  ;;  %v7707_v33 = vpack.c.bf16 %v5660_v58, %v5659_v27  ;;  %v5661_v19 = vld [vmem:[%s10267_s10 + $0x20] sm:$0xff]  ;;  %7717 = vmatpush3.bf16.msra.mxu0 %v7716_v2 }
 0x74f   :  { %v7710_v49 = vpack.c.bf16 %v5662_v10, %v5661_v19  ;;  %7718 = vmatprep.subr.bf16.mxu0 %v10545_v53 }
 0x750   :  { %7708 = vmatpush3.bf16.msra.mxu1 %v7707_v33 }
 0x751   :  { %7709 = vmatprep.subr.bf16.mxu1 %v10545_v53 }
 0x752   :  { %7720 = vmatpush3.bf16.msra.mxu0 %v7719_v21 }
 0x754   :  { %7711 = vmatpush3.bf16.msra.mxu1 %v7710_v49 }
 0x755   :  { %7712 = vmatprep.subr.bf16.mxu1 %v10545_v53 }
 0x758   :  { %7714 = vmatpush3.bf16.msra.mxu1 %v7713_v3 }
 0x810   :  { %v5571_v4 = vpop.f32.mrb[6].mxu0 }
 0x811   :  { %v7603_v56 = vpop.f32.mrb[7].mxu0 }
 0x820   :  { %v5644_v5 = vpop.f32.mrb[16].mxu0 }
 0x821   :  { %v5645_v7 = vadd.f32 %v5644_v5, %v5571_v4  ;;  %v7622_v12 = vpop.f32.mrb[17].mxu0 }
 0x823   :  { %v5655_v13 = vadd.f32 %v6101_v6, %v5645_v7 }
 0x825   :  { %v5656_v14 = vmax.f32 %v5655_v13, 0.0 }
 0x827   :  { %7640 = vmatmul.mubr.msk.f32.vlgmr.msra.gmra.mrb[18].mxu1 %vm399_vm2, %v5656_v14 }
 0x8fa   :  { %v5741_v57 = vpop.f32.mrb[18].mxu1 }
 0x8fb   :  { %v5742_v61 = vadd.f32 %v6102_v51, %v5741_v57  ;;  %v7641_v55 = vpop.f32.mrb[19].mxu1 }
 0x8fd   :  { %v5745_v53 = vmax.f32 %v5742_v61, 0.0 }
 0x8ff   :  { %7651 = vmatmul.mubr.msk.f32.vlgmr.msra.gmra.mrb[18].mxu0 %vm5757_vm7, %v5745_v53 }
 0x9d2   :  { %v5827_v45 = vpop.f32.mrb[18].mxu0 }
 0x9d3   :  { %v5828_v63 = vadd.f32 %v6104_v47, %v5827_v45  ;;  %v7652_v54 = vpop.f32.mrb[19].mxu0 }
 0x9d5   :  { %5831 = vst [vmem:[#allocation4] sm:$0x3] %v5828_v63 }
 0x9d6   :  { %8155 = shalt.err (!%p8152_p4)
}
 0x9d7   :  { %s8156_s20 = scalar_lea.hbm %s10271_s14, 32 }
 0x9d8   :  { %p8157_p5 = scmp.ne.s32.totalorder %s10271_s14, %s8156_s20  ;;  %p8160_p6 = scmp.lt.u32.totalorder %s8156_s20, %s10271_s14 }
 0x9da   :  { %p8162_p7 = pnand %p8160_p6, %p8157_p5 }
 0x9dc   :  { %8165 = shalt.err (!%p8162_p7)
}
 0x9dd   :  { %5841 = dma.vmem_to_hbm [thread:$0]  %s5839_s7, 32, %s10271_s14, [#allocation5]  }
 0x9de   :  { %8168 = dma.done.wait [#allocation5], 32  }
 0x9df   :  { %8169 = vsyncadd [#allocation5], 4294967264 }
 0x9e0   :  { %5845 = vsyncpa [#allocation5], 1 }
 0x9e1   :  { %5846 = vsyncmov [#allocation3] }
 0x9e4   :  { %s5847_s25 = vpop.sfrf %5846 }
 0x9e5   :  { %p6106_p8 = scmp.ne.s32.totalorder %s5847_s25, 0 }
 0x9e7   :  { %5851 = shalt.err (%p6106_p8)  }

</bundles_post_ra>
